<compile_context>
chip_gen: v5e
topology: v5e:2x2
jax: 0.10.0
libtpu: 0.0.40
codegen_flags: <defaults>
</compile_context>

<pallas_src>
import jax
import jax.numpy as jnp
from jax.experimental import pallas as pl
from jax.experimental.pallas import tpu as pltpu

IN_DIM = 32
NODE_FEAT_DIM = IN_DIM // 2      # 16
GNN_HID_DIM = 64
LSTM_HID_DIM = 128
OUT_DIM = 26
FEAT_DIM = 2 * GNN_HID_DIM       # 128 (LSTM input size; also padded output width)
GATES = 4 * LSTM_HID_DIM         # 512


# ------------------------------ fused kernel ---------------------------------
def fused_kernel(x_ref, wx_ref, b1_ref,
                 whh1_ref, wih2_ref, whh2_ref, b2_ref,
                 fw1_ref, fb1_ref, fw2_ref, fb2_ref, fw3_ref, fb3_ref,
                 o_ref):
    """Entire ImprovedSeqGNN forward for one batch slab.

    x_ref   : [T*B, 32]  time-major frames (row t*B+b), sublane-dense, f32
    wx_ref  : [32, 512]  GCN+concat folded layer-1 input weight, bf16
    b1_ref  : [1, 512]   folded layer-1 bias (b_ih + b_hh + b_gcn term), f32
    whh1_ref: [128, 512] layer-1 recurrent weight, bf16
    wih2_ref: [128, 512] layer-2 input weight, bf16
    whh2_ref: [128, 512] layer-2 recurrent weight, bf16
    b2_ref  : [1, 512]   layer-2 bias, f32
    fw*/fb* : FC head (fw3/fb3 zero-padded 26 -> 128 lanes), weights bf16
    o_ref   : [B, 128]   lane-dense output slab; caller slices [:, :26]
    """
    H = LSTM_HID_DIM
    B = o_ref.shape[0]
    T = x_ref.shape[0] // B
    bf16 = jnp.bfloat16

    # ---- Hoisted layer-1 input projection: ONE parallel MXU matmul over all
    #      timesteps (GCN already folded into wx in the wrapper).  This is the
    #      only place x is touched; nothing frame-shaped feeds the recurrence.
    g1_all = (jnp.dot(x_ref[...].astype(bf16), wx_ref[...],
                      preferred_element_type=jnp.float32)
              + b1_ref[...])                                        # [T*B, 512] f32

    # Hoist weight loads and bias broadcast above the (static, unrolled) loop —
    # JAX does not CSE broadcast_in_dim inside loops.
    whh1 = whh1_ref[...]
    wih2 = wih2_ref[...]
    whh2 = whh2_ref[...]
    b2 = jnp.broadcast_to(b2_ref[...], (B, GATES))

    def sigmoid_t(v):
        # exact identity: sigmoid(x) = 0.5*(tanh(x/2)+1) -> single EUP op.
        return 0.5 * jnp.tanh(0.5 * v) + 0.5

    def gates_to_hc(g, c):
        # PyTorch LSTM gate order: i, f, g, o.  All elementwise math in f32.
        i = sigmoid_t(g[:, 0 * H:1 * H])
        f = sigmoid_t(g[:, 1 * H:2 * H])
        gg = jnp.tanh(g[:, 2 * H:3 * H])
        o = sigmoid_t(g[:, 3 * H:4 * H])
        c_new = f * c + i * gg
        return o * jnp.tanh(c_new), c_new

    zeros = jnp.zeros((B, H), jnp.float32)
    h1, c1, h2, c2 = zeros, zeros, zeros, zeros

    # Fully unrolled static time loop (T=8): per step only K=128 bf16 recurrent
    # matmuls remain on the serial chain; f32 accumulation and f32 c/h state.
    for t in range(T):
        g1 = g1_all[t * B:(t + 1) * B, :] + jnp.dot(
            h1.astype(bf16), whh1, preferred_element_type=jnp.float32)
        h1, c1 = gates_to_hc(g1, c1)
        # Inter-layer LSTM dropout is identity in eval mode.
        g2 = (jnp.dot(h1.astype(bf16), wih2, preferred_element_type=jnp.float32)
              + jnp.dot(h2.astype(bf16), whh2, preferred_element_type=jnp.float32)
              + b2)
        h2, c2 = gates_to_hc(g2, c2)

    # FC head (Dropout identity in eval mode).  Final store is lane-dense (128).
    y1 = jnp.maximum(
        jnp.dot(h2.astype(bf16), fw1_ref[...],
                preferred_element_type=jnp.float32) + fb1_ref[...], 0.0)
    y2 = jnp.maximum(
        jnp.dot(y1.astype(bf16), fw2_ref[...],
                preferred_element_type=jnp.float32) + fb2_ref[...], 0.0)
    o_ref[...] = (jnp.dot(y2.astype(bf16), fw3_ref[...],
                          preferred_element_type=jnp.float32) + fb3_ref[...])


def fused_forward(x_flat, fp, batch):
    tb = x_flat.shape[0]

    def full(shape):
        n = len(shape)
        return pl.BlockSpec(shape, lambda i, n=n: (0,) * n)

    return pl.pallas_call(
        fused_kernel,
        out_shape=jax.ShapeDtypeStruct((batch, FEAT_DIM), jnp.float32),
        grid=(1,),
        in_specs=[
            full((tb, IN_DIM)),                 # x (time-major, sublane-dense)
            full((IN_DIM, GATES)),              # wx  (GCN-folded, bf16)
            full((1, GATES)),                   # b1
            full((LSTM_HID_DIM, GATES)),        # whh1 (bf16)
            full((LSTM_HID_DIM, GATES)),        # wih2 (bf16)
            full((LSTM_HID_DIM, GATES)),        # whh2 (bf16)
            full((1, GATES)),                   # b2
            full((LSTM_HID_DIM, 128)),          # fc1 w (bf16)
            full((1, 128)),                     # fc1 b
            full((128, 64)),                    # fc2 w (bf16)
            full((1, 64)),                      # fc2 b
            full((64, FEAT_DIM)),               # fc3 w (padded to 128 lanes, bf16)
            full((1, FEAT_DIM)),                # fc3 b (padded to 128 lanes)
        ],
        out_specs=full((batch, FEAT_DIM)),
        compiler_params=pltpu.CompilerParams(dimension_semantics=("arbitrary",)),
    )(x_flat, fp["wx"], fp["b1"], fp["whh1"], fp["wih2"], fp["whh2"], fp["b2"],
      fp["fw1"], fp["fb1"], fp["fw2"], fp["fb2"], fp["fw3"], fp["fb3"])


# ------------------------------ parameter init --------------------------------
def init_params(key):
    ks = jax.random.split(key, 16)
    H = LSTM_HID_DIM

    def u(k, shape, fan_in):
        bound = 1.0 / jnp.sqrt(float(fan_in))
        return jax.random.uniform(k, shape, jnp.float32, -bound, bound)

    return {
        # GCNConv(16, 64): weight stored as [in, out], bias [1, out]
        "gcn_w": u(ks[0], (NODE_FEAT_DIM, GNN_HID_DIM), NODE_FEAT_DIM),
        "gcn_b": u(ks[1], (1, GNN_HID_DIM), NODE_FEAT_DIM),
        # LSTM layer 0: PyTorch weight_ih [4H, in] stored transposed [in, 4H]
        "wih1": u(ks[2], (FEAT_DIM, 4 * H), H),
        "whh1": u(ks[3], (H, 4 * H), H),
        "lb1": u(ks[4], (1, 4 * H), H) + u(ks[5], (1, 4 * H), H),   # b_ih + b_hh
        # LSTM layer 1
        "wih2": u(ks[6], (H, 4 * H), H),
        "whh2": u(ks[7], (H, 4 * H), H),
        "lb2": u(ks[8], (1, 4 * H), H) + u(ks[9], (1, 4 * H), H),
        # fc head
        "fw1": u(ks[10], (H, 128), H),
        "fb1": u(ks[11], (1, 128), H),
        "fw2": u(ks[12], (128, 64), 128),
        "fb2": u(ks[13], (1, 64), 128),
        "fw3": u(ks[14], (64, OUT_DIM), 64),
        "fb3": u(ks[15], (1, OUT_DIM), 64),
    }


def fold_params(p):
    """One-time, exact, wrapper-side algebra:
       * fold GCN + concat([h,h]) into the LSTM layer-1 input weight/bias:
           W_x = [0.5*W_gcn @ (Wih1_top + Wih1_bot)] stacked for left/right,
           b1  = b_ih1 + b_hh1 + b_gcn @ (Wih1_top + Wih1_bot)
         (no zero rows: W_x is kept at [32, 512] because the input projection
          is hoisted out of the recurrence in the kernel),
       * store all MXU weight operands in bf16 (biases / state stay f32),
       * zero-pad the FC output weight/bias to 128 lanes (lane-dense store)."""
    hi = jax.lax.Precision.HIGHEST
    bf16 = jnp.bfloat16
    w_sum = p["wih1"][:GNN_HID_DIM] + p["wih1"][GNN_HID_DIM:]              # [64, 4H]
    w_eff = 0.5 * jnp.dot(p["gcn_w"], w_sum, precision=hi)                 # [16, 4H]
    wx = jnp.concatenate([w_eff, w_eff], axis=0)                           # [32, 4H]
    b1 = p["lb1"] + jnp.dot(p["gcn_b"], w_sum, precision=hi)               # [1, 4H]
    fw3_pad = jnp.zeros((64, FEAT_DIM), jnp.float32).at[:, :OUT_DIM].set(p["fw3"])
    fb3_pad = jnp.zeros((1, FEAT_DIM), jnp.float32).at[:, :OUT_DIM].set(p["fb3"])
    return {
        "wx": wx.astype(bf16),
        "b1": b1,
        "whh1": p["whh1"].astype(bf16),
        "wih2": p["wih2"].astype(bf16),
        "whh2": p["whh2"].astype(bf16),
        "b2": p["lb2"],
        "fw1": p["fw1"].astype(bf16), "fb1": p["fb1"],
        "fw2": p["fw2"].astype(bf16), "fb2": p["fb2"],
        "fw3": fw3_pad.astype(bf16), "fb3": fb3_pad,
    }


# ------------------------------- full forward ---------------------------------
@jax.jit
def improved_seq_gnn(x, folded):
    """x: [B, T, IN_DIM] float32 -> [B, OUT_DIM] float32 (single fused kernel)."""
    B, T, _ = x.shape
    # Only a transpose+reshape pre-kernel: no lane padding of x (review item 2).
    x_flat = jnp.transpose(x, (1, 0, 2)).reshape(T * B, IN_DIM)            # [T*B, 32]
    out_pad = fused_forward(x_flat, folded, B)                             # [B, 128]
    return out_pad[:, :OUT_DIM]


# ------------------------- pure-JAX reference (unfused) -----------------------
def reference_forward(x, p):
    """Original (unfolded, all-f32) module math; validates the folding algebra
    and the bf16-MXU / tanh-form-sigmoid kernel to within 2e-2."""
    B, T, _ = x.shape
    H = LSTM_HID_DIM
    left = x[..., :NODE_FEAT_DIM]
    right = x[..., NODE_FEAT_DIM:]
    h = 0.5 * (left + right) @ p["gcn_w"] + p["gcn_b"]                     # [B, T, 64]
    feats = jnp.concatenate([h, h], axis=-1)                               # [B, T, 128]

    def cell(x_t, hh, cc, wih, whh, b):
        g = x_t @ wih + hh @ whh + b
        i = jax.nn.sigmoid(g[:, :H]); f = jax.nn.sigmoid(g[:, H:2 * H])
        gg = jnp.tanh(g[:, 2 * H:3 * H]); o = jax.nn.sigmoid(g[:, 3 * H:])
        cc = f * cc + i * gg
        return o * jnp.tanh(cc), cc

    h1 = c1 = h2 = c2 = jnp.zeros((B, H), jnp.float32)
    for t in range(T):
        h1, c1 = cell(feats[:, t], h1, c1, p["wih1"], p["whh1"], p["lb1"])
        h2, c2 = cell(h1, h2, c2, p["wih2"], p["whh2"], p["lb2"])
    y1 = jnp.maximum(h2 @ p["fw1"] + p["fb1"], 0.0)
    y2 = jnp.maximum(y1 @ p["fw2"] + p["fb2"], 0.0)
    return y2 @ p["fw3"] + p["fb3"]


if __name__ == "__main__":
    B, T = 2, 8
    key = jax.random.PRNGKey(0)
    k_x, k_p = jax.random.split(key)
    x = jax.random.normal(k_x, (B, T, IN_DIM), jnp.float32)
    params = init_params(k_p)
    folded = fold_params(params)

    out = improved_seq_gnn(x, folded)
    out = jax.block_until_ready(out)
    assert out.shape == (B, OUT_DIM) and out.dtype == jnp.float32

    ref = reference_forward(x, params)
    # 2e-2 tolerance covers the bf16 MXU-operand rounding (state/gate math is f32).
    assert jnp.allclose(out, ref, rtol=2e-2, atol=2e-2), \
        "fused kernel deviates from pure-JAX reference"

    print("KERNEL_OK")
</pallas_src>

<mosaic_0001>
module attributes {stable_mosaic.version = 11 : i64} {
  func.func @fused_kernel(%arg0: i32, %arg1: memref<16x32xf32, #tpu.memory_space<vmem>>, %arg2: memref<32x512xbf16, #tpu.memory_space<vmem>>, %arg3: memref<1x512xf32, #tpu.memory_space<vmem>>, %arg4: memref<128x512xbf16, #tpu.memory_space<vmem>>, %arg5: memref<128x512xbf16, #tpu.memory_space<vmem>>, %arg6: memref<128x512xbf16, #tpu.memory_space<vmem>>, %arg7: memref<1x512xf32, #tpu.memory_space<vmem>>, %arg8: memref<128x128xbf16, #tpu.memory_space<vmem>>, %arg9: memref<1x128xf32, #tpu.memory_space<vmem>>, %arg10: memref<128x64xbf16, #tpu.memory_space<vmem>>, %arg11: memref<1x64xf32, #tpu.memory_space<vmem>>, %arg12: memref<64x128xbf16, #tpu.memory_space<vmem>>, %arg13: memref<1x128xf32, #tpu.memory_space<vmem>>, %arg14: memref<2x128xf32, #tpu.memory_space<vmem>>) attributes {dimension_semantics = [#tpu.dimension_semantics<arbitrary>], iteration_bounds = array<i64: 1>, scalar_prefetch = 0 : i64, scratch_operands = 0 : i64, tpu.core_type = #tpu.core_type<tc>, window_params = [{pipeline_mode = #tpu.pipeline_mode<synchronous>, transform_indices = @transform_0, window_bounds = array<i64: 16, 32>}, {pipeline_mode = #tpu.pipeline_mode<synchronous>, transform_indices = @transform_1, window_bounds = array<i64: 32, 512>}, {pipeline_mode = #tpu.pipeline_mode<synchronous>, transform_indices = @transform_2, window_bounds = array<i64: 1, 512>}, {pipeline_mode = #tpu.pipeline_mode<synchronous>, transform_indices = @transform_3, window_bounds = array<i64: 128, 512>}, {pipeline_mode = #tpu.pipeline_mode<synchronous>, transform_indices = @transform_4, window_bounds = array<i64: 128, 512>}, {pipeline_mode = #tpu.pipeline_mode<synchronous>, transform_indices = @transform_5, window_bounds = array<i64: 128, 512>}, {pipeline_mode = #tpu.pipeline_mode<synchronous>, transform_indices = @transform_6, window_bounds = array<i64: 1, 512>}, {pipeline_mode = #tpu.pipeline_mode<synchronous>, transform_indices = @transform_7, window_bounds = array<i64: 128, 128>}, {pipeline_mode = #tpu.pipeline_mode<synchronous>, transform_indices = @transform_8, window_bounds = array<i64: 1, 128>}, {pipeline_mode = #tpu.pipeline_mode<synchronous>, transform_indices = @transform_9, window_bounds = array<i64: 128, 64>}, {pipeline_mode = #tpu.pipeline_mode<synchronous>, transform_indices = @transform_10, window_bounds = array<i64: 1, 64>}, {pipeline_mode = #tpu.pipeline_mode<synchronous>, transform_indices = @transform_11, window_bounds = array<i64: 64, 128>}, {pipeline_mode = #tpu.pipeline_mode<synchronous>, transform_indices = @transform_12, window_bounds = array<i64: 1, 128>}, {pipeline_mode = #tpu.pipeline_mode<synchronous>, transform_indices = @transform_13, window_bounds = array<i64: 2, 128>}]} {
    %c0 = arith.constant 0 : index
    %c0_0 = arith.constant 0 : index
    %0 = vector.load %arg1[%c0, %c0_0] : memref<16x32xf32, #tpu.memory_space<vmem>>, vector<16x32xf32>
    %1 = arith.truncf %0 : vector<16x32xf32> to vector<16x32xbf16>
    %c0_1 = arith.constant 0 : index
    %c0_2 = arith.constant 0 : index
    %2 = vector.load %arg2[%c0_1, %c0_2] : memref<32x512xbf16, #tpu.memory_space<vmem>>, vector<32x512xbf16>
    %cst = arith.constant dense<0.000000e+00> : vector<16x512xf32>
    %3 = tpu.matmul %1, %2, %cst {dimension_numbers = #tpu.dot_dimension_numbers<[1], [0], [0], [1], [0, 0, 1, 1], [], []>} : vector<16x32xbf16>, vector<32x512xbf16>, vector<16x512xf32> -> vector<16x512xf32>
    %c0_3 = arith.constant 0 : index
    %c0_4 = arith.constant 0 : index
    %4 = vector.load %arg3[%c0_3, %c0_4] : memref<1x512xf32, #tpu.memory_space<vmem>>, vector<1x512xf32>
    %5 = vector.broadcast %4 : vector<1x512xf32> to vector<16x512xf32>
    %6 = arith.addf %3, %5 : vector<16x512xf32>
    %c0_5 = arith.constant 0 : index
    %c0_6 = arith.constant 0 : index
    %7 = vector.load %arg4[%c0_5, %c0_6] : memref<128x512xbf16, #tpu.memory_space<vmem>>, vector<128x512xbf16>
    %c0_7 = arith.constant 0 : index
    %c0_8 = arith.constant 0 : index
    %8 = vector.load %arg5[%c0_7, %c0_8] : memref<128x512xbf16, #tpu.memory_space<vmem>>, vector<128x512xbf16>
    %c0_9 = arith.constant 0 : index
    %c0_10 = arith.constant 0 : index
    %9 = vector.load %arg6[%c0_9, %c0_10] : memref<128x512xbf16, #tpu.memory_space<vmem>>, vector<128x512xbf16>
    %c0_11 = arith.constant 0 : index
    %c0_12 = arith.constant 0 : index
    %10 = vector.load %arg7[%c0_11, %c0_12] : memref<1x512xf32, #tpu.memory_space<vmem>>, vector<1x512xf32>
    %11 = vector.shape_cast %10 : vector<1x512xf32> to vector<1x512xf32>
    %12 = vector.broadcast %11 : vector<1x512xf32> to vector<2x512xf32>
    %cst_13 = arith.constant 0.000000e+00 : f32
    %13 = vector.broadcast %cst_13 : f32 to vector<2x128xf32>
    %14 = vector.extract_strided_slice %6 {offsets = [0, 0], sizes = [2, 512], strides = [1, 1]} : vector<16x512xf32> to vector<2x512xf32>
    %15 = arith.truncf %13 : vector<2x128xf32> to vector<2x128xbf16>
    %cst_14 = arith.constant dense<0.000000e+00> : vector<2x512xf32>
    %16 = tpu.matmul %15, %7, %cst_14 {dimension_numbers = #tpu.dot_dimension_numbers<[1], [0], [0], [1], [0, 0, 1, 1], [], []>} : vector<2x128xbf16>, vector<128x512xbf16>, vector<2x512xf32> -> vector<2x512xf32>
    %17 = arith.addf %14, %16 : vector<2x512xf32>
    %18 = vector.extract_strided_slice %17 {offsets = [0, 0], sizes = [2, 128], strides = [1, 1]} : vector<2x512xf32> to vector<2x128xf32>
    %cst_15 = arith.constant 5.000000e-01 : f32
    %19 = vector.broadcast %cst_15 : f32 to vector<2x128xf32>
    %20 = arith.mulf %19, %18 : vector<2x128xf32>
    %21 = math.tanh %20 : vector<2x128xf32>
    %cst_16 = arith.constant 5.000000e-01 : f32
    %22 = vector.broadcast %cst_16 : f32 to vector<2x128xf32>
    %23 = arith.mulf %22, %21 : vector<2x128xf32>
    %cst_17 = arith.constant 5.000000e-01 : f32
    %24 = vector.broadcast %cst_17 : f32 to vector<2x128xf32>
    %25 = arith.addf %23, %24 : vector<2x128xf32>
    %26 = vector.extract_strided_slice %17 {offsets = [0, 128], sizes = [2, 128], strides = [1, 1]} : vector<2x512xf32> to vector<2x128xf32>
    %cst_18 = arith.constant 5.000000e-01 : f32
    %27 = vector.broadcast %cst_18 : f32 to vector<2x128xf32>
    %28 = arith.mulf %27, %26 : vector<2x128xf32>
    %29 = math.tanh %28 : vector<2x128xf32>
    %cst_19 = arith.constant 5.000000e-01 : f32
    %30 = vector.broadcast %cst_19 : f32 to vector<2x128xf32>
    %31 = arith.mulf %30, %29 : vector<2x128xf32>
    %cst_20 = arith.constant 5.000000e-01 : f32
    %32 = vector.broadcast %cst_20 : f32 to vector<2x128xf32>
    %33 = arith.addf %31, %32 : vector<2x128xf32>
    %34 = vector.extract_strided_slice %17 {offsets = [0, 256], sizes = [2, 128], strides = [1, 1]} : vector<2x512xf32> to vector<2x128xf32>
    %35 = math.tanh %34 : vector<2x128xf32>
    %36 = vector.extract_strided_slice %17 {offsets = [0, 384], sizes = [2, 128], strides = [1, 1]} : vector<2x512xf32> to vector<2x128xf32>
    %cst_21 = arith.constant 5.000000e-01 : f32
    %37 = vector.broadcast %cst_21 : f32 to vector<2x128xf32>
    %38 = arith.mulf %37, %36 : vector<2x128xf32>
    %39 = math.tanh %38 : vector<2x128xf32>
    %cst_22 = arith.constant 5.000000e-01 : f32
    %40 = vector.broadcast %cst_22 : f32 to vector<2x128xf32>
    %41 = arith.mulf %40, %39 : vector<2x128xf32>
    %cst_23 = arith.constant 5.000000e-01 : f32
    %42 = vector.broadcast %cst_23 : f32 to vector<2x128xf32>
    %43 = arith.addf %41, %42 : vector<2x128xf32>
    %44 = arith.mulf %33, %13 : vector<2x128xf32>
    %45 = arith.mulf %25, %35 : vector<2x128xf32>
    %46 = arith.addf %44, %45 : vector<2x128xf32>
    %47 = math.tanh %46 : vector<2x128xf32>
    %48 = arith.mulf %43, %47 : vector<2x128xf32>
    %49 = arith.truncf %48 : vector<2x128xf32> to vector<2x128xbf16>
    %cst_24 = arith.constant dense<0.000000e+00> : vector<2x512xf32>
    %50 = tpu.matmul %49, %8, %cst_24 {dimension_numbers = #tpu.dot_dimension_numbers<[1], [0], [0], [1], [0, 0, 1, 1], [], []>} : vector<2x128xbf16>, vector<128x512xbf16>, vector<2x512xf32> -> vector<2x512xf32>
    %51 = arith.truncf %13 : vector<2x128xf32> to vector<2x128xbf16>
    %cst_25 = arith.constant dense<0.000000e+00> : vector<2x512xf32>
    %52 = tpu.matmul %51, %9, %cst_25 {dimension_numbers = #tpu.dot_dimension_numbers<[1], [0], [0], [1], [0, 0, 1, 1], [], []>} : vector<2x128xbf16>, vector<128x512xbf16>, vector<2x512xf32> -> vector<2x512xf32>
    %53 = arith.addf %50, %52 : vector<2x512xf32>
    %54 = arith.addf %53, %12 : vector<2x512xf32>
    %55 = vector.extract_strided_slice %54 {offsets = [0, 0], sizes = [2, 128], strides = [1, 1]} : vector<2x512xf32> to vector<2x128xf32>
    %cst_26 = arith.constant 5.000000e-01 : f32
    %56 = vector.broadcast %cst_26 : f32 to vector<2x128xf32>
    %57 = arith.mulf %56, %55 : vector<2x128xf32>
    %58 = math.tanh %57 : vector<2x128xf32>
    %cst_27 = arith.constant 5.000000e-01 : f32
    %59 = vector.broadcast %cst_27 : f32 to vector<2x128xf32>
    %60 = arith.mulf %59, %58 : vector<2x128xf32>
    %cst_28 = arith.constant 5.000000e-01 : f32
    %61 = vector.broadcast %cst_28 : f32 to vector<2x128xf32>
    %62 = arith.addf %60, %61 : vector<2x128xf32>
    %63 = vector.extract_strided_slice %54 {offsets = [0, 128], sizes = [2, 128], strides = [1, 1]} : vector<2x512xf32> to vector<2x128xf32>
    %cst_29 = arith.constant 5.000000e-01 : f32
    %64 = vector.broadcast %cst_29 : f32 to vector<2x128xf32>
    %65 = arith.mulf %64, %63 : vector<2x128xf32>
    %66 = math.tanh %65 : vector<2x128xf32>
    %cst_30 = arith.constant 5.000000e-01 : f32
    %67 = vector.broadcast %cst_30 : f32 to vector<2x128xf32>
    %68 = arith.mulf %67, %66 : vector<2x128xf32>
    %cst_31 = arith.constant 5.000000e-01 : f32
    %69 = vector.broadcast %cst_31 : f32 to vector<2x128xf32>
    %70 = arith.addf %68, %69 : vector<2x128xf32>
    %71 = vector.extract_strided_slice %54 {offsets = [0, 256], sizes = [2, 128], strides = [1, 1]} : vector<2x512xf32> to vector<2x128xf32>
    %72 = math.tanh %71 : vector<2x128xf32>
    %73 = vector.extract_strided_slice %54 {offsets = [0, 384], sizes = [2, 128], strides = [1, 1]} : vector<2x512xf32> to vector<2x128xf32>
    %cst_32 = arith.constant 5.000000e-01 : f32
    %74 = vector.broadcast %cst_32 : f32 to vector<2x128xf32>
    %75 = arith.mulf %74, %73 : vector<2x128xf32>
    %76 = math.tanh %75 : vector<2x128xf32>
    %cst_33 = arith.constant 5.000000e-01 : f32
    %77 = vector.broadcast %cst_33 : f32 to vector<2x128xf32>
    %78 = arith.mulf %77, %76 : vector<2x128xf32>
    %cst_34 = arith.constant 5.000000e-01 : f32
    %79 = vector.broadcast %cst_34 : f32 to vector<2x128xf32>
    %80 = arith.addf %78, %79 : vector<2x128xf32>
    %81 = arith.mulf %70, %13 : vector<2x128xf32>
    %82 = arith.mulf %62, %72 : vector<2x128xf32>
    %83 = arith.addf %81, %82 : vector<2x128xf32>
    %84 = math.tanh %83 : vector<2x128xf32>
    %85 = arith.mulf %80, %84 : vector<2x128xf32>
    %86 = vector.extract_strided_slice %6 {offsets = [2, 0], sizes = [2, 512], strides = [1, 1]} : vector<16x512xf32> to vector<2x512xf32>
    %87 = arith.truncf %48 : vector<2x128xf32> to vector<2x128xbf16>
    %cst_35 = arith.constant dense<0.000000e+00> : vector<2x512xf32>
    %88 = tpu.matmul %87, %7, %cst_35 {dimension_numbers = #tpu.dot_dimension_numbers<[1], [0], [0], [1], [0, 0, 1, 1], [], []>} : vector<2x128xbf16>, vector<128x512xbf16>, vector<2x512xf32> -> vector<2x512xf32>
    %89 = arith.addf %86, %88 : vector<2x512xf32>
    %90 = vector.extract_strided_slice %89 {offsets = [0, 0], sizes = [2, 128], strides = [1, 1]} : vector<2x512xf32> to vector<2x128xf32>
    %cst_36 = arith.constant 5.000000e-01 : f32
    %91 = vector.broadcast %cst_36 : f32 to vector<2x128xf32>
    %92 = arith.mulf %91, %90 : vector<2x128xf32>
    %93 = math.tanh %92 : vector<2x128xf32>
    %cst_37 = arith.constant 5.000000e-01 : f32
    %94 = vector.broadcast %cst_37 : f32 to vector<2x128xf32>
    %95 = arith.mulf %94, %93 : vector<2x128xf32>
    %cst_38 = arith.constant 5.000000e-01 : f32
    %96 = vector.broadcast %cst_38 : f32 to vector<2x128xf32>
    %97 = arith.addf %95, %96 : vector<2x128xf32>
    %98 = vector.extract_strided_slice %89 {offsets = [0, 128], sizes = [2, 128], strides = [1, 1]} : vector<2x512xf32> to vector<2x128xf32>
    %cst_39 = arith.constant 5.000000e-01 : f32
    %99 = vector.broadcast %cst_39 : f32 to vector<2x128xf32>
    %100 = arith.mulf %99, %98 : vector<2x128xf32>
    %101 = math.tanh %100 : vector<2x128xf32>
    %cst_40 = arith.constant 5.000000e-01 : f32
    %102 = vector.broadcast %cst_40 : f32 to vector<2x128xf32>
    %103 = arith.mulf %102, %101 : vector<2x128xf32>
    %cst_41 = arith.constant 5.000000e-01 : f32
    %104 = vector.broadcast %cst_41 : f32 to vector<2x128xf32>
    %105 = arith.addf %103, %104 : vector<2x128xf32>
    %106 = vector.extract_strided_slice %89 {offsets = [0, 256], sizes = [2, 128], strides = [1, 1]} : vector<2x512xf32> to vector<2x128xf32>
    %107 = math.tanh %106 : vector<2x128xf32>
    %108 = vector.extract_strided_slice %89 {offsets = [0, 384], sizes = [2, 128], strides = [1, 1]} : vector<2x512xf32> to vector<2x128xf32>
    %cst_42 = arith.constant 5.000000e-01 : f32
    %109 = vector.broadcast %cst_42 : f32 to vector<2x128xf32>
    %110 = arith.mulf %109, %108 : vector<2x128xf32>
    %111 = math.tanh %110 : vector<2x128xf32>
    %cst_43 = arith.constant 5.000000e-01 : f32
    %112 = vector.broadcast %cst_43 : f32 to vector<2x128xf32>
    %113 = arith.mulf %112, %111 : vector<2x128xf32>
    %cst_44 = arith.constant 5.000000e-01 : f32
    %114 = vector.broadcast %cst_44 : f32 to vector<2x128xf32>
    %115 = arith.addf %113, %114 : vector<2x128xf32>
    %116 = arith.mulf %105, %46 : vector<2x128xf32>
    %117 = arith.mulf %97, %107 : vector<2x128xf32>
    %118 = arith.addf %116, %117 : vector<2x128xf32>
    %119 = math.tanh %118 : vector<2x128xf32>
    %120 = arith.mulf %115, %119 : vector<2x128xf32>
    %121 = arith.truncf %120 : vector<2x128xf32> to vector<2x128xbf16>
    %cst_45 = arith.constant dense<0.000000e+00> : vector<2x512xf32>
    %122 = tpu.matmul %121, %8, %cst_45 {dimension_numbers = #tpu.dot_dimension_numbers<[1], [0], [0], [1], [0, 0, 1, 1], [], []>} : vector<2x128xbf16>, vector<128x512xbf16>, vector<2x512xf32> -> vector<2x512xf32>
    %123 = arith.truncf %85 : vector<2x128xf32> to vector<2x128xbf16>
    %cst_46 = arith.constant dense<0.000000e+00> : vector<2x512xf32>
    %124 = tpu.matmul %123, %9, %cst_46 {dimension_numbers = #tpu.dot_dimension_numbers<[1], [0], [0], [1], [0, 0, 1, 1], [], []>} : vector<2x128xbf16>, vector<128x512xbf16>, vector<2x512xf32> -> vector<2x512xf32>
    %125 = arith.addf %122, %124 : vector<2x512xf32>
    %126 = arith.addf %125, %12 : vector<2x512xf32>
    %127 = vector.extract_strided_slice %126 {offsets = [0, 0], sizes = [2, 128], strides = [1, 1]} : vector<2x512xf32> to vector<2x128xf32>
    %cst_47 = arith.constant 5.000000e-01 : f32
    %128 = vector.broadcast %cst_47 : f32 to vector<2x128xf32>
    %129 = arith.mulf %128, %127 : vector<2x128xf32>
    %130 = math.tanh %129 : vector<2x128xf32>
    %cst_48 = arith.constant 5.000000e-01 : f32
    %131 = vector.broadcast %cst_48 : f32 to vector<2x128xf32>
    %132 = arith.mulf %131, %130 : vector<2x128xf32>
    %cst_49 = arith.constant 5.000000e-01 : f32
    %133 = vector.broadcast %cst_49 : f32 to vector<2x128xf32>
    %134 = arith.addf %132, %133 : vector<2x128xf32>
    %135 = vector.extract_strided_slice %126 {offsets = [0, 128], sizes = [2, 128], strides = [1, 1]} : vector<2x512xf32> to vector<2x128xf32>
    %cst_50 = arith.constant 5.000000e-01 : f32
    %136 = vector.broadcast %cst_50 : f32 to vector<2x128xf32>
    %137 = arith.mulf %136, %135 : vector<2x128xf32>
    %138 = math.tanh %137 : vector<2x128xf32>
    %cst_51 = arith.constant 5.000000e-01 : f32
    %139 = vector.broadcast %cst_51 : f32 to vector<2x128xf32>
    %140 = arith.mulf %139, %138 : vector<2x128xf32>
    %cst_52 = arith.constant 5.000000e-01 : f32
    %141 = vector.broadcast %cst_52 : f32 to vector<2x128xf32>
    %142 = arith.addf %140, %141 : vector<2x128xf32>
    %143 = vector.extract_strided_slice %126 {offsets = [0, 256], sizes = [2, 128], strides = [1, 1]} : vector<2x512xf32> to vector<2x128xf32>
    %144 = math.tanh %143 : vector<2x128xf32>
    %145 = vector.extract_strided_slice %126 {offsets = [0, 384], sizes = [2, 128], strides = [1, 1]} : vector<2x512xf32> to vector<2x128xf32>
    %cst_53 = arith.constant 5.000000e-01 : f32
    %146 = vector.broadcast %cst_53 : f32 to vector<2x128xf32>
    %147 = arith.mulf %146, %145 : vector<2x128xf32>
    %148 = math.tanh %147 : vector<2x128xf32>
    %cst_54 = arith.constant 5.000000e-01 : f32
    %149 = vector.broadcast %cst_54 : f32 to vector<2x128xf32>
    %150 = arith.mulf %149, %148 : vector<2x128xf32>
    %cst_55 = arith.constant 5.000000e-01 : f32
    %151 = vector.broadcast %cst_55 : f32 to vector<2x128xf32>
    %152 = arith.addf %150, %151 : vector<2x128xf32>
    %153 = arith.mulf %142, %83 : vector<2x128xf32>
    %154 = arith.mulf %134, %144 : vector<2x128xf32>
    %155 = arith.addf %153, %154 : vector<2x128xf32>
    %156 = math.tanh %155 : vector<2x128xf32>
    %157 = arith.mulf %152, %156 : vector<2x128xf32>
    %158 = vector.extract_strided_slice %6 {offsets = [4, 0], sizes = [2, 512], strides = [1, 1]} : vector<16x512xf32> to vector<2x512xf32>
    %159 = arith.truncf %120 : vector<2x128xf32> to vector<2x128xbf16>
    %cst_56 = arith.constant dense<0.000000e+00> : vector<2x512xf32>
    %160 = tpu.matmul %159, %7, %cst_56 {dimension_numbers = #tpu.dot_dimension_numbers<[1], [0], [0], [1], [0, 0, 1, 1], [], []>} : vector<2x128xbf16>, vector<128x512xbf16>, vector<2x512xf32> -> vector<2x512xf32>
    %161 = arith.addf %158, %160 : vector<2x512xf32>
    %162 = vector.extract_strided_slice %161 {offsets = [0, 0], sizes = [2, 128], strides = [1, 1]} : vector<2x512xf32> to vector<2x128xf32>
    %cst_57 = arith.constant 5.000000e-01 : f32
    %163 = vector.broadcast %cst_57 : f32 to vector<2x128xf32>
    %164 = arith.mulf %163, %162 : vector<2x128xf32>
    %165 = math.tanh %164 : vector<2x128xf32>
    %cst_58 = arith.constant 5.000000e-01 : f32
    %166 = vector.broadcast %cst_58 : f32 to vector<2x128xf32>
    %167 = arith.mulf %166, %165 : vector<2x128xf32>
    %cst_59 = arith.constant 5.000000e-01 : f32
    %168 = vector.broadcast %cst_59 : f32 to vector<2x128xf32>
    %169 = arith.addf %167, %168 : vector<2x128xf32>
    %170 = vector.extract_strided_slice %161 {offsets = [0, 128], sizes = [2, 128], strides = [1, 1]} : vector<2x512xf32> to vector<2x128xf32>
    %cst_60 = arith.constant 5.000000e-01 : f32
    %171 = vector.broadcast %cst_60 : f32 to vector<2x128xf32>
    %172 = arith.mulf %171, %170 : vector<2x128xf32>
    %173 = math.tanh %172 : vector<2x128xf32>
    %cst_61 = arith.constant 5.000000e-01 : f32
    %174 = vector.broadcast %cst_61 : f32 to vector<2x128xf32>
    %175 = arith.mulf %174, %173 : vector<2x128xf32>
    %cst_62 = arith.constant 5.000000e-01 : f32
    %176 = vector.broadcast %cst_62 : f32 to vector<2x128xf32>
    %177 = arith.addf %175, %176 : vector<2x128xf32>
    %178 = vector.extract_strided_slice %161 {offsets = [0, 256], sizes = [2, 128], strides = [1, 1]} : vector<2x512xf32> to vector<2x128xf32>
    %179 = math.tanh %178 : vector<2x128xf32>
    %180 = vector.extract_strided_slice %161 {offsets = [0, 384], sizes = [2, 128], strides = [1, 1]} : vector<2x512xf32> to vector<2x128xf32>
    %cst_63 = arith.constant 5.000000e-01 : f32
    %181 = vector.broadcast %cst_63 : f32 to vector<2x128xf32>
    %182 = arith.mulf %181, %180 : vector<2x128xf32>
    %183 = math.tanh %182 : vector<2x128xf32>
    %cst_64 = arith.constant 5.000000e-01 : f32
    %184 = vector.broadcast %cst_64 : f32 to vector<2x128xf32>
    %185 = arith.mulf %184, %183 : vector<2x128xf32>
    %cst_65 = arith.constant 5.000000e-01 : f32
    %186 = vector.broadcast %cst_65 : f32 to vector<2x128xf32>
    %187 = arith.addf %185, %186 : vector<2x128xf32>
    %188 = arith.mulf %177, %118 : vector<2x128xf32>
    %189 = arith.mulf %169, %179 : vector<2x128xf32>
    %190 = arith.addf %188, %189 : vector<2x128xf32>
    %191 = math.tanh %190 : vector<2x128xf32>
    %192 = arith.mulf %187, %191 : vector<2x128xf32>
    %193 = arith.truncf %192 : vector<2x128xf32> to vector<2x128xbf16>
    %cst_66 = arith.constant dense<0.000000e+00> : vector<2x512xf32>
    %194 = tpu.matmul %193, %8, %cst_66 {dimension_numbers = #tpu.dot_dimension_numbers<[1], [0], [0], [1], [0, 0, 1, 1], [], []>} : vector<2x128xbf16>, vector<128x512xbf16>, vector<2x512xf32> -> vector<2x512xf32>
    %195 = arith.truncf %157 : vector<2x128xf32> to vector<2x128xbf16>
    %cst_67 = arith.constant dense<0.000000e+00> : vector<2x512xf32>
    %196 = tpu.matmul %195, %9, %cst_67 {dimension_numbers = #tpu.dot_dimension_numbers<[1], [0], [0], [1], [0, 0, 1, 1], [], []>} : vector<2x128xbf16>, vector<128x512xbf16>, vector<2x512xf32> -> vector<2x512xf32>
    %197 = arith.addf %194, %196 : vector<2x512xf32>
    %198 = arith.addf %197, %12 : vector<2x512xf32>
    %199 = vector.extract_strided_slice %198 {offsets = [0, 0], sizes = [2, 128], strides = [1, 1]} : vector<2x512xf32> to vector<2x128xf32>
    %cst_68 = arith.constant 5.000000e-01 : f32
    %200 = vector.broadcast %cst_68 : f32 to vector<2x128xf32>
    %201 = arith.mulf %200, %199 : vector<2x128xf32>
    %202 = math.tanh %201 : vector<2x128xf32>
    %cst_69 = arith.constant 5.000000e-01 : f32
    %203 = vector.broadcast %cst_69 : f32 to vector<2x128xf32>
    %204 = arith.mulf %203, %202 : vector<2x128xf32>
    %cst_70 = arith.constant 5.000000e-01 : f32
    %205 = vector.broadcast %cst_70 : f32 to vector<2x128xf32>
    %206 = arith.addf %204, %205 : vector<2x128xf32>
    %207 = vector.extract_strided_slice %198 {offsets = [0, 128], sizes = [2, 128], strides = [1, 1]} : vector<2x512xf32> to vector<2x128xf32>
    %cst_71 = arith.constant 5.000000e-01 : f32
    %208 = vector.broadcast %cst_71 : f32 to vector<2x128xf32>
    %209 = arith.mulf %208, %207 : vector<2x128xf32>
    %210 = math.tanh %209 : vector<2x128xf32>
    %cst_72 = arith.constant 5.000000e-01 : f32
    %211 = vector.broadcast %cst_72 : f32 to vector<2x128xf32>
    %212 = arith.mulf %211, %210 : vector<2x128xf32>
    %cst_73 = arith.constant 5.000000e-01 : f32
    %213 = vector.broadcast %cst_73 : f32 to vector<2x128xf32>
    %214 = arith.addf %212, %213 : vector<2x128xf32>
    %215 = vector.extract_strided_slice %198 {offsets = [0, 256], sizes = [2, 128], strides = [1, 1]} : vector<2x512xf32> to vector<2x128xf32>
    %216 = math.tanh %215 : vector<2x128xf32>
    %217 = vector.extract_strided_slice %198 {offsets = [0, 384], sizes = [2, 128], strides = [1, 1]} : vector<2x512xf32> to vector<2x128xf32>
    %cst_74 = arith.constant 5.000000e-01 : f32
    %218 = vector.broadcast %cst_74 : f32 to vector<2x128xf32>
    %219 = arith.mulf %218, %217 : vector<2x128xf32>
    %220 = math.tanh %219 : vector<2x128xf32>
    %cst_75 = arith.constant 5.000000e-01 : f32
    %221 = vector.broadcast %cst_75 : f32 to vector<2x128xf32>
    %222 = arith.mulf %221, %220 : vector<2x128xf32>
    %cst_76 = arith.constant 5.000000e-01 : f32
    %223 = vector.broadcast %cst_76 : f32 to vector<2x128xf32>
    %224 = arith.addf %222, %223 : vector<2x128xf32>
    %225 = arith.mulf %214, %155 : vector<2x128xf32>
    %226 = arith.mulf %206, %216 : vector<2x128xf32>
    %227 = arith.addf %225, %226 : vector<2x128xf32>
    %228 = math.tanh %227 : vector<2x128xf32>
    %229 = arith.mulf %224, %228 : vector<2x128xf32>
    %230 = vector.extract_strided_slice %6 {offsets = [6, 0], sizes = [2, 512], strides = [1, 1]} : vector<16x512xf32> to vector<2x512xf32>
    %231 = arith.truncf %192 : vector<2x128xf32> to vector<2x128xbf16>
    %cst_77 = arith.constant dense<0.000000e+00> : vector<2x512xf32>
    %232 = tpu.matmul %231, %7, %cst_77 {dimension_numbers = #tpu.dot_dimension_numbers<[1], [0], [0], [1], [0, 0, 1, 1], [], []>} : vector<2x128xbf16>, vector<128x512xbf16>, vector<2x512xf32> -> vector<2x512xf32>
    %233 = arith.addf %230, %232 : vector<2x512xf32>
    %234 = vector.extract_strided_slice %233 {offsets = [0, 0], sizes = [2, 128], strides = [1, 1]} : vector<2x512xf32> to vector<2x128xf32>
    %cst_78 = arith.constant 5.000000e-01 : f32
    %235 = vector.broadcast %cst_78 : f32 to vector<2x128xf32>
    %236 = arith.mulf %235, %234 : vector<2x128xf32>
    %237 = math.tanh %236 : vector<2x128xf32>
    %cst_79 = arith.constant 5.000000e-01 : f32
    %238 = vector.broadcast %cst_79 : f32 to vector<2x128xf32>
    %239 = arith.mulf %238, %237 : vector<2x128xf32>
    %cst_80 = arith.constant 5.000000e-01 : f32
    %240 = vector.broadcast %cst_80 : f32 to vector<2x128xf32>
    %241 = arith.addf %239, %240 : vector<2x128xf32>
    %242 = vector.extract_strided_slice %233 {offsets = [0, 128], sizes = [2, 128], strides = [1, 1]} : vector<2x512xf32> to vector<2x128xf32>
    %cst_81 = arith.constant 5.000000e-01 : f32
    %243 = vector.broadcast %cst_81 : f32 to vector<2x128xf32>
    %244 = arith.mulf %243, %242 : vector<2x128xf32>
    %245 = math.tanh %244 : vector<2x128xf32>
    %cst_82 = arith.constant 5.000000e-01 : f32
    %246 = vector.broadcast %cst_82 : f32 to vector<2x128xf32>
    %247 = arith.mulf %246, %245 : vector<2x128xf32>
    %cst_83 = arith.constant 5.000000e-01 : f32
    %248 = vector.broadcast %cst_83 : f32 to vector<2x128xf32>
    %249 = arith.addf %247, %248 : vector<2x128xf32>
    %250 = vector.extract_strided_slice %233 {offsets = [0, 256], sizes = [2, 128], strides = [1, 1]} : vector<2x512xf32> to vector<2x128xf32>
    %251 = math.tanh %250 : vector<2x128xf32>
    %252 = vector.extract_strided_slice %233 {offsets = [0, 384], sizes = [2, 128], strides = [1, 1]} : vector<2x512xf32> to vector<2x128xf32>
    %cst_84 = arith.constant 5.000000e-01 : f32
    %253 = vector.broadcast %cst_84 : f32 to vector<2x128xf32>
    %254 = arith.mulf %253, %252 : vector<2x128xf32>
    %255 = math.tanh %254 : vector<2x128xf32>
    %cst_85 = arith.constant 5.000000e-01 : f32
    %256 = vector.broadcast %cst_85 : f32 to vector<2x128xf32>
    %257 = arith.mulf %256, %255 : vector<2x128xf32>
    %cst_86 = arith.constant 5.000000e-01 : f32
    %258 = vector.broadcast %cst_86 : f32 to vector<2x128xf32>
    %259 = arith.addf %257, %258 : vector<2x128xf32>
    %260 = arith.mulf %249, %190 : vector<2x128xf32>
    %261 = arith.mulf %241, %251 : vector<2x128xf32>
    %262 = arith.addf %260, %261 : vector<2x128xf32>
    %263 = math.tanh %262 : vector<2x128xf32>
    %264 = arith.mulf %259, %263 : vector<2x128xf32>
    %265 = arith.truncf %264 : vector<2x128xf32> to vector<2x128xbf16>
    %cst_87 = arith.constant dense<0.000000e+00> : vector<2x512xf32>
    %266 = tpu.matmul %265, %8, %cst_87 {dimension_numbers = #tpu.dot_dimension_numbers<[1], [0], [0], [1], [0, 0, 1, 1], [], []>} : vector<2x128xbf16>, vector<128x512xbf16>, vector<2x512xf32> -> vector<2x512xf32>
    %267 = arith.truncf %229 : vector<2x128xf32> to vector<2x128xbf16>
    %cst_88 = arith.constant dense<0.000000e+00> : vector<2x512xf32>
    %268 = tpu.matmul %267, %9, %cst_88 {dimension_numbers = #tpu.dot_dimension_numbers<[1], [0], [0], [1], [0, 0, 1, 1], [], []>} : vector<2x128xbf16>, vector<128x512xbf16>, vector<2x512xf32> -> vector<2x512xf32>
    %269 = arith.addf %266, %268 : vector<2x512xf32>
    %270 = arith.addf %269, %12 : vector<2x512xf32>
    %271 = vector.extract_strided_slice %270 {offsets = [0, 0], sizes = [2, 128], strides = [1, 1]} : vector<2x512xf32> to vector<2x128xf32>
    %cst_89 = arith.constant 5.000000e-01 : f32
    %272 = vector.broadcast %cst_89 : f32 to vector<2x128xf32>
    %273 = arith.mulf %272, %271 : vector<2x128xf32>
    %274 = math.tanh %273 : vector<2x128xf32>
    %cst_90 = arith.constant 5.000000e-01 : f32
    %275 = vector.broadcast %cst_90 : f32 to vector<2x128xf32>
    %276 = arith.mulf %275, %274 : vector<2x128xf32>
    %cst_91 = arith.constant 5.000000e-01 : f32
    %277 = vector.broadcast %cst_91 : f32 to vector<2x128xf32>
    %278 = arith.addf %276, %277 : vector<2x128xf32>
    %279 = vector.extract_strided_slice %270 {offsets = [0, 128], sizes = [2, 128], strides = [1, 1]} : vector<2x512xf32> to vector<2x128xf32>
    %cst_92 = arith.constant 5.000000e-01 : f32
    %280 = vector.broadcast %cst_92 : f32 to vector<2x128xf32>
    %281 = arith.mulf %280, %279 : vector<2x128xf32>
    %282 = math.tanh %281 : vector<2x128xf32>
    %cst_93 = arith.constant 5.000000e-01 : f32
    %283 = vector.broadcast %cst_93 : f32 to vector<2x128xf32>
    %284 = arith.mulf %283, %282 : vector<2x128xf32>
    %cst_94 = arith.constant 5.000000e-01 : f32
    %285 = vector.broadcast %cst_94 : f32 to vector<2x128xf32>
    %286 = arith.addf %284, %285 : vector<2x128xf32>
    %287 = vector.extract_strided_slice %270 {offsets = [0, 256], sizes = [2, 128], strides = [1, 1]} : vector<2x512xf32> to vector<2x128xf32>
    %288 = math.tanh %287 : vector<2x128xf32>
    %289 = vector.extract_strided_slice %270 {offsets = [0, 384], sizes = [2, 128], strides = [1, 1]} : vector<2x512xf32> to vector<2x128xf32>
    %cst_95 = arith.constant 5.000000e-01 : f32
    %290 = vector.broadcast %cst_95 : f32 to vector<2x128xf32>
    %291 = arith.mulf %290, %289 : vector<2x128xf32>
    %292 = math.tanh %291 : vector<2x128xf32>
    %cst_96 = arith.constant 5.000000e-01 : f32
    %293 = vector.broadcast %cst_96 : f32 to vector<2x128xf32>
    %294 = arith.mulf %293, %292 : vector<2x128xf32>
    %cst_97 = arith.constant 5.000000e-01 : f32
    %295 = vector.broadcast %cst_97 : f32 to vector<2x128xf32>
    %296 = arith.addf %294, %295 : vector<2x128xf32>
    %297 = arith.mulf %286, %227 : vector<2x128xf32>
    %298 = arith.mulf %278, %288 : vector<2x128xf32>
    %299 = arith.addf %297, %298 : vector<2x128xf32>
    %300 = math.tanh %299 : vector<2x128xf32>
    %301 = arith.mulf %296, %300 : vector<2x128xf32>
    %302 = vector.extract_strided_slice %6 {offsets = [8, 0], sizes = [2, 512], strides = [1, 1]} : vector<16x512xf32> to vector<2x512xf32>
    %303 = arith.truncf %264 : vector<2x128xf32> to vector<2x128xbf16>
    %cst_98 = arith.constant dense<0.000000e+00> : vector<2x512xf32>
    %304 = tpu.matmul %303, %7, %cst_98 {dimension_numbers = #tpu.dot_dimension_numbers<[1], [0], [0], [1], [0, 0, 1, 1], [], []>} : vector<2x128xbf16>, vector<128x512xbf16>, vector<2x512xf32> -> vector<2x512xf32>
    %305 = arith.addf %302, %304 : vector<2x512xf32>
    %306 = vector.extract_strided_slice %305 {offsets = [0, 0], sizes = [2, 128], strides = [1, 1]} : vector<2x512xf32> to vector<2x128xf32>
    %cst_99 = arith.constant 5.000000e-01 : f32
    %307 = vector.broadcast %cst_99 : f32 to vector<2x128xf32>
    %308 = arith.mulf %307, %306 : vector<2x128xf32>
    %309 = math.tanh %308 : vector<2x128xf32>
    %cst_100 = arith.constant 5.000000e-01 : f32
    %310 = vector.broadcast %cst_100 : f32 to vector<2x128xf32>
    %311 = arith.mulf %310, %309 : vector<2x128xf32>
    %cst_101 = arith.constant 5.000000e-01 : f32
    %312 = vector.broadcast %cst_101 : f32 to vector<2x128xf32>
    %313 = arith.addf %311, %312 : vector<2x128xf32>
    %314 = vector.extract_strided_slice %305 {offsets = [0, 128], sizes = [2, 128], strides = [1, 1]} : vector<2x512xf32> to vector<2x128xf32>
    %cst_102 = arith.constant 5.000000e-01 : f32
    %315 = vector.broadcast %cst_102 : f32 to vector<2x128xf32>
    %316 = arith.mulf %315, %314 : vector<2x128xf32>
    %317 = math.tanh %316 : vector<2x128xf32>
    %cst_103 = arith.constant 5.000000e-01 : f32
    %318 = vector.broadcast %cst_103 : f32 to vector<2x128xf32>
    %319 = arith.mulf %318, %317 : vector<2x128xf32>
    %cst_104 = arith.constant 5.000000e-01 : f32
    %320 = vector.broadcast %cst_104 : f32 to vector<2x128xf32>
    %321 = arith.addf %319, %320 : vector<2x128xf32>
    %322 = vector.extract_strided_slice %305 {offsets = [0, 256], sizes = [2, 128], strides = [1, 1]} : vector<2x512xf32> to vector<2x128xf32>
    %323 = math.tanh %322 : vector<2x128xf32>
    %324 = vector.extract_strided_slice %305 {offsets = [0, 384], sizes = [2, 128], strides = [1, 1]} : vector<2x512xf32> to vector<2x128xf32>
    %cst_105 = arith.constant 5.000000e-01 : f32
    %325 = vector.broadcast %cst_105 : f32 to vector<2x128xf32>
    %326 = arith.mulf %325, %324 : vector<2x128xf32>
    %327 = math.tanh %326 : vector<2x128xf32>
    %cst_106 = arith.constant 5.000000e-01 : f32
    %328 = vector.broadcast %cst_106 : f32 to vector<2x128xf32>
    %329 = arith.mulf %328, %327 : vector<2x128xf32>
    %cst_107 = arith.constant 5.000000e-01 : f32
    %330 = vector.broadcast %cst_107 : f32 to vector<2x128xf32>
    %331 = arith.addf %329, %330 : vector<2x128xf32>
    %332 = arith.mulf %321, %262 : vector<2x128xf32>
    %333 = arith.mulf %313, %323 : vector<2x128xf32>
    %334 = arith.addf %332, %333 : vector<2x128xf32>
    %335 = math.tanh %334 : vector<2x128xf32>
    %336 = arith.mulf %331, %335 : vector<2x128xf32>
    %337 = arith.truncf %336 : vector<2x128xf32> to vector<2x128xbf16>
    %cst_108 = arith.constant dense<0.000000e+00> : vector<2x512xf32>
    %338 = tpu.matmul %337, %8, %cst_108 {dimension_numbers = #tpu.dot_dimension_numbers<[1], [0], [0], [1], [0, 0, 1, 1], [], []>} : vector<2x128xbf16>, vector<128x512xbf16>, vector<2x512xf32> -> vector<2x512xf32>
    %339 = arith.truncf %301 : vector<2x128xf32> to vector<2x128xbf16>
    %cst_109 = arith.constant dense<0.000000e+00> : vector<2x512xf32>
    %340 = tpu.matmul %339, %9, %cst_109 {dimension_numbers = #tpu.dot_dimension_numbers<[1], [0], [0], [1], [0, 0, 1, 1], [], []>} : vector<2x128xbf16>, vector<128x512xbf16>, vector<2x512xf32> -> vector<2x512xf32>
    %341 = arith.addf %338, %340 : vector<2x512xf32>
    %342 = arith.addf %341, %12 : vector<2x512xf32>
    %343 = vector.extract_strided_slice %342 {offsets = [0, 0], sizes = [2, 128], strides = [1, 1]} : vector<2x512xf32> to vector<2x128xf32>
    %cst_110 = arith.constant 5.000000e-01 : f32
    %344 = vector.broadcast %cst_110 : f32 to vector<2x128xf32>
    %345 = arith.mulf %344, %343 : vector<2x128xf32>
    %346 = math.tanh %345 : vector<2x128xf32>
    %cst_111 = arith.constant 5.000000e-01 : f32
    %347 = vector.broadcast %cst_111 : f32 to vector<2x128xf32>
    %348 = arith.mulf %347, %346 : vector<2x128xf32>
    %cst_112 = arith.constant 5.000000e-01 : f32
    %349 = vector.broadcast %cst_112 : f32 to vector<2x128xf32>
    %350 = arith.addf %348, %349 : vector<2x128xf32>
    %351 = vector.extract_strided_slice %342 {offsets = [0, 128], sizes = [2, 128], strides = [1, 1]} : vector<2x512xf32> to vector<2x128xf32>
    %cst_113 = arith.constant 5.000000e-01 : f32
    %352 = vector.broadcast %cst_113 : f32 to vector<2x128xf32>
    %353 = arith.mulf %352, %351 : vector<2x128xf32>
    %354 = math.tanh %353 : vector<2x128xf32>
    %cst_114 = arith.constant 5.000000e-01 : f32
    %355 = vector.broadcast %cst_114 : f32 to vector<2x128xf32>
    %356 = arith.mulf %355, %354 : vector<2x128xf32>
    %cst_115 = arith.constant 5.000000e-01 : f32
    %357 = vector.broadcast %cst_115 : f32 to vector<2x128xf32>
    %358 = arith.addf %356, %357 : vector<2x128xf32>
    %359 = vector.extract_strided_slice %342 {offsets = [0, 256], sizes = [2, 128], strides = [1, 1]} : vector<2x512xf32> to vector<2x128xf32>
    %360 = math.tanh %359 : vector<2x128xf32>
    %361 = vector.extract_strided_slice %342 {offsets = [0, 384], sizes = [2, 128], strides = [1, 1]} : vector<2x512xf32> to vector<2x128xf32>
    %cst_116 = arith.constant 5.000000e-01 : f32
    %362 = vector.broadcast %cst_116 : f32 to vector<2x128xf32>
    %363 = arith.mulf %362, %361 : vector<2x128xf32>
    %364 = math.tanh %363 : vector<2x128xf32>
    %cst_117 = arith.constant 5.000000e-01 : f32
    %365 = vector.broadcast %cst_117 : f32 to vector<2x128xf32>
    %366 = arith.mulf %365, %364 : vector<2x128xf32>
    %cst_118 = arith.constant 5.000000e-01 : f32
    %367 = vector.broadcast %cst_118 : f32 to vector<2x128xf32>
    %368 = arith.addf %366, %367 : vector<2x128xf32>
    %369 = arith.mulf %358, %299 : vector<2x128xf32>
    %370 = arith.mulf %350, %360 : vector<2x128xf32>
    %371 = arith.addf %369, %370 : vector<2x128xf32>
    %372 = math.tanh %371 : vector<2x128xf32>
    %373 = arith.mulf %368, %372 : vector<2x128xf32>
    %374 = vector.extract_strided_slice %6 {offsets = [10, 0], sizes = [2, 512], strides = [1, 1]} : vector<16x512xf32> to vector<2x512xf32>
    %375 = arith.truncf %336 : vector<2x128xf32> to vector<2x128xbf16>
    %cst_119 = arith.constant dense<0.000000e+00> : vector<2x512xf32>
    %376 = tpu.matmul %375, %7, %cst_119 {dimension_numbers = #tpu.dot_dimension_numbers<[1], [0], [0], [1], [0, 0, 1, 1], [], []>} : vector<2x128xbf16>, vector<128x512xbf16>, vector<2x512xf32> -> vector<2x512xf32>
    %377 = arith.addf %374, %376 : vector<2x512xf32>
    %378 = vector.extract_strided_slice %377 {offsets = [0, 0], sizes = [2, 128], strides = [1, 1]} : vector<2x512xf32> to vector<2x128xf32>
    %cst_120 = arith.constant 5.000000e-01 : f32
    %379 = vector.broadcast %cst_120 : f32 to vector<2x128xf32>
    %380 = arith.mulf %379, %378 : vector<2x128xf32>
    %381 = math.tanh %380 : vector<2x128xf32>
    %cst_121 = arith.constant 5.000000e-01 : f32
    %382 = vector.broadcast %cst_121 : f32 to vector<2x128xf32>
    %383 = arith.mulf %382, %381 : vector<2x128xf32>
    %cst_122 = arith.constant 5.000000e-01 : f32
    %384 = vector.broadcast %cst_122 : f32 to vector<2x128xf32>
    %385 = arith.addf %383, %384 : vector<2x128xf32>
    %386 = vector.extract_strided_slice %377 {offsets = [0, 128], sizes = [2, 128], strides = [1, 1]} : vector<2x512xf32> to vector<2x128xf32>
    %cst_123 = arith.constant 5.000000e-01 : f32
    %387 = vector.broadcast %cst_123 : f32 to vector<2x128xf32>
    %388 = arith.mulf %387, %386 : vector<2x128xf32>
    %389 = math.tanh %388 : vector<2x128xf32>
    %cst_124 = arith.constant 5.000000e-01 : f32
    %390 = vector.broadcast %cst_124 : f32 to vector<2x128xf32>
    %391 = arith.mulf %390, %389 : vector<2x128xf32>
    %cst_125 = arith.constant 5.000000e-01 : f32
    %392 = vector.broadcast %cst_125 : f32 to vector<2x128xf32>
    %393 = arith.addf %391, %392 : vector<2x128xf32>
    %394 = vector.extract_strided_slice %377 {offsets = [0, 256], sizes = [2, 128], strides = [1, 1]} : vector<2x512xf32> to vector<2x128xf32>
    %395 = math.tanh %394 : vector<2x128xf32>
    %396 = vector.extract_strided_slice %377 {offsets = [0, 384], sizes = [2, 128], strides = [1, 1]} : vector<2x512xf32> to vector<2x128xf32>
    %cst_126 = arith.constant 5.000000e-01 : f32
    %397 = vector.broadcast %cst_126 : f32 to vector<2x128xf32>
    %398 = arith.mulf %397, %396 : vector<2x128xf32>
    %399 = math.tanh %398 : vector<2x128xf32>
    %cst_127 = arith.constant 5.000000e-01 : f32
    %400 = vector.broadcast %cst_127 : f32 to vector<2x128xf32>
    %401 = arith.mulf %400, %399 : vector<2x128xf32>
    %cst_128 = arith.constant 5.000000e-01 : f32
    %402 = vector.broadcast %cst_128 : f32 to vector<2x128xf32>
    %403 = arith.addf %401, %402 : vector<2x128xf32>
    %404 = arith.mulf %393, %334 : vector<2x128xf32>
    %405 = arith.mulf %385, %395 : vector<2x128xf32>
    %406 = arith.addf %404, %405 : vector<2x128xf32>
    %407 = math.tanh %406 : vector<2x128xf32>
    %408 = arith.mulf %403, %407 : vector<2x128xf32>
    %409 = arith.truncf %408 : vector<2x128xf32> to vector<2x128xbf16>
    %cst_129 = arith.constant dense<0.000000e+00> : vector<2x512xf32>
    %410 = tpu.matmul %409, %8, %cst_129 {dimension_numbers = #tpu.dot_dimension_numbers<[1], [0], [0], [1], [0, 0, 1, 1], [], []>} : vector<2x128xbf16>, vector<128x512xbf16>, vector<2x512xf32> -> vector<2x512xf32>
    %411 = arith.truncf %373 : vector<2x128xf32> to vector<2x128xbf16>
    %cst_130 = arith.constant dense<0.000000e+00> : vector<2x512xf32>
    %412 = tpu.matmul %411, %9, %cst_130 {dimension_numbers = #tpu.dot_dimension_numbers<[1], [0], [0], [1], [0, 0, 1, 1], [], []>} : vector<2x128xbf16>, vector<128x512xbf16>, vector<2x512xf32> -> vector<2x512xf32>
    %413 = arith.addf %410, %412 : vector<2x512xf32>
    %414 = arith.addf %413, %12 : vector<2x512xf32>
    %415 = vector.extract_strided_slice %414 {offsets = [0, 0], sizes = [2, 128], strides = [1, 1]} : vector<2x512xf32> to vector<2x128xf32>
    %cst_131 = arith.constant 5.000000e-01 : f32
    %416 = vector.broadcast %cst_131 : f32 to vector<2x128xf32>
    %417 = arith.mulf %416, %415 : vector<2x128xf32>
    %418 = math.tanh %417 : vector<2x128xf32>
    %cst_132 = arith.constant 5.000000e-01 : f32
    %419 = vector.broadcast %cst_132 : f32 to vector<2x128xf32>
    %420 = arith.mulf %419, %418 : vector<2x128xf32>
    %cst_133 = arith.constant 5.000000e-01 : f32
    %421 = vector.broadcast %cst_133 : f32 to vector<2x128xf32>
    %422 = arith.addf %420, %421 : vector<2x128xf32>
    %423 = vector.extract_strided_slice %414 {offsets = [0, 128], sizes = [2, 128], strides = [1, 1]} : vector<2x512xf32> to vector<2x128xf32>
    %cst_134 = arith.constant 5.000000e-01 : f32
    %424 = vector.broadcast %cst_134 : f32 to vector<2x128xf32>
    %425 = arith.mulf %424, %423 : vector<2x128xf32>
    %426 = math.tanh %425 : vector<2x128xf32>
    %cst_135 = arith.constant 5.000000e-01 : f32
    %427 = vector.broadcast %cst_135 : f32 to vector<2x128xf32>
    %428 = arith.mulf %427, %426 : vector<2x128xf32>
    %cst_136 = arith.constant 5.000000e-01 : f32
    %429 = vector.broadcast %cst_136 : f32 to vector<2x128xf32>
    %430 = arith.addf %428, %429 : vector<2x128xf32>
    %431 = vector.extract_strided_slice %414 {offsets = [0, 256], sizes = [2, 128], strides = [1, 1]} : vector<2x512xf32> to vector<2x128xf32>
    %432 = math.tanh %431 : vector<2x128xf32>
    %433 = vector.extract_strided_slice %414 {offsets = [0, 384], sizes = [2, 128], strides = [1, 1]} : vector<2x512xf32> to vector<2x128xf32>
    %cst_137 = arith.constant 5.000000e-01 : f32
    %434 = vector.broadcast %cst_137 : f32 to vector<2x128xf32>
    %435 = arith.mulf %434, %433 : vector<2x128xf32>
    %436 = math.tanh %435 : vector<2x128xf32>
    %cst_138 = arith.constant 5.000000e-01 : f32
    %437 = vector.broadcast %cst_138 : f32 to vector<2x128xf32>
    %438 = arith.mulf %437, %436 : vector<2x128xf32>
    %cst_139 = arith.constant 5.000000e-01 : f32
    %439 = vector.broadcast %cst_139 : f32 to vector<2x128xf32>
    %440 = arith.addf %438, %439 : vector<2x128xf32>
    %441 = arith.mulf %430, %371 : vector<2x128xf32>
    %442 = arith.mulf %422, %432 : vector<2x128xf32>
    %443 = arith.addf %441, %442 : vector<2x128xf32>
    %444 = math.tanh %443 : vector<2x128xf32>
    %445 = arith.mulf %440, %444 : vector<2x128xf32>
    %446 = vector.extract_strided_slice %6 {offsets = [12, 0], sizes = [2, 512], strides = [1, 1]} : vector<16x512xf32> to vector<2x512xf32>
    %447 = arith.truncf %408 : vector<2x128xf32> to vector<2x128xbf16>
    %cst_140 = arith.constant dense<0.000000e+00> : vector<2x512xf32>
    %448 = tpu.matmul %447, %7, %cst_140 {dimension_numbers = #tpu.dot_dimension_numbers<[1], [0], [0], [1], [0, 0, 1, 1], [], []>} : vector<2x128xbf16>, vector<128x512xbf16>, vector<2x512xf32> -> vector<2x512xf32>
    %449 = arith.addf %446, %448 : vector<2x512xf32>
    %450 = vector.extract_strided_slice %449 {offsets = [0, 0], sizes = [2, 128], strides = [1, 1]} : vector<2x512xf32> to vector<2x128xf32>
    %cst_141 = arith.constant 5.000000e-01 : f32
    %451 = vector.broadcast %cst_141 : f32 to vector<2x128xf32>
    %452 = arith.mulf %451, %450 : vector<2x128xf32>
    %453 = math.tanh %452 : vector<2x128xf32>
    %cst_142 = arith.constant 5.000000e-01 : f32
    %454 = vector.broadcast %cst_142 : f32 to vector<2x128xf32>
    %455 = arith.mulf %454, %453 : vector<2x128xf32>
    %cst_143 = arith.constant 5.000000e-01 : f32
    %456 = vector.broadcast %cst_143 : f32 to vector<2x128xf32>
    %457 = arith.addf %455, %456 : vector<2x128xf32>
    %458 = vector.extract_strided_slice %449 {offsets = [0, 128], sizes = [2, 128], strides = [1, 1]} : vector<2x512xf32> to vector<2x128xf32>
    %cst_144 = arith.constant 5.000000e-01 : f32
    %459 = vector.broadcast %cst_144 : f32 to vector<2x128xf32>
    %460 = arith.mulf %459, %458 : vector<2x128xf32>
    %461 = math.tanh %460 : vector<2x128xf32>
    %cst_145 = arith.constant 5.000000e-01 : f32
    %462 = vector.broadcast %cst_145 : f32 to vector<2x128xf32>
    %463 = arith.mulf %462, %461 : vector<2x128xf32>
    %cst_146 = arith.constant 5.000000e-01 : f32
    %464 = vector.broadcast %cst_146 : f32 to vector<2x128xf32>
    %465 = arith.addf %463, %464 : vector<2x128xf32>
    %466 = vector.extract_strided_slice %449 {offsets = [0, 256], sizes = [2, 128], strides = [1, 1]} : vector<2x512xf32> to vector<2x128xf32>
    %467 = math.tanh %466 : vector<2x128xf32>
    %468 = vector.extract_strided_slice %449 {offsets = [0, 384], sizes = [2, 128], strides = [1, 1]} : vector<2x512xf32> to vector<2x128xf32>
    %cst_147 = arith.constant 5.000000e-01 : f32
    %469 = vector.broadcast %cst_147 : f32 to vector<2x128xf32>
    %470 = arith.mulf %469, %468 : vector<2x128xf32>
    %471 = math.tanh %470 : vector<2x128xf32>
    %cst_148 = arith.constant 5.000000e-01 : f32
    %472 = vector.broadcast %cst_148 : f32 to vector<2x128xf32>
    %473 = arith.mulf %472, %471 : vector<2x128xf32>
    %cst_149 = arith.constant 5.000000e-01 : f32
    %474 = vector.broadcast %cst_149 : f32 to vector<2x128xf32>
    %475 = arith.addf %473, %474 : vector<2x128xf32>
    %476 = arith.mulf %465, %406 : vector<2x128xf32>
    %477 = arith.mulf %457, %467 : vector<2x128xf32>
    %478 = arith.addf %476, %477 : vector<2x128xf32>
    %479 = math.tanh %478 : vector<2x128xf32>
    %480 = arith.mulf %475, %479 : vector<2x128xf32>
    %481 = arith.truncf %480 : vector<2x128xf32> to vector<2x128xbf16>
    %cst_150 = arith.constant dense<0.000000e+00> : vector<2x512xf32>
    %482 = tpu.matmul %481, %8, %cst_150 {dimension_numbers = #tpu.dot_dimension_numbers<[1], [0], [0], [1], [0, 0, 1, 1], [], []>} : vector<2x128xbf16>, vector<128x512xbf16>, vector<2x512xf32> -> vector<2x512xf32>
    %483 = arith.truncf %445 : vector<2x128xf32> to vector<2x128xbf16>
    %cst_151 = arith.constant dense<0.000000e+00> : vector<2x512xf32>
    %484 = tpu.matmul %483, %9, %cst_151 {dimension_numbers = #tpu.dot_dimension_numbers<[1], [0], [0], [1], [0, 0, 1, 1], [], []>} : vector<2x128xbf16>, vector<128x512xbf16>, vector<2x512xf32> -> vector<2x512xf32>
    %485 = arith.addf %482, %484 : vector<2x512xf32>
    %486 = arith.addf %485, %12 : vector<2x512xf32>
    %487 = vector.extract_strided_slice %486 {offsets = [0, 0], sizes = [2, 128], strides = [1, 1]} : vector<2x512xf32> to vector<2x128xf32>
    %cst_152 = arith.constant 5.000000e-01 : f32
    %488 = vector.broadcast %cst_152 : f32 to vector<2x128xf32>
    %489 = arith.mulf %488, %487 : vector<2x128xf32>
    %490 = math.tanh %489 : vector<2x128xf32>
    %cst_153 = arith.constant 5.000000e-01 : f32
    %491 = vector.broadcast %cst_153 : f32 to vector<2x128xf32>
    %492 = arith.mulf %491, %490 : vector<2x128xf32>
    %cst_154 = arith.constant 5.000000e-01 : f32
    %493 = vector.broadcast %cst_154 : f32 to vector<2x128xf32>
    %494 = arith.addf %492, %493 : vector<2x128xf32>
    %495 = vector.extract_strided_slice %486 {offsets = [0, 128], sizes = [2, 128], strides = [1, 1]} : vector<2x512xf32> to vector<2x128xf32>
    %cst_155 = arith.constant 5.000000e-01 : f32
    %496 = vector.broadcast %cst_155 : f32 to vector<2x128xf32>
    %497 = arith.mulf %496, %495 : vector<2x128xf32>
    %498 = math.tanh %497 : vector<2x128xf32>
    %cst_156 = arith.constant 5.000000e-01 : f32
    %499 = vector.broadcast %cst_156 : f32 to vector<2x128xf32>
    %500 = arith.mulf %499, %498 : vector<2x128xf32>
    %cst_157 = arith.constant 5.000000e-01 : f32
    %501 = vector.broadcast %cst_157 : f32 to vector<2x128xf32>
    %502 = arith.addf %500, %501 : vector<2x128xf32>
    %503 = vector.extract_strided_slice %486 {offsets = [0, 256], sizes = [2, 128], strides = [1, 1]} : vector<2x512xf32> to vector<2x128xf32>
    %504 = math.tanh %503 : vector<2x128xf32>
    %505 = vector.extract_strided_slice %486 {offsets = [0, 384], sizes = [2, 128], strides = [1, 1]} : vector<2x512xf32> to vector<2x128xf32>
    %cst_158 = arith.constant 5.000000e-01 : f32
    %506 = vector.broadcast %cst_158 : f32 to vector<2x128xf32>
    %507 = arith.mulf %506, %505 : vector<2x128xf32>
    %508 = math.tanh %507 : vector<2x128xf32>
    %cst_159 = arith.constant 5.000000e-01 : f32
    %509 = vector.broadcast %cst_159 : f32 to vector<2x128xf32>
    %510 = arith.mulf %509, %508 : vector<2x128xf32>
    %cst_160 = arith.constant 5.000000e-01 : f32
    %511 = vector.broadcast %cst_160 : f32 to vector<2x128xf32>
    %512 = arith.addf %510, %511 : vector<2x128xf32>
    %513 = arith.mulf %502, %443 : vector<2x128xf32>
    %514 = arith.mulf %494, %504 : vector<2x128xf32>
    %515 = arith.addf %513, %514 : vector<2x128xf32>
    %516 = math.tanh %515 : vector<2x128xf32>
    %517 = arith.mulf %512, %516 : vector<2x128xf32>
    %518 = vector.extract_strided_slice %6 {offsets = [14, 0], sizes = [2, 512], strides = [1, 1]} : vector<16x512xf32> to vector<2x512xf32>
    %519 = arith.truncf %480 : vector<2x128xf32> to vector<2x128xbf16>
    %cst_161 = arith.constant dense<0.000000e+00> : vector<2x512xf32>
    %520 = tpu.matmul %519, %7, %cst_161 {dimension_numbers = #tpu.dot_dimension_numbers<[1], [0], [0], [1], [0, 0, 1, 1], [], []>} : vector<2x128xbf16>, vector<128x512xbf16>, vector<2x512xf32> -> vector<2x512xf32>
    %521 = arith.addf %518, %520 : vector<2x512xf32>
    %522 = vector.extract_strided_slice %521 {offsets = [0, 0], sizes = [2, 128], strides = [1, 1]} : vector<2x512xf32> to vector<2x128xf32>
    %cst_162 = arith.constant 5.000000e-01 : f32
    %523 = vector.broadcast %cst_162 : f32 to vector<2x128xf32>
    %524 = arith.mulf %523, %522 : vector<2x128xf32>
    %525 = math.tanh %524 : vector<2x128xf32>
    %cst_163 = arith.constant 5.000000e-01 : f32
    %526 = vector.broadcast %cst_163 : f32 to vector<2x128xf32>
    %527 = arith.mulf %526, %525 : vector<2x128xf32>
    %cst_164 = arith.constant 5.000000e-01 : f32
    %528 = vector.broadcast %cst_164 : f32 to vector<2x128xf32>
    %529 = arith.addf %527, %528 : vector<2x128xf32>
    %530 = vector.extract_strided_slice %521 {offsets = [0, 128], sizes = [2, 128], strides = [1, 1]} : vector<2x512xf32> to vector<2x128xf32>
    %cst_165 = arith.constant 5.000000e-01 : f32
    %531 = vector.broadcast %cst_165 : f32 to vector<2x128xf32>
    %532 = arith.mulf %531, %530 : vector<2x128xf32>
    %533 = math.tanh %532 : vector<2x128xf32>
    %cst_166 = arith.constant 5.000000e-01 : f32
    %534 = vector.broadcast %cst_166 : f32 to vector<2x128xf32>
    %535 = arith.mulf %534, %533 : vector<2x128xf32>
    %cst_167 = arith.constant 5.000000e-01 : f32
    %536 = vector.broadcast %cst_167 : f32 to vector<2x128xf32>
    %537 = arith.addf %535, %536 : vector<2x128xf32>
    %538 = vector.extract_strided_slice %521 {offsets = [0, 256], sizes = [2, 128], strides = [1, 1]} : vector<2x512xf32> to vector<2x128xf32>
    %539 = math.tanh %538 : vector<2x128xf32>
    %540 = vector.extract_strided_slice %521 {offsets = [0, 384], sizes = [2, 128], strides = [1, 1]} : vector<2x512xf32> to vector<2x128xf32>
    %cst_168 = arith.constant 5.000000e-01 : f32
    %541 = vector.broadcast %cst_168 : f32 to vector<2x128xf32>
    %542 = arith.mulf %541, %540 : vector<2x128xf32>
    %543 = math.tanh %542 : vector<2x128xf32>
    %cst_169 = arith.constant 5.000000e-01 : f32
    %544 = vector.broadcast %cst_169 : f32 to vector<2x128xf32>
    %545 = arith.mulf %544, %543 : vector<2x128xf32>
    %cst_170 = arith.constant 5.000000e-01 : f32
    %546 = vector.broadcast %cst_170 : f32 to vector<2x128xf32>
    %547 = arith.addf %545, %546 : vector<2x128xf32>
    %548 = arith.mulf %537, %478 : vector<2x128xf32>
    %549 = arith.mulf %529, %539 : vector<2x128xf32>
    %550 = arith.addf %548, %549 : vector<2x128xf32>
    %551 = math.tanh %550 : vector<2x128xf32>
    %552 = arith.mulf %547, %551 : vector<2x128xf32>
    %553 = arith.truncf %552 : vector<2x128xf32> to vector<2x128xbf16>
    %cst_171 = arith.constant dense<0.000000e+00> : vector<2x512xf32>
    %554 = tpu.matmul %553, %8, %cst_171 {dimension_numbers = #tpu.dot_dimension_numbers<[1], [0], [0], [1], [0, 0, 1, 1], [], []>} : vector<2x128xbf16>, vector<128x512xbf16>, vector<2x512xf32> -> vector<2x512xf32>
    %555 = arith.truncf %517 : vector<2x128xf32> to vector<2x128xbf16>
    %cst_172 = arith.constant dense<0.000000e+00> : vector<2x512xf32>
    %556 = tpu.matmul %555, %9, %cst_172 {dimension_numbers = #tpu.dot_dimension_numbers<[1], [0], [0], [1], [0, 0, 1, 1], [], []>} : vector<2x128xbf16>, vector<128x512xbf16>, vector<2x512xf32> -> vector<2x512xf32>
    %557 = arith.addf %554, %556 : vector<2x512xf32>
    %558 = arith.addf %557, %12 : vector<2x512xf32>
    %559 = vector.extract_strided_slice %558 {offsets = [0, 0], sizes = [2, 128], strides = [1, 1]} : vector<2x512xf32> to vector<2x128xf32>
    %cst_173 = arith.constant 5.000000e-01 : f32
    %560 = vector.broadcast %cst_173 : f32 to vector<2x128xf32>
    %561 = arith.mulf %560, %559 : vector<2x128xf32>
    %562 = math.tanh %561 : vector<2x128xf32>
    %cst_174 = arith.constant 5.000000e-01 : f32
    %563 = vector.broadcast %cst_174 : f32 to vector<2x128xf32>
    %564 = arith.mulf %563, %562 : vector<2x128xf32>
    %cst_175 = arith.constant 5.000000e-01 : f32
    %565 = vector.broadcast %cst_175 : f32 to vector<2x128xf32>
    %566 = arith.addf %564, %565 : vector<2x128xf32>
    %567 = vector.extract_strided_slice %558 {offsets = [0, 128], sizes = [2, 128], strides = [1, 1]} : vector<2x512xf32> to vector<2x128xf32>
    %cst_176 = arith.constant 5.000000e-01 : f32
    %568 = vector.broadcast %cst_176 : f32 to vector<2x128xf32>
    %569 = arith.mulf %568, %567 : vector<2x128xf32>
    %570 = math.tanh %569 : vector<2x128xf32>
    %cst_177 = arith.constant 5.000000e-01 : f32
    %571 = vector.broadcast %cst_177 : f32 to vector<2x128xf32>
    %572 = arith.mulf %571, %570 : vector<2x128xf32>
    %cst_178 = arith.constant 5.000000e-01 : f32
    %573 = vector.broadcast %cst_178 : f32 to vector<2x128xf32>
    %574 = arith.addf %572, %573 : vector<2x128xf32>
    %575 = vector.extract_strided_slice %558 {offsets = [0, 256], sizes = [2, 128], strides = [1, 1]} : vector<2x512xf32> to vector<2x128xf32>
    %576 = math.tanh %575 : vector<2x128xf32>
    %577 = vector.extract_strided_slice %558 {offsets = [0, 384], sizes = [2, 128], strides = [1, 1]} : vector<2x512xf32> to vector<2x128xf32>
    %cst_179 = arith.constant 5.000000e-01 : f32
    %578 = vector.broadcast %cst_179 : f32 to vector<2x128xf32>
    %579 = arith.mulf %578, %577 : vector<2x128xf32>
    %580 = math.tanh %579 : vector<2x128xf32>
    %cst_180 = arith.constant 5.000000e-01 : f32
    %581 = vector.broadcast %cst_180 : f32 to vector<2x128xf32>
    %582 = arith.mulf %581, %580 : vector<2x128xf32>
    %cst_181 = arith.constant 5.000000e-01 : f32
    %583 = vector.broadcast %cst_181 : f32 to vector<2x128xf32>
    %584 = arith.addf %582, %583 : vector<2x128xf32>
    %585 = arith.mulf %574, %515 : vector<2x128xf32>
    %586 = arith.mulf %566, %576 : vector<2x128xf32>
    %587 = arith.addf %585, %586 : vector<2x128xf32>
    %588 = math.tanh %587 : vector<2x128xf32>
    %589 = arith.mulf %584, %588 : vector<2x128xf32>
    %590 = arith.truncf %589 : vector<2x128xf32> to vector<2x128xbf16>
    %c0_182 = arith.constant 0 : index
    %c0_183 = arith.constant 0 : index
    %591 = vector.load %arg8[%c0_182, %c0_183] : memref<128x128xbf16, #tpu.memory_space<vmem>>, vector<128x128xbf16>
    %cst_184 = arith.constant dense<0.000000e+00> : vector<2x128xf32>
    %592 = tpu.matmul %590, %591, %cst_184 {dimension_numbers = #tpu.dot_dimension_numbers<[1], [0], [0], [1], [0, 0, 1, 1], [], []>} : vector<2x128xbf16>, vector<128x128xbf16>, vector<2x128xf32> -> vector<2x128xf32>
    %c0_185 = arith.constant 0 : index
    %c0_186 = arith.constant 0 : index
    %593 = vector.load %arg9[%c0_185, %c0_186] : memref<1x128xf32, #tpu.memory_space<vmem>>, vector<1x128xf32>
    %594 = vector.broadcast %593 : vector<1x128xf32> to vector<2x128xf32>
    %595 = arith.addf %592, %594 : vector<2x128xf32>
    %cst_187 = arith.constant 0.000000e+00 : f32
    %596 = vector.broadcast %cst_187 : f32 to vector<2x128xf32>
    %597 = arith.maximumf %595, %596 : vector<2x128xf32>
    %598 = arith.truncf %597 : vector<2x128xf32> to vector<2x128xbf16>
    %c0_188 = arith.constant 0 : index
    %c0_189 = arith.constant 0 : index
    %599 = vector.load %arg10[%c0_188, %c0_189] : memref<128x64xbf16, #tpu.memory_space<vmem>>, vector<128x64xbf16>
    %cst_190 = arith.constant dense<0.000000e+00> : vector<2x64xf32>
    %600 = tpu.matmul %598, %599, %cst_190 {dimension_numbers = #tpu.dot_dimension_numbers<[1], [0], [0], [1], [0, 0, 1, 1], [], []>} : vector<2x128xbf16>, vector<128x64xbf16>, vector<2x64xf32> -> vector<2x64xf32>
    %c0_191 = arith.constant 0 : index
    %c0_192 = arith.constant 0 : index
    %601 = vector.load %arg11[%c0_191, %c0_192] : memref<1x64xf32, #tpu.memory_space<vmem>>, vector<1x64xf32>
    %602 = vector.broadcast %601 : vector<1x64xf32> to vector<2x64xf32>
    %603 = arith.addf %600, %602 : vector<2x64xf32>
    %cst_193 = arith.constant 0.000000e+00 : f32
    %604 = vector.broadcast %cst_193 : f32 to vector<2x64xf32>
    %605 = arith.maximumf %603, %604 : vector<2x64xf32>
    %606 = arith.truncf %605 : vector<2x64xf32> to vector<2x64xbf16>
    %c0_194 = arith.constant 0 : index
    %c0_195 = arith.constant 0 : index
    %607 = vector.load %arg12[%c0_194, %c0_195] : memref<64x128xbf16, #tpu.memory_space<vmem>>, vector<64x128xbf16>
    %cst_196 = arith.constant dense<0.000000e+00> : vector<2x128xf32>
    %608 = tpu.matmul %606, %607, %cst_196 {dimension_numbers = #tpu.dot_dimension_numbers<[1], [0], [0], [1], [0, 0, 1, 1], [], []>} : vector<2x64xbf16>, vector<64x128xbf16>, vector<2x128xf32> -> vector<2x128xf32>
    %c0_197 = arith.constant 0 : index
    %c0_198 = arith.constant 0 : index
    %609 = vector.load %arg13[%c0_197, %c0_198] : memref<1x128xf32, #tpu.memory_space<vmem>>, vector<1x128xf32>
    %610 = vector.broadcast %609 : vector<1x128xf32> to vector<2x128xf32>
    %611 = arith.addf %608, %610 : vector<2x128xf32>
    %c0_199 = arith.constant 0 : index
    %c0_200 = arith.constant 0 : index
    %612 = vector.load %arg14[%c0_199, %c0_200] : memref<2x128xf32, #tpu.memory_space<vmem>>, vector<2x128xf32>
    tpu.vector_store %arg14[%c0_199, %c0_200], %611 {strides = array<i32>} : memref<2x128xf32, #tpu.memory_space<vmem>>, vector<2x128xf32>,
    return
  }
  func.func @transform_0(%arg0: i32) -> (i32, i32) {
    %c0_i32 = arith.constant 0 : i32
    %c0_i32_0 = arith.constant 0 : i32
    %c0_i32_1 = arith.constant 0 : i32
    return %c0_i32, %c0_i32_0 : i32, i32
  }
  func.func @transform_1(%arg0: i32) -> (i32, i32) {
    %c0_i32 = arith.constant 0 : i32
    %c0_i32_0 = arith.constant 0 : i32
    %c0_i32_1 = arith.constant 0 : i32
    return %c0_i32, %c0_i32_0 : i32, i32
  }
  func.func @transform_2(%arg0: i32) -> (i32, i32) {
    %c0_i32 = arith.constant 0 : i32
    %c0_i32_0 = arith.constant 0 : i32
    %c0_i32_1 = arith.constant 0 : i32
    return %c0_i32, %c0_i32_0 : i32, i32
  }
  func.func @transform_3(%arg0: i32) -> (i32, i32) {
    %c0_i32 = arith.constant 0 : i32
    %c0_i32_0 = arith.constant 0 : i32
    %c0_i32_1 = arith.constant 0 : i32
    return %c0_i32, %c0_i32_0 : i32, i32
  }
  func.func @transform_4(%arg0: i32) -> (i32, i32) {
    %c0_i32 = arith.constant 0 : i32
    %c0_i32_0 = arith.constant 0 : i32
    %c0_i32_1 = arith.constant 0 : i32
    return %c0_i32, %c0_i32_0 : i32, i32
  }
  func.func @transform_5(%arg0: i32) -> (i32, i32) {
    %c0_i32 = arith.constant 0 : i32
    %c0_i32_0 = arith.constant 0 : i32
    %c0_i32_1 = arith.constant 0 : i32
    return %c0_i32, %c0_i32_0 : i32, i32
  }
  func.func @transform_6(%arg0: i32) -> (i32, i32) {
    %c0_i32 = arith.constant 0 : i32
    %c0_i32_0 = arith.constant 0 : i32
    %c0_i32_1 = arith.constant 0 : i32
    return %c0_i32, %c0_i32_0 : i32, i32
  }
  func.func @transform_7(%arg0: i32) -> (i32, i32) {
    %c0_i32 = arith.constant 0 : i32
    %c0_i32_0 = arith.constant 0 : i32
    %c0_i32_1 = arith.constant 0 : i32
    return %c0_i32, %c0_i32_0 : i32, i32
  }
  func.func @transform_8(%arg0: i32) -> (i32, i32) {
    %c0_i32 = arith.constant 0 : i32
    %c0_i32_0 = arith.constant 0 : i32
    %c0_i32_1 = arith.constant 0 : i32
    return %c0_i32, %c0_i32_0 : i32, i32
  }
  func.func @transform_9(%arg0: i32) -> (i32, i32) {
    %c0_i32 = arith.constant 0 : i32
    %c0_i32_0 = arith.constant 0 : i32
    %c0_i32_1 = arith.constant 0 : i32
    return %c0_i32, %c0_i32_0 : i32, i32
  }
  func.func @transform_10(%arg0: i32) -> (i32, i32) {
    %c0_i32 = arith.constant 0 : i32
    %c0_i32_0 = arith.constant 0 : i32
    %c0_i32_1 = arith.constant 0 : i32
    return %c0_i32, %c0_i32_0 : i32, i32
  }
  func.func @transform_11(%arg0: i32) -> (i32, i32) {
    %c0_i32 = arith.constant 0 : i32
    %c0_i32_0 = arith.constant 0 : i32
    %c0_i32_1 = arith.constant 0 : i32
    return %c0_i32, %c0_i32_0 : i32, i32
  }
  func.func @transform_12(%arg0: i32) -> (i32, i32) {
    %c0_i32 = arith.constant 0 : i32
    %c0_i32_0 = arith.constant 0 : i32
    %c0_i32_1 = arith.constant 0 : i32
    return %c0_i32, %c0_i32_0 : i32, i32
  }
  func.func @transform_13(%arg0: i32) -> (i32, i32) {
    %c0_i32 = arith.constant 0 : i32
    %c0_i32_0 = arith.constant 0 : i32
    %c0_i32_1 = arith.constant 0 : i32
    return %c0_i32, %c0_i32_0 : i32, i32
  }
}

</mosaic_0001>

<bundles_post_ra>
// kernel: improved_seq_gnn.1
= control target key start
LH: loop header
LB: loop body
LE: loop exit
PB: predicated region body
PF: predicated region fallthrough
CT: control target
= control target key end

     0   :  { %18 = vsyncpa [#allocation3], 0  ;;  %s5194_s0 = inlined_call_operand.vmem [shape: f32[16,32], index: 0, kind: input, shape index: {}]   ;;  %s5195_s1 = inlined_call_operand.vmem [shape: bf16[32,512], index: 1, kind: input, shape index: {}]   ;;  %s5196_s2 = inlined_call_operand.vmem [shape: f32[1,512], index: 2, kind: input, shape index: {}]   ;;  %s5197_s3 = inlined_call_operand.hbm [shape: bf16[128,512], index: 3, kind: input, shape index: {}]   ;;  %s5198_s4 = inlined_call_operand.hbm [shape: bf16[128,512], index: 4, kind: input, shape index: {}]   ;;  %s5199_s5 = inlined_call_operand.hbm [shape: bf16[128,512], index: 5, kind: input, shape index: {}]   ;;  %s5200_s6 = inlined_call_operand.vmem [shape: f32[1,512], index: 6, kind: input, shape index: {}]   ;;  %s5201_s7 = inlined_call_operand.hbm [shape: bf16[128,128], index: 7, kind: input, shape index: {}]   ;;  %s5202_s8 = inlined_call_operand.hbm [shape: f32[1,128], index: 8, kind: input, shape index: {}]   ;;  %s5203_s9 = inlined_call_operand.vmem [shape: bf16[128,64], index: 9, kind: input, shape index: {}]   ;;  %s5204_s10 = inlined_call_operand.hbm [shape: f32[1,64], index: 10, kind: input, shape index: {}]   ;;  %s5205_s11 = inlined_call_operand.vmem [shape: bf16[64,128], index: 11, kind: input, shape index: {}]   ;;  %s5206_s12 = inlined_call_operand.hbm [shape: f32[1,128], index: 12, kind: input, shape index: {}]   ;;  %s5207_s13 = inlined_call_operand.hbm [shape: f32[2,128], index: 13, kind: output, shape index: {}]  }
   0x1   :  { %19 = vsyncpa [#allocation6], 0 }
   0x2   :  { %20 = vsyncpa [#allocation9], 0 }
   0x3   :  { %21 = vsyncpa [#allocation12], 0 }
   0x4   :  { %22 = vsyncpa [#allocation4], 0  ;;  %s46_s27 = sshll.u32 %s5198_s4, 4  ;;  %s3826_s28 = smov [#allocation5]   ;;  %s47_s27 = int_to_ptr.hbm [resolvable:$true] %s46_s27 }
   0x5   :  { %s48_s29 = sshll.u32 %s3826_s28, 4  ;;  %s74_s15 = sshll.u32 %s5201_s7, 4  ;;  %s49_s29 = int_to_ptr.vmem [resolvable:$true] %s48_s29  ;;  %s75_s15 = int_to_ptr.hbm [resolvable:$true] %s74_s15 }
   0x6   :  { %s3827_s16 = smov 256   ;;  %s3828_s17 = smov 16  }
   0x7   :  { %54 = dma.hbm_to_vmem [thread:$0]  %s47_s27, 4096, %s49_s29, [#allocation6], %s3827_s16, %s3827_s16, %s3828_s17  }
   0x8   :  { %s3829_s18 = smov [#allocation8]   ;;  %s3830_s20 = smov 64  }
   0x9   :  { %s76_s19 = sshll.u32 %s3829_s18, 4  ;;  %s3831_s4 = smov 4   ;;  %s77_s19 = int_to_ptr.vmem [resolvable:$true] %s76_s19 }
   0xa   :  { %82 = dma.hbm_to_vmem [thread:$0]  %s75_s15, 1024, %s77_s19, [#allocation9], %s3830_s20, %s3830_s20, %s3831_s4  }
   0xb   :  { %s101_s23 = sshll.u32 %s5204_s10, 4  ;;  %s3832_s24 = smov [#allocation11]   ;;  %s102_s23 = int_to_ptr.hbm [resolvable:$true] %s101_s23 }
   0xc   :  { %s103_s7 = sshll.u32 %s3832_s24, 4  ;;  %s33_s28 = sshll.u32 %s5197_s3, 4  ;;  %s104_s7 = int_to_ptr.vmem [resolvable:$true] %s103_s7  ;;  %s34_s28 = int_to_ptr.hbm [resolvable:$true] %s33_s28 }
   0xd   :  { %106 = dma.hbm_to_vmem [thread:$0]  %s102_s23, 16, %s104_s7, [#allocation12]  }
   0xe   :  { %s3833_s27 = smov [#allocation2]   ;;  %s59_s15 = sshll.u32 %s5199_s5, 4  ;;  %s60_s15 = int_to_ptr.hbm [resolvable:$true] %s59_s15 }
   0xf   :  { %s35_s29 = sshll.u32 %s3833_s27, 4  ;;  %s88_s19 = sshll.u32 %s5202_s8, 4  ;;  %s36_s29 = int_to_ptr.vmem [resolvable:$true] %s35_s29  ;;  %s89_s19 = int_to_ptr.hbm [resolvable:$true] %s88_s19 }
  0x10   :  { %41 = dma.hbm_to_vmem [thread:$0]  %s34_s28, 4096, %s36_s29, [#allocation3], %s3827_s16, %s3827_s16, %s3828_s17  }
  0x11   :  { %s3834_s20 = smov [#allocation7]   ;;  %s3835_s4 = smov [#allocation10]  }
  0x12   :  { %s61_s3 = sshll.u32 %s3834_s20, 4  ;;  %s90_s5 = sshll.u32 %s3835_s4, 4  ;;  %s62_s3 = int_to_ptr.vmem [resolvable:$true] %s61_s3  ;;  %s91_s5 = int_to_ptr.vmem [resolvable:$true] %s90_s5 }
  0x13   :  { %67 = dma.hbm_to_vmem [thread:$0]  %s60_s15, 4096, %s62_s3, [#allocation6], %s3827_s16, %s3827_s16, %s3828_s17  }
  0x14   :  { %s114_s23 = sshll.u32 %s5206_s12, 4  ;;  %s3836_s24 = smov [#allocation13]   ;;  %s115_s23 = int_to_ptr.hbm [resolvable:$true] %s114_s23 }
  0x15   :  { %93 = dma.hbm_to_vmem [thread:$0]  %s89_s19, 16, %s91_s5, [#allocation9]  }
  0x16   :  { %s116_s7 = sshll.u32 %s3836_s24, 4  ;;  %s117_s7 = int_to_ptr.vmem [resolvable:$true] %s116_s7 }
  0x17   :  { %119 = dma.hbm_to_vmem [thread:$0]  %s115_s23, 16, %s117_s7, [#allocation12]  }
  0x18   :  { %3816 = dma.done.wait [#allocation3], 4096  }
  0x19   :  { %3817 = vsyncadd [#allocation3], 4294963200 }
  0x1a   :  { %3818 = dma.done.wait [#allocation6], 8192  }
  0x1b   :  { %3819 = vsyncadd [#allocation6], 4294959104 }
  0x1c   :  { %3820 = dma.done.wait [#allocation9], 1040  }
  0x1d   :  { %3821 = vsyncadd [#allocation9], 4294966256 }
  0x1e   :  { %3822 = dma.done.wait [#allocation12], 32  }
  0x1f   :  { %3823 = vsyncadd [#allocation12], 4294967264  ;;  %v2841_v0 = vld [vmem:[%s5195_s1 + $0x20] sm:$0xf]  ;;  %v3330_v1 = vld [vmem:[%s5195_s1 + $0x2c] sm:$0xf0] }
  0x20   :  { %v3328_v2 = vld [vmem:[%s5195_s1 + $0x24] sm:$0xf]  ;;  %v2842_v3 = vor.u32 %v3330_v1, %v2841_v0  ;;  %v2843_v4 = vld [vmem:[%s5195_s1 + $0x30] sm:$0xf0]  ;;  %v2849_v5 = vld [vmem:[%s5195_s1 + $0x28] sm:$0xf] }
  0x21   :  { %v3331_v6 = vld [vmem:[%s5195_s1 + $0x34] sm:$0xf0]  ;;  %v2846_v7 = vor.u32 %v3328_v2, %v2843_v4  ;;  %v2973_v9 = vld [vmem:[#allocation2 + $0xe0] sm:$0xf]  ;;  %v3362_v10 = vld [vmem:[#allocation2 + $0xec] sm:$0xf0] }
  0x22   :  { %v2850_v8 = vor.u32 %v3331_v6, %v2849_v5  ;;  %v2825_v11 = vld [vmem:[%s5195_s1] sm:$0xf]  ;;  %220 = vmatpush.bf16.msra.mxu3 %v2842_v3  ;;  %v3960_v12 = vor.u32 %v3362_v10, %v2973_v9  ;;  %v3326_v13 = vld [vmem:[%s5195_s1 + $0xc] sm:$0xf0]  ;;  %v3324_v14 = vld [vmem:[%s5195_s1 + $0x4] sm:$0xf] }
  0x23   :  { %v2827_v15 = vld [vmem:[%s5195_s1 + $0x10] sm:$0xf0]  ;;  %234 = vmatpush.bf16.msra.mxu1 %v2846_v7  ;;  %v2826_v16 = vor.u32 %v3326_v13, %v2825_v11  ;;  %v2833_v18 = vld [vmem:[%s5195_s1 + $0x8] sm:$0xf]  ;;  %v3327_v19 = vld [vmem:[%s5195_s1 + $0x14] sm:$0xf0] }
  0x24   :  { %248 = vmatpush.bf16.msra.mxu2 %v2850_v8  ;;  %v2830_v17 = vor.u32 %v3324_v14, %v2827_v15  ;;  %v2957_v20 = vld [vmem:[#allocation2 + $0xc0] sm:$0xf]  ;;  %536 = vmatpush.bf16.msra.mxu0 %v3960_v12  ;;  %v2834_v21 = vor.u32 %v3327_v19, %v2833_v18  ;;  %v3358_v22 = vld [vmem:[#allocation2 + $0xcc] sm:$0xf0]  ;;  %v3329_v23 = vld [vmem:[%s5195_s1 + $0x2c] sm:$0xf] }
  0x25   :  { %v2851_v24 = vld [vmem:[%s5195_s1 + $0x38] sm:$0xf0]  ;;  %v3984_v25 = vor.u32 %v3358_v22, %v2957_v20  ;;  %v3360_v27 = vld [vmem:[#allocation2 + $0xe4] sm:$0xf]  ;;  %v2975_v28 = vld [vmem:[#allocation2 + $0xf0] sm:$0xf0] }
  0x26   :  { %v2854_v26 = vor.u32 %v3329_v23, %v2851_v24  ;;  %v2981_v29 = vld [vmem:[#allocation2 + $0xe8] sm:$0xf]  ;;  %221 = vmatpush.bf16.msra.mxu3 %v2826_v16  ;;  %v3986_v30 = vor.u32 %v3360_v27, %v2975_v28  ;;  %v3363_v31 = vld [vmem:[#allocation2 + $0xf4] sm:$0xf0]  ;;  %v149_v32 = vld [vmem:[%s5194_s0] sm:$0xff]  ;;  %vm210_vm0 = vcmask 261120  }
  0x27   :  { %v150_v33 = vld [vmem:[%s5194_s0 + $0x8] sm:$0xff]  ;;  %235 = vmatpush.bf16.msra.mxu1 %v2830_v17  ;;  %v3994_v34 = vor.u32 %v3363_v31, %v2981_v29  ;;  %v2941_v36 = vld [vmem:[#allocation2 + $0xa0] sm:$0xf]  ;;  %v3354_v37 = vld [vmem:[#allocation2 + $0xac] sm:$0xf0]  ;;  %vm2785_vm1 = vcmask 523264  }
  0x28   :  { %249 = vmatpush.bf16.msra.mxu2 %v2834_v21  ;;  %v3996_v35 = vpack.c.bf16 %v150_v33, %v149_v32  ;;  %v3325_v38 = vld [vmem:[%s5195_s1 + $0xc] sm:$0xf]  ;;  %537 = vmatpush.bf16.msra.mxu0 %v3984_v25  ;;  %v4002_v39 = vor.u32 %v3354_v37, %v2941_v36  ;;  %v2835_v40 = vld [vmem:[%s5195_s1 + $0x18] sm:$0xf0]  ;;  %v3356_v41 = vld [vmem:[#allocation2 + $0xc4] sm:$0xf] }
  0x29   :  { %v2959_v42 = vld [vmem:[#allocation2 + $0xd0] sm:$0xf0]  ;;  %v2838_v43 = vor.u32 %v3325_v38, %v2835_v40  ;;  %v2965_v45 = vld [vmem:[#allocation2 + $0xc8] sm:$0xf]  ;;  %v3359_v46 = vld [vmem:[#allocation2 + $0xd4] sm:$0xf0] }
  0x2a   :  { %262 = vmatpush.bf16.msrb.mxu3 %v2854_v26  ;;  %v4009_v44 = vor.u32 %v3356_v41, %v2959_v42  ;;  %v3361_v47 = vld [vmem:[#allocation2 + $0xec] sm:$0xf]  ;;  %v4013_v48 = vor.u32 %v3359_v46, %v2965_v45  ;;  %v2983_v49 = vld [vmem:[#allocation2 + $0xf8] sm:$0xf0]  ;;  %2856 = vmatmul.msk.bf16.vlgmr.msra.gmra.mxu1 %vm210_vm0, %v3996_v35  ;;  %v2925_v50 = vld [vmem:[#allocation2 + $0x80] sm:$0xf] }
  0x2b   :  { %549 = vmatpush.bf16.msrb.mxu1 %v3986_v30  ;;  %2855 = vmatmul.msk.bf16.vlgmr.msra.gmra.mxu3 %vm210_vm0, %v3996_v35  ;;  %v3350_v51 = vld [vmem:[#allocation2 + $0x8c] sm:$0xf0]  ;;  %v4017_v52 = vor.u32 %v3361_v47, %v2983_v49  ;;  %v3352_v53 = vld [vmem:[#allocation2 + $0xa4] sm:$0xf]  ;;  %v2943_v54 = vld [vmem:[#allocation2 + $0xb0] sm:$0xf0] }
  0x2c   :  { %562 = vmatpush.bf16.msrb.mxu2 %v3994_v34  ;;  %v2949_v55 = vld [vmem:[#allocation2 + $0xa8] sm:$0xf]  ;;  %538 = vmatpush.bf16.msra.mxu0 %v4002_v39  ;;  %v4022_v56 = vor.u32 %v3350_v51, %v2925_v50  ;;  %v3355_v57 = vld [vmem:[#allocation2 + $0xb4] sm:$0xf0]  ;;  %v3357_v58 = vld [vmem:[#allocation2 + $0xcc] sm:$0xf]  ;;  %v4026_v60 = vor.u32 %v3352_v53, %v2943_v54 }
  0x2d   :  { %2857 = vmatmul.msk.bf16.vlgmr.msra.gmra.mxu2 %vm210_vm0, %v3996_v35  ;;  %v2967_v59 = vld [vmem:[#allocation2 + $0xd8] sm:$0xf0]  ;;  %v4028_v61 = vor.u32 %v3355_v57, %v2949_v55  ;;  %v2909_v62 = vld [vmem:[#allocation2 + $0x60] sm:$0xf]  ;;  %v3346_v63 = vld [vmem:[#allocation2 + $0x6c] sm:$0xf0] }
  0x2e   :  { %263 = vmatpush.bf16.msrb.mxu3 %v2838_v43  ;;  %5367 = vst [vmem:[#allocation20_spill] sm:$0xff] %v4022_v56  ;;  %v3348_v0 = vld [vmem:[#allocation2 + $0x84] sm:$0xf]  ;;  %v4031_v1 = vor.u32 %v3357_v58, %v2967_v59  ;;  %v2927_v2 = vld [vmem:[#allocation2 + $0x90] sm:$0xf0]  ;;  %v4034_v7 = vor.u32 %v3346_v63, %v2909_v62  ;;  %s3838_s0 = smov [#allocation14]  }
  0x2f   :  { %550 = vmatpush.bf16.msrb.mxu1 %v4009_v44  ;;  %v2933_v3 = vld [vmem:[#allocation2 + $0x88] sm:$0xf]  ;;  %v3351_v4 = vld [vmem:[#allocation2 + $0x94] sm:$0xf0]  ;;  %v3353_v5 = vld [vmem:[#allocation2 + $0xac] sm:$0xf]  ;;  %v4038_v8 = vor.u32 %v3348_v0, %v2927_v2 }
  0x30   :  { %563 = vmatpush.bf16.msrb.mxu2 %v4013_v48  ;;  %5368 = vst [vmem:[#allocation21_spill] sm:$0xff] %v4031_v1  ;;  %v2951_v6 = vld [vmem:[#allocation2 + $0xb8] sm:$0xf0]  ;;  %539 = vmatpush.bf16.msra.mxu0 %v4022_v56  ;;  %v4040_v9 = vor.u32 %v3351_v4, %v2933_v3  ;;  %v2893_v10 = vld [vmem:[#allocation2 + $0x40] sm:$0xf]  ;;  %s2808_s1 = sshll.u32 %s3838_s0, 4  ;;  %s2809_s1 = int_to_ptr.vmem [resolvable:$true] %s2808_s1 }
  0x31   :  { %v3342_v11 = vld [vmem:[#allocation2 + $0x4c] sm:$0xf0]  ;;  %v3344_v13 = vld [vmem:[#allocation2 + $0x64] sm:$0xf]  ;;  %v4043_v14 = vor.u32 %v3353_v5, %v2951_v6  ;;  %v2911_v15 = vld [vmem:[#allocation2 + $0x70] sm:$0xf0] }
  0x32   :  { %575 = vmatpush.bf16.msra.mxu3 %v4017_v52  ;;  %v2917_v16 = vld [vmem:[#allocation2 + $0x68] sm:$0xf]  ;;  %v3347_v17 = vld [vmem:[#allocation2 + $0x74] sm:$0xf0]  ;;  %v3349_v18 = vld [vmem:[#allocation2 + $0x8c] sm:$0xf]  ;;  %v4046_v20 = vor.u32 %v3342_v11, %v2893_v10  ;;  %v4050_v21 = vor.u32 %v3344_v13, %v2911_v15 }
  0x33   :  { %551 = vmatpush.bf16.msrb.mxu1 %v4026_v60  ;;  %5369 = vst [vmem:[#allocation22_spill] sm:$0xff] %v4043_v14  ;;  %v2935_v19 = vld [vmem:[#allocation2 + $0x98] sm:$0xf0]  ;;  %v4052_v22 = vor.u32 %v3347_v17, %v2917_v16  ;;  %v2877_v23 = vld [vmem:[#allocation2 + $0x20] sm:$0xf]  ;;  %s2810_s10 = sshll.u32 %s5207_s13, 4  ;;  %s2811_s10 = int_to_ptr.hbm [resolvable:$true] %s2810_s10 }
  0x34   :  { %564 = vmatpush.bf16.msrb.mxu2 %v4028_v61  ;;  %540 = vmatpush.bf16.msra.mxu0 %v4034_v7  ;;  %v3338_v24 = vld [vmem:[#allocation2 + $0x2c] sm:$0xf0]  ;;  %v3340_v26 = vld [vmem:[#allocation2 + $0x44] sm:$0xf]  ;;  %v4055_v27 = vor.u32 %v3349_v18, %v2935_v19  ;;  %v2895_v28 = vld [vmem:[#allocation2 + $0x50] sm:$0xf0] }
  0x35   :  { %v2901_v29 = vld [vmem:[#allocation2 + $0x48] sm:$0xf]  ;;  %v3343_v31 = vld [vmem:[#allocation2 + $0x54] sm:$0xf0]  ;;  %v3345_v32 = vld [vmem:[#allocation2 + $0x6c] sm:$0xf]  ;;  %v4058_v36 = vor.u32 %v3338_v24, %v2877_v23  ;;  %v4062_v38 = vor.u32 %v3340_v26, %v2895_v28 }
  0x36   :  { %576 = vmatpush.bf16.msra.mxu3 %v4031_v1  ;;  %v2919_v33 = vld [vmem:[#allocation2 + $0x78] sm:$0xf0]  ;;  %v2861_v37 = vld [vmem:[#allocation2] sm:$0xf]  ;;  %v4064_v40 = vor.u32 %v3343_v31, %v2901_v29  ;;  %v3334_v41 = vld [vmem:[#allocation2 + $0xc] sm:$0xf0] }
  0x37   :  { %552 = vmatpush.bf16.msrb.mxu1 %v4038_v8  ;;  %5370 = vst [vmem:[#allocation23_spill] sm:$0xff] %v4062_v38  ;;  %v3336_v42 = vld [vmem:[#allocation2 + $0x24] sm:$0xf]  ;;  %v2879_v43 = vld [vmem:[#allocation2 + $0x30] sm:$0xf0]  ;;  %v4067_v45 = vor.u32 %v3345_v32, %v2919_v33  ;;  %v4072_v54 = vor.u32 %v3334_v41, %v2861_v37  ;;  %v5208_v24 = vmov 0  }
  0x38   :  { %565 = vmatpush.bf16.msrb.mxu2 %v4040_v9  ;;  %541 = vmatpush.bf16.msra.mxu0 %v4046_v20  ;;  %v2885_v46 = vld [vmem:[#allocation2 + $0x28] sm:$0xf]  ;;  %v3339_v47 = vld [vmem:[#allocation2 + $0x34] sm:$0xf0]  ;;  %v3341_v49 = vld [vmem:[#allocation2 + $0x4c] sm:$0xf]  ;;  %v4076_v55 = vor.u32 %v3336_v42, %v2879_v43 }
  0x39   :  { %v2903_v50 = vld [vmem:[#allocation2 + $0x58] sm:$0xf0]  ;;  %v3101_v51 = vld [vmem:[#allocation7 + $0xe0] sm:$0xf]  ;;  %v3426_v53 = vld [vmem:[#allocation7 + $0xec] sm:$0xf0]  ;;  %v4078_v57 = vor.u32 %v3339_v47, %v2885_v46 }
  0x3a   :  { %577 = vmatpush.bf16.msra.mxu3 %v4043_v14  ;;  %5371 = vst [vmem:[#allocation24_spill] sm:$0xff] %v4072_v54  ;;  %v3332_v58 = vld [vmem:[#allocation2 + $0x4] sm:$0xf]  ;;  %v2863_v59 = vld [vmem:[#allocation2 + $0x10] sm:$0xf0]  ;;  %v4083_v3 = vor.u32 %v3426_v53, %v3101_v51 }
  0x3b   :  { %553 = vmatpush.bf16.msrb.mxu1 %v4050_v21  ;;  %2858 = vmatmul.msk.bf16.vlgmr.msrb.gmra.mxu3 %vm210_vm0, %v3996_v35  ;;  %v2869_v62 = vld [vmem:[#allocation2 + $0x8] sm:$0xf]  ;;  %v4081_v35 = vor.u32 %v3341_v49, %v2903_v50  ;;  %v3335_v63 = vld [vmem:[#allocation2 + $0x14] sm:$0xf0]  ;;  %v3337_v0 = vld [vmem:[#allocation2 + $0x2c] sm:$0xf]  ;;  %v4088_v15 = vor.u32 %v3332_v58, %v2863_v59 }
  0x3c   :  { %566 = vmatpush.bf16.msrb.mxu2 %v4052_v22  ;;  %542 = vmatpush.bf16.msra.mxu0 %v4058_v36  ;;  %v2887_v2 = vld [vmem:[#allocation2 + $0x38] sm:$0xf0]  ;;  %v3424_v4 = vld [vmem:[#allocation7 + $0xe4] sm:$0xf]  ;;  %v3103_v5 = vld [vmem:[#allocation7 + $0xf0] sm:$0xf0]  ;;  %v4090_v16 = vor.u32 %v3335_v63, %v2869_v62 }
  0x3d   :  { %5372 = vst [vmem:[#allocation25_spill] sm:$0xff] %v4081_v35  ;;  %v3109_v6 = vld [vmem:[#allocation7 + $0xe8] sm:$0xf]  ;;  %v3427_v10 = vld [vmem:[#allocation7 + $0xf4] sm:$0xf0]  ;;  %v4093_v17 = vor.u32 %v3337_v0, %v2887_v2  ;;  %v4096_v23 = vor.u32 %v3424_v4, %v3103_v5 }
  0x3e   :  { %578 = vmatpush.bf16.msra.mxu3 %v4055_v27  ;;  %v3085_v11 = vld [vmem:[#allocation7 + $0xc0] sm:$0xf]  ;;  %v3422_v13 = vld [vmem:[#allocation7 + $0xcc] sm:$0xf0]  ;;  %v3333_v18 = vld [vmem:[#allocation2 + $0xc] sm:$0xf]  ;;  %v4099_v26 = vor.u32 %v3427_v10, %v3109_v6 }
  0x3f   :  { %554 = vmatpush.bf16.msrb.mxu1 %v4062_v38  ;;  %5373 = vst [vmem:[#allocation26_spill] sm:$0xff] %v4093_v17  ;;  %v2871_v19 = vld [vmem:[#allocation2 + $0x18] sm:$0xf0]  ;;  %v3425_v28 = vld [vmem:[#allocation7 + $0xec] sm:$0xf]  ;;  %v4101_v29 = vor.u32 %v3422_v13, %v3085_v11 }
  0x40   :  { %567 = vmatpush.bf16.msrb.mxu2 %v4064_v40  ;;  %543 = vmatpush.bf16.msra.mxu0 %v4072_v54  ;;  %v3420_v31 = vld [vmem:[#allocation7 + $0xc4] sm:$0xf]  ;;  %v3087_v32 = vld [vmem:[#allocation7 + $0xd0] sm:$0xf0]  ;;  %v3111_v33 = vld [vmem:[#allocation7 + $0xf8] sm:$0xf0]  ;;  %v4106_v46 = vor.u32 %v3333_v18, %v2871_v19 }
  0x41   :  { %5374 = vst [vmem:[#allocation27_spill] sm:$0xff] %v4101_v29  ;;  %v3093_v37 = vld [vmem:[#allocation7 + $0xc8] sm:$0xf]  ;;  %v3423_v41 = vld [vmem:[#allocation7 + $0xd4] sm:$0xf0]  ;;  %v4109_v47 = vor.u32 %v3420_v31, %v3087_v32  ;;  %v4112_v51 = vor.u32 %v3425_v28, %v3111_v33 }
  0x42   :  { %579 = vmatpush.bf16.msra.mxu3 %v4067_v45  ;;  %v3069_v42 = vld [vmem:[#allocation7 + $0xa0] sm:$0xf]  ;;  %v3418_v43 = vld [vmem:[#allocation7 + $0xac] sm:$0xf0]  ;;  %v3421_v49 = vld [vmem:[#allocation7 + $0xcc] sm:$0xf]  ;;  %v4115_v53 = vor.u32 %v3423_v41, %v3093_v37 }
  0x43   :  { %555 = vmatpush.bf16.msrb.mxu1 %v4076_v55  ;;  %544 = vmatmul.bf16.vlgmr.msra.gmra.mxu0 %v5208_v24  ;;  %5375 = vst [vmem:[#allocation28_spill] sm:$0xff] %v4109_v47  ;;  %v3095_v50 = vld [vmem:[#allocation7 + $0xd8] sm:$0xf0]  ;;  %v3416_v58 = vld [vmem:[#allocation7 + $0xa4] sm:$0xf]  ;;  %v4119_v63 = vor.u32 %v3418_v43, %v3069_v42 }
  0x44   :  { %568 = vmatpush.bf16.msrb.mxu2 %v4078_v57  ;;  %771 = vmatpush.bf16.msrb.mxu0 %v4083_v3  ;;  %5376 = vst [vmem:[#allocation29_spill] sm:$0xff] %v4112_v51  ;;  %v3071_v59 = vld [vmem:[#allocation7 + $0xb0] sm:$0xf0]  ;;  %v3077_v62 = vld [vmem:[#allocation7 + $0xa8] sm:$0xf]  ;;  %v4127_v6 = vor.u32 %v3421_v49, %v3095_v50 }
  0x45   :  { %5377 = vst [vmem:[#allocation30_spill] sm:$0xff] %v4115_v53  ;;  %v3419_v0 = vld [vmem:[#allocation7 + $0xb4] sm:$0xf0]  ;;  %v3053_v2 = vld [vmem:[#allocation7 + $0x80] sm:$0xf]  ;;  %v4123_v5 = vor.u32 %v3416_v58, %v3071_v59 }
  0x46   :  { %580 = vmatpush.bf16.msra.mxu3 %v4081_v35  ;;  %5378 = vst [vmem:[#allocation31_spill] sm:$0xff] %v4119_v63  ;;  %v3414_v4 = vld [vmem:[#allocation7 + $0x8c] sm:$0xf0]  ;;  %v4129_v10 = vor.u32 %v3419_v0, %v3077_v62  ;;  %v3417_v11 = vld [vmem:[#allocation7 + $0xac] sm:$0xf] }
  0x47   :  { %556 = vmatpush.bf16.msrb.mxu1 %v4088_v15  ;;  %5379 = vst [vmem:[#allocation32_spill] sm:$0xff] %v4123_v5  ;;  %v3412_v13 = vld [vmem:[#allocation7 + $0x84] sm:$0xf]  ;;  %v3055_v18 = vld [vmem:[#allocation7 + $0x90] sm:$0xf0]  ;;  %v4132_v28 = vor.u32 %v3414_v4, %v3053_v2 }
  0x48   :  { %569 = vmatpush.bf16.msrb.mxu2 %v4090_v16  ;;  %772 = vmatpush.bf16.msrb.mxu0 %v4101_v29  ;;  %5380 = vst [vmem:[#allocation33_spill] sm:$0xff] %v4127_v6  ;;  %v3079_v19 = vld [vmem:[#allocation7 + $0xb8] sm:$0xf0]  ;;  %v3061_v31 = vld [vmem:[#allocation7 + $0x88] sm:$0xf]  ;;  %v4136_v41 = vor.u32 %v3412_v13, %v3055_v18 }
  0x49   :  { %5381 = vst [vmem:[#allocation34_spill] sm:$0xff] %v4129_v10  ;;  %v3415_v32 = vld [vmem:[#allocation7 + $0x94] sm:$0xf0]  ;;  %v3037_v33 = vld [vmem:[#allocation7 + $0x60] sm:$0xf]  ;;  %v4140_v42 = vor.u32 %v3417_v11, %v3079_v19 }
  0x4a   :  { %581 = vmatpush.bf16.msra.mxu3 %v4093_v17  ;;  %557 = vmatmul.bf16.vlgmr.msrb.gmra.mxu1 %v5208_v24  ;;  %5382 = vst [vmem:[#allocation35_spill] sm:$0xff] %v4132_v28  ;;  %v3410_v37 = vld [vmem:[#allocation7 + $0x6c] sm:$0xf0]  ;;  %v4142_v43 = vor.u32 %v3415_v32, %v3061_v31  ;;  %v3413_v49 = vld [vmem:[#allocation7 + $0x8c] sm:$0xf] }
  0x4b   :  { %784 = vmatpush.bf16.msra.mxu1 %v4096_v23  ;;  %570 = vmatmul.bf16.vlgmr.msrb.gmra.mxu2 %v5208_v24  ;;  %5383 = vst [vmem:[#allocation36_spill] sm:$0xff] %v4136_v41  ;;  %v3408_v50 = vld [vmem:[#allocation7 + $0x64] sm:$0xf]  ;;  %v3039_v58 = vld [vmem:[#allocation7 + $0x70] sm:$0xf0]  ;;  %v4145_v62 = vor.u32 %v3410_v37, %v3037_v33 }
  0x4c   :  { %797 = vmatpush.bf16.msra.mxu2 %v4099_v26  ;;  %773 = vmatpush.bf16.msrb.mxu0 %v4119_v63  ;;  %5384 = vst [vmem:[#allocation37_spill] sm:$0xff] %v4140_v42  ;;  %v3063_v59 = vld [vmem:[#allocation7 + $0x98] sm:$0xf0]  ;;  %v3045_v0 = vld [vmem:[#allocation7 + $0x68] sm:$0xf]  ;;  %v4148_v4 = vor.u32 %v3408_v50, %v3039_v58 }
  0x4d   :  { %5385 = vst [vmem:[#allocation38_spill] sm:$0xff] %v4142_v43  ;;  %v3411_v2 = vld [vmem:[#allocation7 + $0x74] sm:$0xf0]  ;;  %v4152_v11 = vor.u32 %v3413_v49, %v3063_v59  ;;  %v3409_v18 = vld [vmem:[#allocation7 + $0x6c] sm:$0xf] }
  0x4e   :  { %582 = vmatpush.bf16.msra.mxu3 %v4106_v46  ;;  %5386 = vst [vmem:[#allocation39_spill] sm:$0xff] %v4145_v62  ;;  %v4154_v13 = vor.u32 %v3411_v2, %v3045_v0  ;;  %v3047_v19 = vld [vmem:[#allocation7 + $0x78] sm:$0xf0]  ;;  %v3021_v32 = vld [vmem:[#allocation7 + $0x40] sm:$0xf] }
  0x4f   :  { %785 = vmatpush.bf16.msra.mxu1 %v4109_v47  ;;  %5387 = vst [vmem:[#allocation40_spill] sm:$0xff] %v4148_v4  ;;  %v4160_v31 = vor.u32 %v3409_v18, %v3047_v19  ;;  %v3406_v33 = vld [vmem:[#allocation7 + $0x4c] sm:$0xf0]  ;;  %v3404_v37 = vld [vmem:[#allocation7 + $0x44] sm:$0xf] }
  0x50   :  { %798 = vmatpush.bf16.msra.mxu2 %v4115_v53  ;;  %774 = vmatpush.bf16.msrb.mxu0 %v4132_v28  ;;  %5388 = vst [vmem:[#allocation41_spill] sm:$0xff] %v4152_v11  ;;  %v4163_v49 = vor.u32 %v3406_v33, %v3021_v32  ;;  %v3023_v50 = vld [vmem:[#allocation7 + $0x50] sm:$0xf0]  ;;  %v3029_v58 = vld [vmem:[#allocation7 + $0x48] sm:$0xf] }
  0x51   :  { %583 = vmatmul.bf16.vlgmr.msra.gmra.mxu3 %v5208_v24  ;;  %5389 = vst [vmem:[#allocation42_spill] sm:$0xff] %v4154_v13  ;;  %v3407_v59 = vld [vmem:[#allocation7 + $0x54] sm:$0xf0]  ;;  %v4165_v0 = vor.u32 %v3404_v37, %v3023_v50  ;;  %v3405_v24 = vld [vmem:[#allocation7 + $0x4c] sm:$0xf] }
  0x52   :  { %810 = vmatpush.bf16.msrb.mxu3 %v4112_v51  ;;  %5390 = vst [vmem:[#allocation43_spill] sm:$0xff] %v4160_v31  ;;  %v4167_v2 = vor.u32 %v3407_v59, %v3029_v58  ;;  %v3005_v19 = vld [vmem:[#allocation7 + $0x20] sm:$0xf]  ;;  %v3007_v33 = vld [vmem:[#allocation7 + $0x30] sm:$0xf0] }
  0x53   :  { %786 = vmatpush.bf16.msra.mxu1 %v4123_v5  ;;  %5391 = vst [vmem:[#allocation44_spill] sm:$0xff] %v4163_v49  ;;  %v3013_v37 = vld [vmem:[#allocation7 + $0x28] sm:$0xf]  ;;  %v3403_v50 = vld [vmem:[#allocation7 + $0x34] sm:$0xf0] }
  0x54   :  { %799 = vmatpush.bf16.msra.mxu2 %v4129_v10  ;;  %775 = vmatpush.bf16.msrb.mxu0 %v4145_v62  ;;  %5392 = vst [vmem:[#allocation45_spill] sm:$0xff] %v4165_v0  ;;  %v4179_v59 = vor.u32 %v3403_v50, %v3013_v37  ;;  %v3399_v37 = vld [vmem:[#allocation7 + $0x14] sm:$0xf0]  ;;  %v3392_v62 = vld [vmem:[#allocation5 + $0xe4] sm:$0xf] }
  0x55   :  { %5393 = vst [vmem:[#allocation46_spill] sm:$0xff] %v4167_v2 }
  0x56   :  { %811 = vmatpush.bf16.msrb.mxu3 %v4127_v6  ;;  %5397 = vst [vmem:[#allocation50_spill] sm:$0xff] %v4179_v59 }
  0x57   :  { %787 = vmatpush.bf16.msra.mxu1 %v4136_v41 }
  0x58   :  { %800 = vmatpush.bf16.msra.mxu2 %v4142_v43  ;;  %776 = vmatpush.bf16.msrb.mxu0 %v4163_v49  ;;  %v3366_v43 = vld [vmem:[#allocation5 + $0xc] sm:$0xf0] }
  0x5a   :  { %812 = vmatpush.bf16.msrb.mxu3 %v4140_v42 }
  0x5b   :  { %788 = vmatpush.bf16.msra.mxu1 %v4148_v4  ;;  %v3031_v4 = vld [vmem:[#allocation7 + $0x58] sm:$0xf0] }
  0x5c   :  { %801 = vmatpush.bf16.msra.mxu2 %v4154_v13  ;;  %v4170_v18 = vor.u32 %v3405_v24, %v3031_v4  ;;  %v3400_v13 = vld [vmem:[#allocation7 + $0x24] sm:$0xf]  ;;  %v3401_v24 = vld [vmem:[#allocation7 + $0x2c] sm:$0xf]  ;;  %v3015_v4 = vld [vmem:[#allocation7 + $0x38] sm:$0xf0] }
  0x5d   :  { %v4177_v58 = vor.u32 %v3400_v13, %v3007_v33  ;;  %v4181_v49 = vor.u32 %v3401_v24, %v3015_v4  ;;  %v2991_v13 = vld [vmem:[#allocation7 + $0x10] sm:$0xf0]  ;;  %v2997_v33 = vld [vmem:[#allocation7 + $0x8] sm:$0xf]  ;;  %v3397_v4 = vld [vmem:[#allocation7 + $0xc] sm:$0xf] }
  0x5e   :  { %813 = vmatpush.bf16.msrb.mxu3 %v4152_v11  ;;  %5394 = vst [vmem:[#allocation47_spill] sm:$0xff] %v4170_v18  ;;  %v4191_v24 = vor.u32 %v3399_v37, %v2997_v33  ;;  %v3231_v11 = vld [vmem:[#allocation5 + $0xf0] sm:$0xf0]  ;;  %v3393_v33 = vld [vmem:[#allocation5 + $0xec] sm:$0xf] }
  0x5f   :  { %789 = vmatpush.bf16.msra.mxu1 %v4165_v0  ;;  %5396 = vst [vmem:[#allocation49_spill] sm:$0xff] %v4177_v58  ;;  %v3229_v0 = vld [vmem:[#allocation5 + $0xe0] sm:$0xf] }
  0x60   :  { %802 = vmatpush.bf16.msra.mxu2 %v4167_v2  ;;  %5398 = vst [vmem:[#allocation51_spill] sm:$0xff] %v4181_v49  ;;  %v3396_v2 = vld [vmem:[#allocation7 + $0x4] sm:$0xf] }
  0x61   :  { %v4189_v50 = vor.u32 %v3396_v2, %v2991_v13  ;;  %5401 = vst [vmem:[#allocation54_spill] sm:$0xff] %v4191_v24  ;;  %v4200_v2 = vor.u32 %v3392_v62, %v3231_v11  ;;  %v3395_v13 = vld [vmem:[#allocation5 + $0xf4] sm:$0xf0]  ;;  %v3388_v62 = vld [vmem:[#allocation5 + $0xc4] sm:$0xf] }
  0x62   :  { %814 = vmatpush.bf16.msrb.mxu3 %v4160_v31  ;;  %v3402_v31 = vld [vmem:[#allocation7 + $0x2c] sm:$0xf0]  ;;  %v3215_v11 = vld [vmem:[#allocation5 + $0xd0] sm:$0xf0] }
  0x63   :  { %v4174_v32 = vor.u32 %v3402_v31, %v3005_v19  ;;  %790 = vmatpush.bf16.msra.mxu1 %v4177_v58  ;;  %v2989_v31 = vld [vmem:[#allocation7] sm:$0xf]  ;;  %v3398_v19 = vld [vmem:[#allocation7 + $0xc] sm:$0xf0]  ;;  %5400 = vst [vmem:[#allocation53_spill] sm:$0xff] %v4189_v50 }
  0x64   :  { %803 = vmatpush.bf16.msra.mxu2 %v4179_v59  ;;  %v3394_v58 = vld [vmem:[#allocation5 + $0xec] sm:$0xf0]  ;;  %5404 = vst [vmem:[#allocation57_spill] sm:$0xff] %v4200_v2 }
  0x65   :  { %5395 = vst [vmem:[#allocation48_spill] sm:$0xff] %v4174_v32  ;;  %777 = vmatpush.bf16.msrb.mxu0 %v4174_v32  ;;  %v2999_v32 = vld [vmem:[#allocation7 + $0x18] sm:$0xf0] }
  0x66   :  { %815 = vmatpush.bf16.msrb.mxu3 %v4170_v18  ;;  %v4187_v18 = vor.u32 %v3398_v19, %v2989_v31  ;;  %v4194_v59 = vor.u32 %v3397_v4, %v2999_v32  ;;  %v4198_v31 = vor.u32 %v3394_v58, %v3229_v0  ;;  %v3237_v19 = vld [vmem:[#allocation5 + $0xe8] sm:$0xf]  ;;  %v3239_v32 = vld [vmem:[#allocation5 + $0xf8] sm:$0xf0]  ;;  %v3213_v4 = vld [vmem:[#allocation5 + $0xc0] sm:$0xf] }
  0x67   :  { %791 = vmatpush.bf16.msra.mxu1 %v4189_v50  ;;  %v4203_v37 = vor.u32 %v3395_v13, %v3237_v19  ;;  %v4207_v50 = vor.u32 %v3393_v33, %v3239_v32  ;;  %v3221_v58 = vld [vmem:[#allocation5 + $0xc8] sm:$0xf]  ;;  %v3391_v19 = vld [vmem:[#allocation5 + $0xd4] sm:$0xf0]  ;;  %v3389_v13 = vld [vmem:[#allocation5 + $0xcc] sm:$0xf] }
  0x68   :  { %5399 = vst [vmem:[#allocation52_spill] sm:$0xff] %v4187_v18  ;;  %804 = vmatpush.bf16.msra.mxu2 %v4191_v24  ;;  %v4212_v24 = vor.u32 %v3388_v62, %v3215_v11  ;;  %v3386_v32 = vld [vmem:[#allocation5 + $0xac] sm:$0xf0]  ;;  %v3199_v11 = vld [vmem:[#allocation5 + $0xb0] sm:$0xf0] }
  0x69   :  { %778 = vmatpush.bf16.msrb.mxu0 %v4187_v18  ;;  %5402 = vst [vmem:[#allocation55_spill] sm:$0xff] %v4194_v59  ;;  %v3390_v18 = vld [vmem:[#allocation5 + $0xcc] sm:$0xf0] }
  0x6a   :  { %816 = vmatpush.bf16.msrb.mxu3 %v4181_v49  ;;  %5403 = vst [vmem:[#allocation56_spill] sm:$0xff] %v4198_v31  ;;  %v4209_v0 = vor.u32 %v3390_v18, %v3213_v4  ;;  %v5409_v49 = vmov 0   ;;  %v3197_v18 = vld [vmem:[#allocation5 + $0xa0] sm:$0xf]  ;;  %v3384_v4 = vld [vmem:[#allocation5 + $0xa4] sm:$0xf] }
  0x6b   :  { %5405 = vst [vmem:[#allocation58_spill] sm:$0xff] %v4203_v37  ;;  %996 = vmatpush.bf16.msrb.mxu1 %v4200_v2  ;;  %805 = vmatmul.bf16.vlgmr.msra.gmra.mxu2 %v5409_v49  ;;  %v4225_v62 = vor.u32 %v3386_v32, %v3197_v18  ;;  %v3382_v2 = vld [vmem:[#allocation5 + $0x8c] sm:$0xf0]  ;;  %v3183_v32 = vld [vmem:[#allocation5 + $0x90] sm:$0xf0] }
  0x6c   :  { %5406 = vst [vmem:[#allocation59_spill] sm:$0xff] %v4207_v50  ;;  %1009 = vmatpush.bf16.msrb.mxu2 %v4203_v37  ;;  %779 = vmatmul.bf16.vlgmr.msrb.gmra.mxu0 %v5409_v49  ;;  %v3207_v37 = vld [vmem:[#allocation5 + $0xb8] sm:$0xf0] }
  0x6d   :  { %983 = vmatpush.bf16.msra.mxu0 %v4198_v31  ;;  %5407 = vst [vmem:[#allocation60_spill] sm:$0xff] %v4209_v0  ;;  %v4216_v31 = vor.u32 %v3391_v19, %v3221_v58  ;;  %792 = vmatmul.bf16.vlgmr.msra.gmra.mxu1 %v5409_v49  ;;  %v3205_v58 = vld [vmem:[#allocation5 + $0xa8] sm:$0xf]  ;;  %v3387_v19 = vld [vmem:[#allocation5 + $0xb4] sm:$0xf0] }
  0x6e   :  { %817 = vmatpush.bf16.msrb.mxu3 %v4194_v59  ;;  %5408 = vst [vmem:[#allocation61_spill] sm:$0xff] %v4212_v24  ;;  %v3223_v59 = vld [vmem:[#allocation5 + $0xd8] sm:$0xf0] }
  0x6f   :  { %5410 = vst [vmem:[#allocation62_spill] sm:$0xff] %v4216_v31  ;;  %v4218_v33 = vor.u32 %v3389_v13, %v3223_v59  ;;  %997 = vmatpush.bf16.msrb.mxu1 %v4212_v24  ;;  %v4228_v59 = vor.u32 %v3384_v4, %v3199_v11  ;;  %v4230_v13 = vor.u32 %v3387_v19, %v3205_v58  ;;  %v3380_v24 = vld [vmem:[#allocation5 + $0x84] sm:$0xf]  ;;  %v3189_v4 = vld [vmem:[#allocation5 + $0x88] sm:$0xf] }
  0x70   :  { %5412 = vst [vmem:[#allocation64_spill] sm:$0xff] %v4225_v62  ;;  %1010 = vmatpush.bf16.msrb.mxu2 %v4216_v31  ;;  %v3383_v11 = vld [vmem:[#allocation5 + $0x94] sm:$0xf0]  ;;  %v4240_v58 = vor.u32 %v3380_v24, %v3183_v32  ;;  %v3378_v31 = vld [vmem:[#allocation5 + $0x6c] sm:$0xf0] }
  0x71   :  { %5411 = vst [vmem:[#allocation63_spill] sm:$0xff] %v4218_v33  ;;  %818 = vmatmul.bf16.vlgmr.msrb.gmra.mxu3 %v5409_v49  ;;  %984 = vmatpush.bf16.msra.mxu0 %v4209_v0  ;;  %v3181_v0 = vld [vmem:[#allocation5 + $0x80] sm:$0xf]  ;;  %v4242_v19 = vor.u32 %v3383_v11, %v3189_v4  ;;  %v3173_v24 = vld [vmem:[#allocation5 + $0x68] sm:$0xf] }
  0x72   :  { %1022 = vmatpush.bf16.msra.mxu3 %v4207_v50  ;;  %5413 = vst [vmem:[#allocation65_spill] sm:$0xff] %v4228_v59  ;;  %v3385_v50 = vld [vmem:[#allocation5 + $0xac] sm:$0xf]  ;;  %v4237_v18 = vor.u32 %v3382_v2, %v3181_v0  ;;  %v3167_v0 = vld [vmem:[#allocation5 + $0x70] sm:$0xf0] }
  0x73   :  { %5414 = vst [vmem:[#allocation66_spill] sm:$0xff] %v4230_v13  ;;  %v4233_v49 = vor.u32 %v3385_v50, %v3207_v37  ;;  %998 = vmatpush.bf16.msrb.mxu1 %v4228_v59  ;;  %v3381_v50 = vld [vmem:[#allocation5 + $0x8c] sm:$0xf]  ;;  %v3191_v37 = vld [vmem:[#allocation5 + $0x98] sm:$0xf0] }
  0x74   :  { %5416 = vst [vmem:[#allocation68_spill] sm:$0xff] %v4237_v18  ;;  %1011 = vmatpush.bf16.msrb.mxu2 %v4230_v13  ;;  %v3376_v59 = vld [vmem:[#allocation5 + $0x64] sm:$0xf]  ;;  %v3379_v32 = vld [vmem:[#allocation5 + $0x74] sm:$0xf0] }
  0x75   :  { %5415 = vst [vmem:[#allocation67_spill] sm:$0xff] %v4233_v49  ;;  %985 = vmatpush.bf16.msra.mxu0 %v4225_v62  ;;  %v3165_v62 = vld [vmem:[#allocation5 + $0x60] sm:$0xf]  ;;  %v4252_v4 = vor.u32 %v3376_v59, %v3167_v0  ;;  %v4254_v11 = vor.u32 %v3379_v32, %v3173_v24  ;;  %v3374_v13 = vld [vmem:[#allocation5 + $0x4c] sm:$0xf0] }
  0x76   :  { %1023 = vmatpush.bf16.msra.mxu3 %v4218_v33  ;;  %5417 = vst [vmem:[#allocation69_spill] sm:$0xff] %v4240_v58  ;;  %v4245_v33 = vor.u32 %v3381_v50, %v3191_v37  ;;  %v4249_v2 = vor.u32 %v3378_v31, %v3165_v62  ;;  %v3377_v50 = vld [vmem:[#allocation5 + $0x6c] sm:$0xf]  ;;  %v3175_v37 = vld [vmem:[#allocation5 + $0x78] sm:$0xf0] }
  0x77   :  { %5418 = vst [vmem:[#allocation70_spill] sm:$0xff] %v4242_v19  ;;  %999 = vmatpush.bf16.msrb.mxu1 %v4240_v58  ;;  %v3372_v58 = vld [vmem:[#allocation5 + $0x44] sm:$0xf]  ;;  %v3151_v62 = vld [vmem:[#allocation5 + $0x50] sm:$0xf0] }
  0x78   :  { %5419 = vst [vmem:[#allocation71_spill] sm:$0xff] %v4245_v33  ;;  %1012 = vmatpush.bf16.msrb.mxu2 %v4242_v19  ;;  %v3157_v59 = vld [vmem:[#allocation5 + $0x48] sm:$0xf]  ;;  %v3375_v0 = vld [vmem:[#allocation5 + $0x54] sm:$0xf0]  ;;  %v4264_v24 = vor.u32 %v3372_v58, %v3151_v62 }
  0x79   :  { %986 = vmatpush.bf16.msra.mxu0 %v4237_v18  ;;  %5420 = vst [vmem:[#allocation72_spill] sm:$0xff] %v4249_v2  ;;  %v3149_v18 = vld [vmem:[#allocation5 + $0x40] sm:$0xf]  ;;  %v4266_v32 = vor.u32 %v3375_v0, %v3157_v59  ;;  %v3135_v58 = vld [vmem:[#allocation5 + $0x30] sm:$0xf0] }
  0x7a   :  { %1024 = vmatpush.bf16.msra.mxu3 %v4233_v49  ;;  %5421 = vst [vmem:[#allocation73_spill] sm:$0xff] %v4252_v4  ;;  %v4257_v49 = vor.u32 %v3377_v50, %v3175_v37  ;;  %v4261_v31 = vor.u32 %v3374_v13, %v3149_v18  ;;  %v3373_v50 = vld [vmem:[#allocation5 + $0x4c] sm:$0xf]  ;;  %v3159_v37 = vld [vmem:[#allocation5 + $0x58] sm:$0xf0] }
  0x7b   :  { %5422 = vst [vmem:[#allocation74_spill] sm:$0xff] %v4254_v11  ;;  %1000 = vmatpush.bf16.msrb.mxu1 %v4252_v4  ;;  %v3133_v19 = vld [vmem:[#allocation5 + $0x20] sm:$0xf]  ;;  %v3370_v4 = vld [vmem:[#allocation5 + $0x2c] sm:$0xf0] }
  0x7c   :  { %5423 = vst [vmem:[#allocation75_spill] sm:$0xff] %v4257_v49  ;;  %1013 = vmatpush.bf16.msrb.mxu2 %v4254_v11  ;;  %v3368_v13 = vld [vmem:[#allocation5 + $0x24] sm:$0xf]  ;;  %v4273_v18 = vor.u32 %v3370_v4, %v3133_v19  ;;  %v3141_v62 = vld [vmem:[#allocation5 + $0x28] sm:$0xf] }
  0x7d   :  { %987 = vmatpush.bf16.msra.mxu0 %v4249_v2  ;;  %5424 = vst [vmem:[#allocation76_spill] sm:$0xff] %v4261_v31  ;;  %v3371_v59 = vld [vmem:[#allocation5 + $0x34] sm:$0xf0]  ;;  %v4276_v0 = vor.u32 %v3368_v13, %v3135_v58  ;;  %v3119_v4 = vld [vmem:[#allocation5 + $0x10] sm:$0xf0] }
  0x7e   :  { %1025 = vmatpush.bf16.msra.mxu3 %v4245_v33  ;;  %5425 = vst [vmem:[#allocation77_spill] sm:$0xff] %v4264_v24  ;;  %v4269_v33 = vor.u32 %v3373_v50, %v3159_v37  ;;  %v3369_v50 = vld [vmem:[#allocation5 + $0x2c] sm:$0xf]  ;;  %v3143_v37 = vld [vmem:[#allocation5 + $0x38] sm:$0xf0] }
  0x7f   :  { %5426 = vst [vmem:[#allocation78_spill] sm:$0xff] %v4266_v32  ;;  %1001 = vmatpush.bf16.msrb.mxu1 %v4264_v24  ;;  %v4281_v11 = vor.u32 %v3369_v50, %v3143_v37  ;;  %v3364_v24 = vld [vmem:[#allocation5 + $0x4] sm:$0xf]  ;;  %v3125_v13 = vld [vmem:[#allocation5 + $0x8] sm:$0xf] }
  0x80   :  { %5427 = vst [vmem:[#allocation79_spill] sm:$0xff] %v4269_v33  ;;  %1014 = vmatpush.bf16.msrb.mxu2 %v4266_v32  ;;  %v3367_v58 = vld [vmem:[#allocation5 + $0x14] sm:$0xf0]  ;;  %v3365_v50 = vld [vmem:[#allocation5 + $0xc] sm:$0xf] }
  0x81   :  { %988 = vmatpush.bf16.msra.mxu0 %v4261_v31  ;;  %5428 = vst [vmem:[#allocation80_spill] sm:$0xff] %v4273_v18  ;;  %v3117_v31 = vld [vmem:[#allocation5] sm:$0xf]  ;;  %v3127_v37 = vld [vmem:[#allocation5 + $0x18] sm:$0xf0] }
  0x82   :  { %1026 = vmatpush.bf16.msra.mxu3 %v4257_v49  ;;  %5429 = vst [vmem:[#allocation81_spill] sm:$0xff] %v4276_v0  ;;  %v4278_v49 = vor.u32 %v3371_v59, %v3141_v62  ;;  %v4285_v19 = vor.u32 %v3366_v43, %v3117_v31  ;;  %v4288_v59 = vor.u32 %v3364_v24, %v3119_v4  ;;  %v4304_v43 = vld [vmem:[%s5196_s2] sm:$0xf] }
  0x83   :  { %5431 = vst [vmem:[#allocation83_spill] sm:$0xff] %v4281_v11  ;;  %1002 = vmatpush.bf16.msrb.mxu1 %v4276_v0  ;;  %v4293_v32 = vor.u32 %v3365_v50, %v3127_v37  ;;  %v5298_v24 = vperm.slane %v4304_v43, 0  ;;  %v5303_v50 = vperm.slane %v4304_v43, 1 }
  0x84   :  { %5430 = vst [vmem:[#allocation82_spill] sm:$0xff] %v4278_v49  ;;  %1015 = vmatpush.bf16.msrb.mxu2 %v4278_v49 }
  0x85   :  { %989 = vmatpush.bf16.msra.mxu0 %v4273_v18  ;;  %5432 = vst [vmem:[#allocation84_spill] sm:$0xff] %v4285_v19 }
  0x86   :  { %1027 = vmatpush.bf16.msra.mxu3 %v4269_v33  ;;  %5433 = vst [vmem:[#allocation85_spill] sm:$0xff] %v4288_v59  ;;  %v4290_v33 = vor.u32 %v3367_v58, %v3125_v13 }
  0x87   :  { %5435 = vst [vmem:[#allocation87_spill] sm:$0xff] %v4293_v32  ;;  %1003 = vmatpush.bf16.msrb.mxu1 %v4288_v59 }
  0x88   :  { %5434 = vst [vmem:[#allocation86_spill] sm:$0xff] %v4290_v33  ;;  %1016 = vmatpush.bf16.msrb.mxu2 %v4290_v33 }
  0x89   :  { %990 = vmatpush.bf16.msra.mxu0 %v4285_v19  ;;  %5437 = vst [vmem:[#allocation89_spill] sm:$0xff] %v4304_v43 }
  0x8a   :  { %1028 = vmatpush.bf16.msra.mxu3 %v4281_v11 }
  0x8b   :  { %1070 = vmatpush.bf16.msra.mxu1 %v3986_v30 }
  0x8c   :  { %1083 = vmatpush.bf16.msra.mxu2 %v3994_v34 }
  0x8d   :  { %1057 = vmatpush.bf16.msrb.mxu0 %v3960_v12 }
  0x8e   :  { %1029 = vmatpush.bf16.msra.mxu3 %v4293_v32 }
  0x8f   :  { %1071 = vmatpush.bf16.msra.mxu1 %v4009_v44 }
  0x90   :  { %1084 = vmatpush.bf16.msra.mxu2 %v4013_v48 }
  0x91   :  { %1058 = vmatpush.bf16.msrb.mxu0 %v3984_v25 }
  0x92   :  { %1096 = vmatpush.bf16.msrb.mxu3 %v4017_v52 }
  0x93   :  { %1072 = vmatpush.bf16.msra.mxu1 %v4026_v60 }
  0x94   :  { %1085 = vmatpush.bf16.msra.mxu2 %v4028_v61 }
  0x95   :  { %1059 = vmatpush.bf16.msrb.mxu0 %v4002_v39 }
  0x96   :  { %1097 = vmatpush.bf16.msrb.mxu3 %v4031_v1 }
  0x97   :  { %1073 = vmatpush.bf16.msra.mxu1 %v4038_v8 }
  0x98   :  { %1086 = vmatpush.bf16.msra.mxu2 %v4040_v9 }
  0x99   :  { %1060 = vmatpush.bf16.msrb.mxu0 %v4022_v56 }
  0x9a   :  { %1098 = vmatpush.bf16.msrb.mxu3 %v4043_v14 }
  0x9b   :  { %1074 = vmatpush.bf16.msra.mxu1 %v4050_v21 }
  0x9c   :  { %1087 = vmatpush.bf16.msra.mxu2 %v4052_v22 }
  0x9d   :  { %1061 = vmatpush.bf16.msrb.mxu0 %v4034_v7 }
  0x9e   :  { %1099 = vmatpush.bf16.msrb.mxu3 %v4055_v27 }
  0x9f   :  { %1075 = vmatpush.bf16.msra.mxu1 %v4062_v38 }
  0xa0   :  { %1088 = vmatpush.bf16.msra.mxu2 %v4064_v40 }
  0xa1   :  { %1062 = vmatpush.bf16.msrb.mxu0 %v4046_v20 }
  0xa2   :  { %1100 = vmatpush.bf16.msrb.mxu3 %v4067_v45 }
  0xa3   :  { %1076 = vmatpush.bf16.msra.mxu1 %v4076_v55 }
  0xa4   :  { %1089 = vmatpush.bf16.msra.mxu2 %v4078_v57 }
  0xa5   :  { %1063 = vmatpush.bf16.msrb.mxu0 %v4058_v36 }
  0xa6   :  { %1101 = vmatpush.bf16.msrb.mxu3 %v4081_v35 }
  0xa7   :  { %v237_v62 = vpop.f32.mrf.mxu1  ;;  %1077 = vmatpush.bf16.msra.mxu1 %v4088_v15 }
  0xa8   :  { %1090 = vmatpush.bf16.msra.mxu2 %v4090_v16 }
  0xa9   :  { %1064 = vmatpush.bf16.msrb.mxu0 %v4072_v54 }
  0xaa   :  { %1102 = vmatpush.bf16.msrb.mxu3 %v4093_v17 }
  0xae   :  { %v223_v2 = vpop.f32.mrf.mxu3  ;;  %1103 = vmatpush.bf16.msrb.mxu3 %v4106_v46 }
  0xaf   :  { %v4313_v4 = vpop.f32.mrf.mxu1  ;;  %v4319_v58 = vadd.f32 %v223_v2, %v5298_v24  ;;  %v4332_v2 = vadd.f32 %v237_v62, %v5303_v50 }
  0xb0   :  { %v251_v31 = vpop.f32.mrf.mxu2  ;;  %5438 = vst [vmem:[#allocation90_spill] sm:$0xff] %v4313_v4 }
  0xb1   :  { %5440 = vst [vmem:[#allocation92_spill] sm:$0xff] %v4332_v2 }
  0xb6   :  { %v4295_v18 = vpop.f32.mrf.mxu3 }
  0xb7   :  { %5436 = vst [vmem:[#allocation88_spill] sm:$0xff] %v4295_v18 }
  0xb8   :  { %v4327_v4 = vpop.f32.mrf.mxu2 }
  0xb9   :  { %5439 = vst [vmem:[#allocation91_spill] sm:$0xff] %v4327_v4 }
  0xbe   :  { %v265_v13 = vpop.f32.mrf.mxu3 }
  0xc0   :  { %v545_v37 = vpop.f32.mrf.mxu0 }
  0xc1   :  { %v588_v18 = vadd.f32 %v545_v37, %v4319_v58  ;;  %v5304_v37 = vperm.slane %v4304_v43, 2 }
  0xc3   :  { %v592_v1 = vmul.f32 0.5, %v588_v18  ;;  %v4347_v62 = vadd.f32 %v251_v31, %v5304_v37 }
  0xc5   :  { %3464 = vtanh.f32 %v592_v1  ;;  %v5311_v1 = vperm.slane %v4304_v43, 3 }
  0xc6   :  { %v4340_v4 = vpop.f32.mrf.mxu3 }
  0xc7   :  { %v558_v24 = vpop.f32.mrf.mxu1  ;;  %5441 = vst [vmem:[#allocation93_spill] sm:$0xff] %v4340_v4  ;;  %v4357_v31 = vadd.f32 %v265_v13, %v5311_v1 }
  0xc8   :  { %v589_v14 = vadd.f32 %v558_v24, %v4332_v2  ;;  %v547_v56 = vpop.f32.mrf.mxu0 }
  0xca   :  { %v596_v18 = vmul.f32 0.5, %v589_v14 }
  0xcb   :  { %v3465_v14 = vpop.eup %3464 }
  0xcc   :  { %3466 = vtanh.f32 %v596_v18  ;;  %v594_v18 = vmul.f32 0.5, %v3465_v14 }
  0xce   :  { %v571_v24 = vpop.f32.mrf.mxu2 }
  0xcf   :  { %v590_v50 = vadd.f32 %v571_v24, %v4347_v62  ;;  %v560_v56 = vpop.f32.mrf.mxu1 }
  0xd0   :  { %v595_v56 = vadd.f32 0.5, %v594_v18 }
  0xd1   :  { %3468 = vtanh.f32 %v590_v50 }
  0xd2   :  { %v3467_v37 = vpop.eup %3466 }
  0xd3   :  { %v598_v24 = vmul.f32 0.5, %v3467_v37 }
  0xd4   :  { %v584_v4 = vpop.f32.mrf.mxu3 }
  0xd5   :  { %v591_v38 = vadd.f32 %v584_v4, %v4357_v31  ;;  %v599_v50 = vadd.f32 0.5, %v598_v24 }
  0xd6   :  { %v573_v43 = vpop.f32.mrf.mxu2 }
  0xd7   :  { %v601_v35 = vmul.f32 0.5, %v591_v38  ;;  %v3469_v13 = vpop.eup %3468  ;;  %v605_v14 = vmul.f32 0.0, %v599_v50  ;;  %v5446_v50 = vld [vmem:[#allocation42_spill] sm:$0xff] }
  0xd8   :  { %v606_v1 = vmul.f32 %v3469_v13, %v595_v56  ;;  %v5445_v56 = vld [vmem:[#allocation40_spill] sm:$0xff]  ;;  %v5447_v13 = vld [vmem:[#allocation43_spill] sm:$0xff] }
  0xd9   :  { %3470 = vtanh.f32 %v601_v35  ;;  %v5443_v35 = vld [vmem:[#allocation41_spill] sm:$0xff] }
  0xda   :  { %v4368_v4 = vadd.f32 %v606_v1, %v605_v14  ;;  %v5444_v1 = vld [vmem:[#allocation39_spill] sm:$0xff]  ;;  %v5448_v14 = vld [vmem:[#allocation44_spill] sm:$0xff] }
  0xdc   :  { %v586_v37 = vpop.f32.mrf.mxu3  ;;  %3472 = vtanh.f32 %v4368_v4 }
  0xdd   :  { %v5449_v37 = vld [vmem:[#allocation45_spill] sm:$0xff] }
  0xdf   :  { %v3471_v18 = vpop.eup %3470 }
  0xe0   :  { %v603_v38 = vmul.f32 0.5, %v3471_v18  ;;  %v5450_v18 = vld [vmem:[#allocation46_spill] sm:$0xff] }
  0xe2   :  { %v604_v43 = vadd.f32 0.5, %v603_v38  ;;  %v3473_v24 = vpop.eup %3472  ;;  %v5451_v38 = vld [vmem:[#allocation47_spill] sm:$0xff] }
  0xe4   :  { %v609_v54 = vmul.f32 %v3473_v24, %v604_v43  ;;  %v5452_v43 = vld [vmem:[#allocation48_spill] sm:$0xff]  ;;  %v5453_v24 = vld [vmem:[#allocation49_spill] sm:$0xff] }
  0xe6   :  { %v610_v17 = vpack.c.bf16 %v609_v54, %v609_v54  ;;  %v5442_v54 = vld [vmem:[#allocation38_spill] sm:$0xff] }
  0xe8   :  { %991 = vmatmul.bf16.vlgmr.msra.gmra.mxu0 %v610_v17  ;;  %1004 = vmatmul.bf16.vlgmr.msrb.gmra.mxu1 %v610_v17 }
  0xe9   :  { %1017 = vmatmul.bf16.vlgmr.msrb.gmra.mxu2 %v610_v17  ;;  %1030 = vmatmul.bf16.vlgmr.msra.gmra.mxu3 %v610_v17 }
  0xea   :  { %1148 = vmatpush.bf16.msra.mxu0 %v4083_v3  ;;  %1161 = vmatpush.bf16.msrb.mxu1 %v4096_v23 }
  0xeb   :  { %1174 = vmatpush.bf16.msrb.mxu2 %v4099_v26  ;;  %1187 = vmatpush.bf16.msra.mxu3 %v4112_v51 }
  0xee   :  { %1149 = vmatpush.bf16.msra.mxu0 %v4101_v29  ;;  %1162 = vmatpush.bf16.msrb.mxu1 %v4109_v47 }
  0xef   :  { %1175 = vmatpush.bf16.msrb.mxu2 %v4115_v53  ;;  %1188 = vmatpush.bf16.msra.mxu3 %v4127_v6 }
  0xf2   :  { %1150 = vmatpush.bf16.msra.mxu0 %v4119_v63  ;;  %1163 = vmatpush.bf16.msrb.mxu1 %v4123_v5 }
  0xf3   :  { %1176 = vmatpush.bf16.msrb.mxu2 %v4129_v10  ;;  %1189 = vmatpush.bf16.msra.mxu3 %v4140_v42 }
  0xf6   :  { %1151 = vmatpush.bf16.msra.mxu0 %v4132_v28  ;;  %1164 = vmatpush.bf16.msrb.mxu1 %v4136_v41 }
  0xf7   :  { %1177 = vmatpush.bf16.msrb.mxu2 %v5442_v54  ;;  %1190 = vmatpush.bf16.msra.mxu3 %v5443_v35  ;;  %v5482_v35 = vld [vmem:[#allocation78_spill] sm:$0xff] }
  0xf8   :  { %1065 = vmatmul.bf16.vlgmr.msrb.gmra.mxu0 %v610_v17  ;;  %1078 = vmatmul.bf16.vlgmr.msra.gmra.mxu1 %v610_v17 }
  0xf9   :  { %1091 = vmatmul.bf16.vlgmr.msra.gmra.mxu2 %v610_v17  ;;  %1104 = vmatmul.bf16.vlgmr.msrb.gmra.mxu3 %v610_v17  ;;  %v5454_v17 = vld [vmem:[#allocation50_spill] sm:$0xff] }
  0xfa   :  { %1152 = vmatpush.bf16.msra.mxu0 %v5444_v1  ;;  %1165 = vmatpush.bf16.msrb.mxu1 %v5445_v56  ;;  %v5455_v1 = vld [vmem:[#allocation51_spill] sm:$0xff]  ;;  %v5456_v56 = vld [vmem:[#allocation52_spill] sm:$0xff] }
  0xfb   :  { %1178 = vmatpush.bf16.msrb.mxu2 %v5446_v50  ;;  %1191 = vmatpush.bf16.msra.mxu3 %v5447_v13  ;;  %v5457_v50 = vld [vmem:[#allocation53_spill] sm:$0xff]  ;;  %v5458_v13 = vld [vmem:[#allocation54_spill] sm:$0xff] }
  0xfe   :  { %1153 = vmatpush.bf16.msra.mxu0 %v5448_v14  ;;  %1166 = vmatpush.bf16.msrb.mxu1 %v5449_v37  ;;  %v5459_v14 = vld [vmem:[#allocation55_spill] sm:$0xff]  ;;  %v5460_v37 = vld [vmem:[#allocation56_spill] sm:$0xff] }
  0xff   :  { %1179 = vmatpush.bf16.msrb.mxu2 %v5450_v18  ;;  %1192 = vmatpush.bf16.msra.mxu3 %v5451_v38  ;;  %v5461_v18 = vld [vmem:[#allocation57_spill] sm:$0xff]  ;;  %v5462_v38 = vld [vmem:[#allocation58_spill] sm:$0xff] }
 0x102   :  { %1154 = vmatpush.bf16.msra.mxu0 %v5452_v43  ;;  %1167 = vmatpush.bf16.msrb.mxu1 %v5453_v24  ;;  %v5463_v43 = vld [vmem:[#allocation59_spill] sm:$0xff]  ;;  %v5464_v24 = vld [vmem:[#allocation60_spill] sm:$0xff] }
 0x103   :  { %1180 = vmatpush.bf16.msrb.mxu2 %v5454_v17  ;;  %1193 = vmatpush.bf16.msra.mxu3 %v5455_v1  ;;  %v5465_v17 = vld [vmem:[#allocation61_spill] sm:$0xff]  ;;  %v5466_v1 = vld [vmem:[#allocation62_spill] sm:$0xff] }
 0x106   :  { %1155 = vmatpush.bf16.msra.mxu0 %v5456_v56  ;;  %1168 = vmatpush.bf16.msrb.mxu1 %v5457_v50  ;;  %v5467_v56 = vld [vmem:[#allocation63_spill] sm:$0xff]  ;;  %v5468_v50 = vld [vmem:[#allocation64_spill] sm:$0xff] }
 0x107   :  { %1181 = vmatpush.bf16.msrb.mxu2 %v5458_v13  ;;  %1194 = vmatpush.bf16.msra.mxu3 %v5459_v14  ;;  %v5469_v13 = vld [vmem:[#allocation65_spill] sm:$0xff]  ;;  %v5470_v14 = vld [vmem:[#allocation66_spill] sm:$0xff] }
 0x10a   :  { %1203 = vmatpush.bf16.msrb.mxu0 %v5460_v37  ;;  %1216 = vmatpush.bf16.msra.mxu1 %v5461_v18  ;;  %v5471_v37 = vld [vmem:[#allocation67_spill] sm:$0xff]  ;;  %v5472_v18 = vld [vmem:[#allocation68_spill] sm:$0xff] }
 0x10b   :  { %1229 = vmatpush.bf16.msra.mxu2 %v5462_v38  ;;  %1242 = vmatpush.bf16.msrb.mxu3 %v5463_v43  ;;  %v5473_v38 = vld [vmem:[#allocation69_spill] sm:$0xff]  ;;  %v5474_v43 = vld [vmem:[#allocation70_spill] sm:$0xff] }
 0x10e   :  { %1204 = vmatpush.bf16.msrb.mxu0 %v5464_v24  ;;  %1217 = vmatpush.bf16.msra.mxu1 %v5465_v17  ;;  %v5475_v24 = vld [vmem:[#allocation71_spill] sm:$0xff]  ;;  %v5476_v17 = vld [vmem:[#allocation72_spill] sm:$0xff] }
 0x10f   :  { %1230 = vmatpush.bf16.msra.mxu2 %v5466_v1  ;;  %1243 = vmatpush.bf16.msrb.mxu3 %v5467_v56  ;;  %v5477_v1 = vld [vmem:[#allocation73_spill] sm:$0xff]  ;;  %v5478_v56 = vld [vmem:[#allocation74_spill] sm:$0xff] }
 0x112   :  { %1205 = vmatpush.bf16.msrb.mxu0 %v5468_v50  ;;  %1218 = vmatpush.bf16.msra.mxu1 %v5469_v13  ;;  %v5479_v50 = vld [vmem:[#allocation75_spill] sm:$0xff]  ;;  %v780_v13 = vpop.f32.mrf.mxu0 }
 0x113   :  { %1231 = vmatpush.bf16.msra.mxu2 %v5470_v14  ;;  %1244 = vmatpush.bf16.msrb.mxu3 %v5471_v37  ;;  %v5480_v14 = vld [vmem:[#allocation76_spill] sm:$0xff]  ;;  %v5481_v37 = vld [vmem:[#allocation77_spill] sm:$0xff] }
 0x116   :  { %1206 = vmatpush.bf16.msrb.mxu0 %v5472_v18  ;;  %1219 = vmatpush.bf16.msra.mxu1 %v5473_v38  ;;  %v793_v18 = vpop.f32.mrf.mxu1  ;;  %v5483_v38 = vld [vmem:[#allocation79_spill] sm:$0xff] }
 0x117   :  { %1232 = vmatpush.bf16.msra.mxu2 %v5474_v43  ;;  %1245 = vmatpush.bf16.msrb.mxu3 %v5475_v24  ;;  %v5484_v43 = vld [vmem:[#allocation80_spill] sm:$0xff] }
 0x11a   :  { %1207 = vmatpush.bf16.msrb.mxu0 %v5476_v17  ;;  %1220 = vmatpush.bf16.msra.mxu1 %v5477_v1 }
 0x11b   :  { %1233 = vmatpush.bf16.msra.mxu2 %v5478_v56  ;;  %1246 = vmatpush.bf16.msrb.mxu3 %v5479_v50  ;;  %v806_v56 = vpop.f32.mrf.mxu2  ;;  %v782_v50 = vpop.f32.mrf.mxu0 }
 0x11e   :  { %1208 = vmatpush.bf16.msrb.mxu0 %v5480_v14  ;;  %1221 = vmatpush.bf16.msra.mxu1 %v5481_v37  ;;  %v795_v37 = vpop.f32.mrf.mxu1  ;;  %v819_v14 = vpop.f32.mrf.mxu3 }
 0x11f   :  { %1234 = vmatpush.bf16.msra.mxu2 %v5482_v35  ;;  %1247 = vmatpush.bf16.msrb.mxu3 %v5483_v38 }
 0x122   :  { %1209 = vmatpush.bf16.msrb.mxu0 %v5484_v43  ;;  %1222 = vmatpush.bf16.msra.mxu1 %v4276_v0 }
 0x123   :  { %1235 = vmatpush.bf16.msra.mxu2 %v4278_v49  ;;  %1248 = vmatpush.bf16.msrb.mxu3 %v4281_v11  ;;  %v808_v38 = vpop.f32.mrf.mxu2  ;;  %v366_v49 = vld [vmem:[%s5200_s6] sm:$0xf] }
 0x124   :  { %v4438_v0 = vperm.slane %v366_v49, 0  ;;  %v4440_v11 = vperm.slane %v366_v49, 1  ;;  %v4444_v38 = vperm.slane %v366_v49, 2 }
 0x126   :  { %1210 = vmatpush.bf16.msrb.mxu0 %v4285_v19  ;;  %1223 = vmatpush.bf16.msra.mxu1 %v4288_v59  ;;  %v821_v43 = vpop.f32.mrf.mxu3  ;;  %5485 = vst [vmem:[#allocation94_spill] sm:$0xff] %v4440_v11 }
 0x127   :  { %1236 = vmatpush.bf16.msra.mxu2 %v4290_v33  ;;  %1249 = vmatpush.bf16.msrb.mxu3 %v4293_v32  ;;  %5486 = vst [vmem:[#allocation95_spill] sm:$0xff] %v4444_v38  ;;  %v4446_v43 = vperm.slane %v366_v49, 3 }
 0x129   :  { %5487 = vst [vmem:[#allocation96_spill] sm:$0xff] %v4446_v43 }
 0x165   :  { %v992_v50 = vpop.f32.mrf.mxu0  ;;  %v1005_v19 = vpop.f32.mrf.mxu1 }
 0x166   :  { %v993_v35 = vadd.f32 %v992_v50, %v780_v13  ;;  %v1006_v59 = vadd.f32 %v1005_v19, %v793_v18 }
 0x168   :  { %v1035_v37 = vadd.f32 %v993_v35, %v4438_v0  ;;  %v1036_v33 = vadd.f32 %v1006_v59, %v4440_v11 }
 0x16a   :  { %v1039_v1 = vmul.f32 0.5, %v1035_v37  ;;  %v1043_v32 = vmul.f32 0.5, %v1036_v33 }
 0x16c   :  { %3474 = vtanh.f32 %v1039_v1  ;;  %v1018_v17 = vpop.f32.mrf.mxu2  ;;  %v1031_v24 = vpop.f32.mrf.mxu3 }
 0x16d   :  { %3476 = vtanh.f32 %v1043_v32  ;;  %v1019_v54 = vadd.f32 %v1018_v17, %v806_v56  ;;  %v1032_v41 = vadd.f32 %v1031_v24, %v819_v14  ;;  %v994_v28 = vpop.f32.mrf.mxu0  ;;  %v1007_v42 = vpop.f32.mrf.mxu1 }
 0x16f   :  { %v1037_v19 = vadd.f32 %v1019_v54, %v4444_v38  ;;  %v1038_v35 = vadd.f32 %v1032_v41, %v4446_v43 }
 0x171   :  { %3478 = vtanh.f32 %v1037_v19  ;;  %v1048_v59 = vmul.f32 0.5, %v1038_v35 }
 0x172   :  { %v3475_v13 = vpop.eup %3474 }
 0x173   :  { %v3477_v33 = vpop.eup %3476  ;;  %v1041_v18 = vmul.f32 0.5, %v3475_v13  ;;  %3480 = vtanh.f32 %v1048_v59 }
 0x174   :  { %v1045_v50 = vmul.f32 0.5, %v3477_v33  ;;  %v1020_v49 = vpop.f32.mrf.mxu2  ;;  %v1033_v1 = vpop.f32.mrf.mxu3 }
 0x175   :  { %v1042_v37 = vadd.f32 0.5, %v1041_v18  ;;  %v1066_v11 = vpop.f32.mrf.mxu0  ;;  %v1079_v32 = vpop.f32.mrf.mxu1 }
 0x176   :  { %v1046_v56 = vadd.f32 0.5, %v1045_v50  ;;  %v1113_v14 = vrot.slane %v1066_v11, 6  ;;  %v1114_v28 = vrot.slane %v1079_v32, 6 }
 0x177   :  { %v3479_v42 = vpop.eup %3478 }
 0x178   :  { %v1052_v24 = vmul.f32 0.0, %v1046_v56  ;;  %v1053_v54 = vmul.f32 %v3479_v42, %v1042_v37  ;;  %v1121_v41 = vadd.f32 %v1113_v14, %v4319_v58  ;;  %v1122_v17 = vadd.f32 %v1114_v28, %v4332_v2 }
 0x179   :  { %v3481_v19 = vpop.eup %3480 }
 0x17a   :  { %v4452_v35 = vadd.f32 %v1053_v54, %v1052_v24  ;;  %v1125_v13 = vmul.f32 0.5, %v1121_v41  ;;  %v1129_v59 = vmul.f32 0.5, %v1122_v17  ;;  %v1050_v49 = vmul.f32 0.5, %v3481_v19 }
 0x17c   :  { %3482 = vtanh.f32 %v4452_v35  ;;  %v1092_v33 = vpop.f32.mrf.mxu2  ;;  %v1105_v18 = vpop.f32.mrf.mxu3  ;;  %v1051_v14 = vadd.f32 0.5, %v1050_v49 }
 0x17d   :  { %3484 = vtanh.f32 %v1125_v13  ;;  %v1115_v11 = vrot.slane %v1092_v33, 6  ;;  %v1116_v50 = vrot.slane %v1105_v18, 6  ;;  %v1068_v1 = vpop.f32.mrf.mxu0  ;;  %v1081_v32 = vpop.f32.mrf.mxu1 }
 0x17e   :  { %3486 = vtanh.f32 %v1129_v59 }
 0x17f   :  { %v1123_v37 = vadd.f32 %v1115_v11, %v4347_v62  ;;  %v1124_v56 = vadd.f32 %v1116_v50, %v4357_v31  ;;  %v1139_v11 = vrot.slane %v4368_v4, 6 }
 0x181   :  { %3488 = vtanh.f32 %v1123_v37  ;;  %v1134_v28 = vmul.f32 0.5, %v1124_v56  ;;  %v5488_v37 = vld [vmem:[#allocation21_spill] sm:$0xff] }
 0x182   :  { %v3483_v42 = vpop.eup %3482 }
 0x183   :  { %v3485_v24 = vpop.eup %3484  ;;  %v1056_v54 = vmul.f32 %v3483_v42, %v1051_v14  ;;  %3490 = vtanh.f32 %v1134_v28  ;;  %v5489_v14 = vld [vmem:[#allocation22_spill] sm:$0xff] }
 0x184   :  { %v3487_v41 = vpop.eup %3486  ;;  %v1127_v17 = vmul.f32 0.5, %v3485_v24  ;;  %v1094_v2 = vpop.f32.mrf.mxu2  ;;  %v5490_v24 = vld [vmem:[#allocation20_spill] sm:$0xff] }
 0x185   :  { %v1107_v19 = vpop.f32.mrf.mxu3  ;;  %v1131_v13 = vmul.f32 0.5, %v3487_v41  ;;  %v1147_v33 = vpack.c.bf16 %v1056_v54, %v1056_v54 }
 0x186   :  { %v1128_v18 = vadd.f32 0.5, %v1127_v17  ;;  %v5491_v17 = vld [vmem:[#allocation23_spill] sm:$0xff]  ;;  %v5492_v19 = vld [vmem:[#allocation25_spill] sm:$0xff] }
 0x187   :  { %v3489_v1 = vpop.eup %3488  ;;  %v1132_v59 = vadd.f32 0.5, %v1131_v13  ;;  %1156 = vmatmul.bf16.vlgmr.msra.gmra.mxu0 %v1147_v33  ;;  %1169 = vmatmul.bf16.vlgmr.msrb.gmra.mxu1 %v1147_v33  ;;  %v5493_v13 = vld [vmem:[#allocation26_spill] sm:$0xff] }
 0x188   :  { %v1142_v49 = vmul.f32 %v3489_v1, %v1128_v18  ;;  %1182 = vmatmul.bf16.vlgmr.msrb.gmra.mxu2 %v1147_v33  ;;  %1195 = vmatmul.bf16.vlgmr.msra.gmra.mxu3 %v1147_v33  ;;  %v5494_v33 = vld [vmem:[#allocation24_spill] sm:$0xff]  ;;  %v5495_v18 = vld [vmem:[#allocation37_spill] sm:$0xff]  ;;  %v5496_v1 = vld [vmem:[#allocation35_spill] sm:$0xff] }
 0x189   :  { %v1141_v50 = vmul.f32 %v1139_v11, %v1132_v59  ;;  %1277 = vmatpush.bf16.msra.mxu0 %v3960_v12  ;;  %1290 = vmatpush.bf16.msrb.mxu1 %v3986_v30  ;;  %v3491_v2 = vpop.eup %3490  ;;  %v5497_v59 = vld [vmem:[#allocation36_spill] sm:$0xff]  ;;  %v5498_v11 = vld [vmem:[#allocation38_spill] sm:$0xff] }
 0x18a   :  { %1303 = vmatpush.bf16.msrb.mxu2 %v3994_v34  ;;  %1316 = vmatpush.bf16.msra.mxu3 %v4017_v52  ;;  %v1136_v4 = vmul.f32 0.5, %v3491_v2  ;;  %v5501_v2 = vld [vmem:[#allocation40_spill] sm:$0xff] }
 0x18b   :  { %v4462_v32 = vadd.f32 %v1142_v49, %v1141_v50  ;;  %v5499_v49 = vld [vmem:[#allocation41_spill] sm:$0xff]  ;;  %v5500_v50 = vld [vmem:[#allocation39_spill] sm:$0xff] }
 0x18c   :  { %v1137_v56 = vadd.f32 0.5, %v1136_v4  ;;  %v5502_v4 = vld [vmem:[#allocation42_spill] sm:$0xff] }
 0x18d   :  { %3492 = vtanh.f32 %v4462_v32  ;;  %1278 = vmatpush.bf16.msra.mxu0 %v3984_v25  ;;  %1291 = vmatpush.bf16.msrb.mxu1 %v4009_v44 }
 0x18e   :  { %1304 = vmatpush.bf16.msrb.mxu2 %v4013_v48  ;;  %1317 = vmatpush.bf16.msra.mxu3 %v5488_v37 }
 0x191   :  { %1279 = vmatpush.bf16.msra.mxu0 %v4002_v39  ;;  %1292 = vmatpush.bf16.msrb.mxu1 %v4026_v60 }
 0x192   :  { %1305 = vmatpush.bf16.msrb.mxu2 %v4028_v61  ;;  %1318 = vmatpush.bf16.msra.mxu3 %v5489_v14 }
 0x193   :  { %v3493_v28 = vpop.eup %3492 }
 0x194   :  { %v1145_v42 = vmul.f32 %v3493_v28, %v1137_v56  ;;  %v5503_v56 = vld [vmem:[#allocation43_spill] sm:$0xff]  ;;  %v5504_v28 = vld [vmem:[#allocation44_spill] sm:$0xff] }
 0x195   :  { %1280 = vmatpush.bf16.msra.mxu0 %v5490_v24  ;;  %1293 = vmatpush.bf16.msrb.mxu1 %v4038_v8 }
 0x196   :  { %v1146_v54 = vpack.c.bf16 %v1145_v42, %v1145_v42  ;;  %1306 = vmatpush.bf16.msrb.mxu2 %v4040_v9  ;;  %1319 = vmatpush.bf16.msra.mxu3 %v4055_v27  ;;  %v5505_v42 = vld [vmem:[#allocation45_spill] sm:$0xff] }
 0x198   :  { %v1201_v41 = vrot.slane %v1146_v54, 1  ;;  %v5506_v54 = vld [vmem:[#allocation46_spill] sm:$0xff] }
 0x199   :  { %1281 = vmatpush.bf16.msra.mxu0 %v4034_v7  ;;  %1294 = vmatpush.bf16.msrb.mxu1 %v4050_v21 }
 0x19a   :  { %1211 = vmatmul.bf16.vlgmr.msrb.gmra.mxu0 %v1201_v41  ;;  %1224 = vmatmul.bf16.vlgmr.msra.gmra.mxu1 %v1201_v41 }
 0x19b   :  { %1237 = vmatmul.bf16.vlgmr.msra.gmra.mxu2 %v1201_v41  ;;  %1250 = vmatmul.bf16.vlgmr.msrb.gmra.mxu3 %v1201_v41 }
 0x19c   :  { %1307 = vmatpush.bf16.msrb.mxu2 %v4052_v22  ;;  %1320 = vmatpush.bf16.msra.mxu3 %v4067_v45 }
 0x19d   :  { %1282 = vmatpush.bf16.msra.mxu0 %v4046_v20  ;;  %1295 = vmatpush.bf16.msrb.mxu1 %v5491_v17 }
 0x1a0   :  { %1308 = vmatpush.bf16.msrb.mxu2 %v4064_v40  ;;  %1321 = vmatpush.bf16.msra.mxu3 %v5492_v19 }
 0x1a1   :  { %1283 = vmatpush.bf16.msra.mxu0 %v4058_v36  ;;  %1296 = vmatpush.bf16.msrb.mxu1 %v4076_v55 }
 0x1a4   :  { %1309 = vmatpush.bf16.msrb.mxu2 %v4078_v57  ;;  %1322 = vmatpush.bf16.msra.mxu3 %v5493_v13 }
 0x1a5   :  { %1284 = vmatpush.bf16.msra.mxu0 %v5494_v33  ;;  %1297 = vmatpush.bf16.msrb.mxu1 %v4088_v15 }
 0x1a8   :  { %1310 = vmatpush.bf16.msrb.mxu2 %v4090_v16  ;;  %1323 = vmatpush.bf16.msra.mxu3 %v4106_v46 }
 0x1a9   :  { %1368 = vmatpush.bf16.msrb.mxu0 %v4083_v3  ;;  %1381 = vmatpush.bf16.msra.mxu1 %v4096_v23 }
 0x1aa   :  { %1285 = vmatmul.bf16.vlgmr.msra.gmra.mxu0 %v1201_v41  ;;  %1298 = vmatmul.bf16.vlgmr.msrb.gmra.mxu1 %v1201_v41 }
 0x1ab   :  { %1311 = vmatmul.bf16.vlgmr.msrb.gmra.mxu2 %v1201_v41  ;;  %1324 = vmatmul.bf16.vlgmr.msra.gmra.mxu3 %v1201_v41  ;;  %v5507_v41 = vld [vmem:[#allocation47_spill] sm:$0xff] }
 0x1ac   :  { %1394 = vmatpush.bf16.msra.mxu2 %v4099_v26  ;;  %1407 = vmatpush.bf16.msrb.mxu3 %v4112_v51 }
 0x1ad   :  { %1369 = vmatpush.bf16.msrb.mxu0 %v4101_v29  ;;  %1382 = vmatpush.bf16.msra.mxu1 %v4109_v47 }
 0x1b0   :  { %1395 = vmatpush.bf16.msra.mxu2 %v4115_v53  ;;  %1408 = vmatpush.bf16.msrb.mxu3 %v4127_v6  ;;  %v5548_v6 = vld [vmem:[#allocation94_spill] sm:$0xff] }
 0x1b1   :  { %1370 = vmatpush.bf16.msrb.mxu0 %v4119_v63  ;;  %1383 = vmatpush.bf16.msra.mxu1 %v4123_v5 }
 0x1b4   :  { %1396 = vmatpush.bf16.msra.mxu2 %v4129_v10  ;;  %1409 = vmatpush.bf16.msrb.mxu3 %v5495_v18 }
 0x1b5   :  { %1371 = vmatpush.bf16.msrb.mxu0 %v5496_v1  ;;  %1384 = vmatpush.bf16.msra.mxu1 %v5497_v59  ;;  %v5508_v59 = vld [vmem:[#allocation48_spill] sm:$0xff] }
 0x1b8   :  { %1397 = vmatpush.bf16.msra.mxu2 %v5498_v11  ;;  %1410 = vmatpush.bf16.msrb.mxu3 %v5499_v49  ;;  %v5509_v11 = vld [vmem:[#allocation49_spill] sm:$0xff]  ;;  %v5510_v49 = vld [vmem:[#allocation50_spill] sm:$0xff] }
 0x1b9   :  { %1372 = vmatpush.bf16.msrb.mxu0 %v5500_v50  ;;  %1385 = vmatpush.bf16.msra.mxu1 %v5501_v2  ;;  %v5511_v50 = vld [vmem:[#allocation51_spill] sm:$0xff]  ;;  %v5512_v2 = vld [vmem:[#allocation52_spill] sm:$0xff] }
 0x1bc   :  { %1398 = vmatpush.bf16.msra.mxu2 %v5502_v4  ;;  %1411 = vmatpush.bf16.msrb.mxu3 %v5503_v56  ;;  %v5513_v4 = vld [vmem:[#allocation53_spill] sm:$0xff]  ;;  %v5514_v56 = vld [vmem:[#allocation54_spill] sm:$0xff] }
 0x1bd   :  { %1373 = vmatpush.bf16.msrb.mxu0 %v5504_v28  ;;  %1386 = vmatpush.bf16.msra.mxu1 %v5505_v42  ;;  %v5515_v28 = vld [vmem:[#allocation55_spill] sm:$0xff]  ;;  %v5516_v42 = vld [vmem:[#allocation56_spill] sm:$0xff] }
 0x1c0   :  { %1399 = vmatpush.bf16.msra.mxu2 %v5506_v54  ;;  %1412 = vmatpush.bf16.msrb.mxu3 %v5507_v41  ;;  %v5517_v54 = vld [vmem:[#allocation57_spill] sm:$0xff]  ;;  %v5518_v41 = vld [vmem:[#allocation58_spill] sm:$0xff] }
 0x1c1   :  { %1374 = vmatpush.bf16.msrb.mxu0 %v5508_v59  ;;  %1387 = vmatpush.bf16.msra.mxu1 %v5509_v11  ;;  %v5519_v59 = vld [vmem:[#allocation59_spill] sm:$0xff]  ;;  %v5520_v11 = vld [vmem:[#allocation60_spill] sm:$0xff] }
 0x1c4   :  { %1400 = vmatpush.bf16.msra.mxu2 %v5510_v49  ;;  %1413 = vmatpush.bf16.msrb.mxu3 %v5511_v50  ;;  %v5521_v49 = vld [vmem:[#allocation61_spill] sm:$0xff]  ;;  %v5522_v50 = vld [vmem:[#allocation62_spill] sm:$0xff] }
 0x1c5   :  { %1375 = vmatpush.bf16.msrb.mxu0 %v5512_v2  ;;  %1388 = vmatpush.bf16.msra.mxu1 %v5513_v4  ;;  %v5523_v2 = vld [vmem:[#allocation63_spill] sm:$0xff]  ;;  %v5524_v4 = vld [vmem:[#allocation64_spill] sm:$0xff] }
 0x1c8   :  { %1401 = vmatpush.bf16.msra.mxu2 %v5514_v56  ;;  %1414 = vmatpush.bf16.msrb.mxu3 %v5515_v28  ;;  %v5525_v56 = vld [vmem:[#allocation65_spill] sm:$0xff]  ;;  %v5526_v28 = vld [vmem:[#allocation66_spill] sm:$0xff] }
 0x1c9   :  { %1423 = vmatpush.bf16.msra.mxu0 %v5516_v42  ;;  %1436 = vmatpush.bf16.msrb.mxu1 %v5517_v54  ;;  %v5527_v42 = vld [vmem:[#allocation67_spill] sm:$0xff]  ;;  %v5528_v54 = vld [vmem:[#allocation68_spill] sm:$0xff] }
 0x1cc   :  { %1449 = vmatpush.bf16.msrb.mxu2 %v5518_v41  ;;  %1462 = vmatpush.bf16.msra.mxu3 %v5519_v59  ;;  %v5529_v41 = vld [vmem:[#allocation69_spill] sm:$0xff]  ;;  %v5530_v59 = vld [vmem:[#allocation70_spill] sm:$0xff] }
 0x1cd   :  { %1424 = vmatpush.bf16.msra.mxu0 %v5520_v11  ;;  %1437 = vmatpush.bf16.msrb.mxu1 %v5521_v49  ;;  %v5531_v11 = vld [vmem:[#allocation71_spill] sm:$0xff]  ;;  %v5532_v49 = vld [vmem:[#allocation72_spill] sm:$0xff] }
 0x1d0   :  { %1450 = vmatpush.bf16.msrb.mxu2 %v5522_v50  ;;  %1463 = vmatpush.bf16.msra.mxu3 %v5523_v2  ;;  %v5533_v50 = vld [vmem:[#allocation73_spill] sm:$0xff]  ;;  %v5534_v2 = vld [vmem:[#allocation74_spill] sm:$0xff] }
 0x1d1   :  { %1425 = vmatpush.bf16.msra.mxu0 %v5524_v4  ;;  %1438 = vmatpush.bf16.msrb.mxu1 %v5525_v56  ;;  %v5535_v4 = vld [vmem:[#allocation75_spill] sm:$0xff]  ;;  %v5536_v56 = vld [vmem:[#allocation76_spill] sm:$0xff] }
 0x1d4   :  { %1451 = vmatpush.bf16.msrb.mxu2 %v5526_v28  ;;  %1464 = vmatpush.bf16.msra.mxu3 %v5527_v42  ;;  %v5537_v28 = vld [vmem:[#allocation77_spill] sm:$0xff]  ;;  %v5538_v42 = vld [vmem:[#allocation78_spill] sm:$0xff] }
 0x1d5   :  { %1426 = vmatpush.bf16.msra.mxu0 %v5528_v54  ;;  %1439 = vmatpush.bf16.msrb.mxu1 %v5529_v41  ;;  %v5539_v54 = vld [vmem:[#allocation79_spill] sm:$0xff]  ;;  %v5540_v41 = vld [vmem:[#allocation80_spill] sm:$0xff] }
 0x1d8   :  { %1452 = vmatpush.bf16.msrb.mxu2 %v5530_v59  ;;  %1465 = vmatpush.bf16.msra.mxu3 %v5531_v11  ;;  %v5541_v59 = vld [vmem:[#allocation81_spill] sm:$0xff]  ;;  %v5542_v11 = vld [vmem:[#allocation82_spill] sm:$0xff] }
 0x1d9   :  { %1427 = vmatpush.bf16.msra.mxu0 %v5532_v49  ;;  %1440 = vmatpush.bf16.msrb.mxu1 %v5533_v50  ;;  %v5543_v49 = vld [vmem:[#allocation83_spill] sm:$0xff]  ;;  %v5544_v50 = vld [vmem:[#allocation84_spill] sm:$0xff] }
 0x1dc   :  { %1453 = vmatpush.bf16.msrb.mxu2 %v5534_v2  ;;  %1466 = vmatpush.bf16.msra.mxu3 %v5535_v4  ;;  %v5545_v2 = vld [vmem:[#allocation85_spill] sm:$0xff]  ;;  %v5546_v4 = vld [vmem:[#allocation86_spill] sm:$0xff] }
 0x1dd   :  { %1428 = vmatpush.bf16.msra.mxu0 %v5536_v56  ;;  %1441 = vmatpush.bf16.msrb.mxu1 %v5537_v28  ;;  %v5547_v56 = vld [vmem:[#allocation87_spill] sm:$0xff] }
 0x1e0   :  { %1454 = vmatpush.bf16.msrb.mxu2 %v5538_v42  ;;  %1467 = vmatpush.bf16.msra.mxu3 %v5539_v54 }
 0x1e1   :  { %1429 = vmatpush.bf16.msra.mxu0 %v5540_v41  ;;  %1442 = vmatpush.bf16.msrb.mxu1 %v5541_v59 }
 0x1e4   :  { %1455 = vmatpush.bf16.msrb.mxu2 %v5542_v11  ;;  %1468 = vmatpush.bf16.msra.mxu3 %v5543_v49 }
 0x1e5   :  { %1430 = vmatpush.bf16.msra.mxu0 %v5544_v50  ;;  %1443 = vmatpush.bf16.msrb.mxu1 %v5545_v2 }
 0x1e8   :  { %1456 = vmatpush.bf16.msrb.mxu2 %v5546_v4  ;;  %1469 = vmatpush.bf16.msra.mxu3 %v5547_v56 }
 0x204   :  { %v1157_v28 = vpop.f32.mrf.mxu0  ;;  %v1170_v42 = vpop.f32.mrf.mxu1 }
 0x20b   :  { %v1183_v1 = vpop.f32.mrf.mxu2  ;;  %v1196_v54 = vpop.f32.mrf.mxu3 }
 0x20c   :  { %v1159_v18 = vpop.f32.mrf.mxu0  ;;  %v1172_v41 = vpop.f32.mrf.mxu1 }
 0x213   :  { %v1185_v10 = vpop.f32.mrf.mxu2  ;;  %v1198_v59 = vpop.f32.mrf.mxu3 }
 0x217   :  { %v1212_v5 = vpop.f32.mrf.mxu0  ;;  %v1225_v11 = vpop.f32.mrf.mxu1 }
 0x218   :  { %v1213_v63 = vadd.f32 %v1212_v5, %v1157_v28  ;;  %v1226_v49 = vadd.f32 %v1225_v11, %v1170_v42 }
 0x21a   :  { %v1255_v50 = vadd.f32 %v1213_v63, %v4438_v0  ;;  %v1256_v2 = vadd.f32 %v1226_v49, %v5548_v6 }
 0x21c   :  { %v1259_v53 = vmul.f32 0.5, %v1255_v50  ;;  %v1263_v4 = vmul.f32 0.5, %v1256_v2 }
 0x21e   :  { %3494 = vtanh.f32 %v1259_v53  ;;  %v1238_v56 = vpop.f32.mrf.mxu2  ;;  %v1251_v47 = vpop.f32.mrf.mxu3 }
 0x21f   :  { %3496 = vtanh.f32 %v1263_v4  ;;  %v1239_v29 = vadd.f32 %v1238_v56, %v1183_v1  ;;  %v1252_v51 = vadd.f32 %v1251_v47, %v1196_v54  ;;  %v1214_v18 = vpop.f32.mrf.mxu0  ;;  %v1227_v41 = vpop.f32.mrf.mxu1 }
 0x220   :  { %v5549_v41 = vld [vmem:[#allocation92_spill] sm:$0xff] }
 0x221   :  { %v1257_v10 = vadd.f32 %v1239_v29, %v4444_v38  ;;  %v1258_v59 = vadd.f32 %v1252_v51, %v4446_v43 }
 0x223   :  { %3498 = vtanh.f32 %v1257_v10  ;;  %v1268_v5 = vmul.f32 0.5, %v1258_v59 }
 0x224   :  { %v3495_v11 = vpop.eup %3494 }
 0x225   :  { %v3497_v63 = vpop.eup %3496  ;;  %v1261_v28 = vmul.f32 0.5, %v3495_v11  ;;  %3500 = vtanh.f32 %v1268_v5 }
 0x226   :  { %v1265_v49 = vmul.f32 0.5, %v3497_v63  ;;  %v1240_v50 = vpop.f32.mrf.mxu2  ;;  %v1253_v53 = vpop.f32.mrf.mxu3 }
 0x227   :  { %v1262_v2 = vadd.f32 0.5, %v1261_v28  ;;  %v1286_v42 = vpop.f32.mrf.mxu0  ;;  %v1299_v4 = vpop.f32.mrf.mxu1 }
 0x228   :  { %v1266_v1 = vadd.f32 0.5, %v1265_v49  ;;  %v1333_v47 = vrot.slane %v1286_v42, 4  ;;  %v1334_v56 = vrot.slane %v1299_v4, 4 }
 0x229   :  { %v3499_v54 = vpop.eup %3498 }
 0x22a   :  { %v1272_v29 = vmul.f32 %v1266_v1, %v4452_v35  ;;  %v1273_v18 = vmul.f32 %v3499_v54, %v1262_v2  ;;  %v1341_v51 = vadd.f32 %v1333_v47, %v4319_v58  ;;  %v1342_v10 = vadd.f32 %v1334_v56, %v5549_v41 }
 0x22b   :  { %v3501_v59 = vpop.eup %3500 }
 0x22c   :  { %v4564_v11 = vadd.f32 %v1273_v18, %v1272_v29  ;;  %v1345_v5 = vmul.f32 0.5, %v1341_v51  ;;  %v1349_v63 = vmul.f32 0.5, %v1342_v10  ;;  %v1270_v49 = vmul.f32 0.5, %v3501_v59 }
 0x22e   :  { %3502 = vtanh.f32 %v4564_v11  ;;  %v1312_v28 = vpop.f32.mrf.mxu2  ;;  %v1325_v50 = vpop.f32.mrf.mxu3  ;;  %v1271_v47 = vadd.f32 0.5, %v1270_v49 }
 0x22f   :  { %3504 = vtanh.f32 %v1345_v5  ;;  %v1335_v53 = vrot.slane %v1312_v28, 4  ;;  %v1336_v42 = vrot.slane %v1325_v50, 4  ;;  %v1288_v4 = vpop.f32.mrf.mxu0  ;;  %v1301_v35 = vpop.f32.mrf.mxu1 }
 0x230   :  { %3506 = vtanh.f32 %v1349_v63 }
 0x231   :  { %v1343_v2 = vadd.f32 %v1335_v53, %v4347_v62  ;;  %v1344_v1 = vadd.f32 %v1336_v42, %v4357_v31  ;;  %v1359_v53 = vrot.slane %v4462_v32, 6 }
 0x233   :  { %3508 = vtanh.f32 %v1343_v2  ;;  %v1354_v56 = vmul.f32 0.5, %v1344_v1 }
 0x234   :  { %v3503_v54 = vpop.eup %3502 }
 0x235   :  { %v3505_v29 = vpop.eup %3504  ;;  %v1276_v18 = vmul.f32 %v3503_v54, %v1271_v47  ;;  %3510 = vtanh.f32 %v1354_v56 }
 0x236   :  { %v3507_v51 = vpop.eup %3506  ;;  %v1347_v10 = vmul.f32 0.5, %v3505_v29  ;;  %v1314_v41 = vpop.f32.mrf.mxu2  ;;  %v5550_v29 = vld [vmem:[#allocation29_spill] sm:$0xff] }
 0x237   :  { %v1327_v59 = vpop.f32.mrf.mxu3  ;;  %v1351_v5 = vmul.f32 0.5, %v3507_v51  ;;  %v1367_v28 = vpack.c.bf16 %v1276_v18, %v1276_v18  ;;  %v5551_v18 = vld [vmem:[#allocation27_spill] sm:$0xff]  ;;  %v5552_v51 = vld [vmem:[#allocation28_spill] sm:$0xff] }
 0x238   :  { %v1348_v50 = vadd.f32 0.5, %v1347_v10  ;;  %v5553_v10 = vld [vmem:[#allocation30_spill] sm:$0xff]  ;;  %v5554_v59 = vld [vmem:[#allocation33_spill] sm:$0xff] }
 0x239   :  { %v3509_v4 = vpop.eup %3508  ;;  %v1352_v63 = vadd.f32 0.5, %v1351_v5  ;;  %1376 = vmatmul.bf16.vlgmr.msrb.gmra.mxu0 %v1367_v28  ;;  %1389 = vmatmul.bf16.vlgmr.msra.gmra.mxu1 %v1367_v28  ;;  %v5555_v5 = vld [vmem:[#allocation31_spill] sm:$0xff] }
 0x23a   :  { %v1362_v49 = vmul.f32 %v3509_v4, %v1348_v50  ;;  %1402 = vmatmul.bf16.vlgmr.msra.gmra.mxu2 %v1367_v28  ;;  %1415 = vmatmul.bf16.vlgmr.msrb.gmra.mxu3 %v1367_v28  ;;  %v5556_v28 = vld [vmem:[#allocation32_spill] sm:$0xff]  ;;  %v5557_v50 = vld [vmem:[#allocation34_spill] sm:$0xff]  ;;  %v5558_v4 = vld [vmem:[#allocation37_spill] sm:$0xff] }
 0x23b   :  { %v1361_v42 = vmul.f32 %v1359_v53, %v1352_v63  ;;  %1497 = vmatpush.bf16.msrb.mxu0 %v3960_v12  ;;  %1510 = vmatpush.bf16.msra.mxu1 %v3986_v30  ;;  %v3511_v41 = vpop.eup %3510  ;;  %v5559_v63 = vld [vmem:[#allocation35_spill] sm:$0xff]  ;;  %v5560_v53 = vld [vmem:[#allocation36_spill] sm:$0xff] }
 0x23c   :  { %1523 = vmatpush.bf16.msra.mxu2 %v3994_v34  ;;  %1536 = vmatpush.bf16.msrb.mxu3 %v4017_v52  ;;  %v1356_v32 = vmul.f32 0.5, %v3511_v41  ;;  %v5563_v41 = vld [vmem:[#allocation39_spill] sm:$0xff] }
 0x23d   :  { %v4574_v35 = vadd.f32 %v1362_v49, %v1361_v42  ;;  %v5561_v49 = vld [vmem:[#allocation38_spill] sm:$0xff]  ;;  %v5562_v42 = vld [vmem:[#allocation41_spill] sm:$0xff] }
 0x23e   :  { %v1357_v2 = vadd.f32 0.5, %v1356_v32  ;;  %v5564_v32 = vld [vmem:[#allocation40_spill] sm:$0xff] }
 0x23f   :  { %3512 = vtanh.f32 %v4574_v35  ;;  %1498 = vmatpush.bf16.msrb.mxu0 %v3984_v25  ;;  %1511 = vmatpush.bf16.msra.mxu1 %v4009_v44 }
 0x240   :  { %1524 = vmatpush.bf16.msra.mxu2 %v4013_v48  ;;  %1537 = vmatpush.bf16.msrb.mxu3 %v5488_v37 }
 0x243   :  { %1499 = vmatpush.bf16.msrb.mxu0 %v4002_v39  ;;  %1512 = vmatpush.bf16.msra.mxu1 %v4026_v60 }
 0x244   :  { %1525 = vmatpush.bf16.msra.mxu2 %v4028_v61  ;;  %1538 = vmatpush.bf16.msrb.mxu3 %v5489_v14 }
 0x245   :  { %v3513_v1 = vpop.eup %3512 }
 0x246   :  { %v1365_v47 = vmul.f32 %v3513_v1, %v1357_v2  ;;  %v5565_v2 = vld [vmem:[#allocation42_spill] sm:$0xff]  ;;  %v5566_v1 = vld [vmem:[#allocation43_spill] sm:$0xff] }
 0x247   :  { %1500 = vmatpush.bf16.msrb.mxu0 %v5490_v24  ;;  %1513 = vmatpush.bf16.msra.mxu1 %v4038_v8 }
 0x248   :  { %v1366_v56 = vpack.c.bf16 %v1365_v47, %v1365_v47  ;;  %1526 = vmatpush.bf16.msra.mxu2 %v4040_v9  ;;  %1539 = vmatpush.bf16.msrb.mxu3 %v4055_v27  ;;  %v5567_v47 = vld [vmem:[#allocation44_spill] sm:$0xff] }
 0x24a   :  { %v1421_v54 = vrot.slane %v1366_v56, 2  ;;  %v5568_v56 = vld [vmem:[#allocation45_spill] sm:$0xff] }
 0x24b   :  { %1501 = vmatpush.bf16.msrb.mxu0 %v4034_v7  ;;  %1514 = vmatpush.bf16.msra.mxu1 %v4050_v21 }
 0x24c   :  { %1431 = vmatmul.bf16.vlgmr.msra.gmra.mxu0 %v1421_v54  ;;  %1444 = vmatmul.bf16.vlgmr.msrb.gmra.mxu1 %v1421_v54 }
 0x24d   :  { %1457 = vmatmul.bf16.vlgmr.msrb.gmra.mxu2 %v1421_v54  ;;  %1470 = vmatmul.bf16.vlgmr.msra.gmra.mxu3 %v1421_v54 }
 0x24e   :  { %1527 = vmatpush.bf16.msra.mxu2 %v4052_v22  ;;  %1540 = vmatpush.bf16.msrb.mxu3 %v4067_v45 }
 0x24f   :  { %1502 = vmatpush.bf16.msrb.mxu0 %v4046_v20  ;;  %1515 = vmatpush.bf16.msra.mxu1 %v5491_v17 }
 0x252   :  { %1528 = vmatpush.bf16.msra.mxu2 %v4064_v40  ;;  %1541 = vmatpush.bf16.msrb.mxu3 %v5492_v19 }
 0x253   :  { %1503 = vmatpush.bf16.msrb.mxu0 %v4058_v36  ;;  %1516 = vmatpush.bf16.msra.mxu1 %v4076_v55 }
 0x256   :  { %1529 = vmatpush.bf16.msra.mxu2 %v4078_v57  ;;  %1542 = vmatpush.bf16.msrb.mxu3 %v5493_v13 }
 0x257   :  { %1504 = vmatpush.bf16.msrb.mxu0 %v5494_v33  ;;  %1517 = vmatpush.bf16.msra.mxu1 %v4088_v15 }
 0x25a   :  { %1530 = vmatpush.bf16.msra.mxu2 %v4090_v16  ;;  %1543 = vmatpush.bf16.msrb.mxu3 %v4106_v46 }
 0x25b   :  { %1588 = vmatpush.bf16.msra.mxu0 %v4083_v3  ;;  %1601 = vmatpush.bf16.msrb.mxu1 %v4096_v23 }
 0x25c   :  { %1505 = vmatmul.bf16.vlgmr.msrb.gmra.mxu0 %v1421_v54  ;;  %1518 = vmatmul.bf16.vlgmr.msra.gmra.mxu1 %v1421_v54 }
 0x25d   :  { %1531 = vmatmul.bf16.vlgmr.msra.gmra.mxu2 %v1421_v54  ;;  %1544 = vmatmul.bf16.vlgmr.msrb.gmra.mxu3 %v1421_v54  ;;  %v5569_v54 = vld [vmem:[#allocation46_spill] sm:$0xff] }
 0x25e   :  { %1614 = vmatpush.bf16.msrb.mxu2 %v4099_v26  ;;  %1627 = vmatpush.bf16.msra.mxu3 %v5550_v29 }
 0x25f   :  { %1589 = vmatpush.bf16.msra.mxu0 %v5551_v18  ;;  %1602 = vmatpush.bf16.msrb.mxu1 %v5552_v51 }
 0x262   :  { %1615 = vmatpush.bf16.msrb.mxu2 %v5553_v10  ;;  %1628 = vmatpush.bf16.msra.mxu3 %v5554_v59 }
 0x263   :  { %1590 = vmatpush.bf16.msra.mxu0 %v5555_v5  ;;  %1603 = vmatpush.bf16.msrb.mxu1 %v5556_v28 }
 0x266   :  { %1616 = vmatpush.bf16.msrb.mxu2 %v5557_v50  ;;  %1629 = vmatpush.bf16.msra.mxu3 %v5558_v4 }
 0x267   :  { %1591 = vmatpush.bf16.msra.mxu0 %v5559_v63  ;;  %1604 = vmatpush.bf16.msrb.mxu1 %v5560_v53  ;;  %v5570_v63 = vld [vmem:[#allocation47_spill] sm:$0xff]  ;;  %v5571_v53 = vld [vmem:[#allocation48_spill] sm:$0xff] }
 0x26a   :  { %1617 = vmatpush.bf16.msrb.mxu2 %v5561_v49  ;;  %1630 = vmatpush.bf16.msra.mxu3 %v5562_v42  ;;  %v5572_v49 = vld [vmem:[#allocation49_spill] sm:$0xff]  ;;  %v5573_v42 = vld [vmem:[#allocation50_spill] sm:$0xff] }
 0x26b   :  { %1592 = vmatpush.bf16.msra.mxu0 %v5563_v41  ;;  %1605 = vmatpush.bf16.msrb.mxu1 %v5564_v32  ;;  %v5574_v41 = vld [vmem:[#allocation51_spill] sm:$0xff]  ;;  %v5575_v32 = vld [vmem:[#allocation52_spill] sm:$0xff] }
 0x26e   :  { %1618 = vmatpush.bf16.msrb.mxu2 %v5565_v2  ;;  %1631 = vmatpush.bf16.msra.mxu3 %v5566_v1  ;;  %v5576_v2 = vld [vmem:[#allocation53_spill] sm:$0xff]  ;;  %v5577_v1 = vld [vmem:[#allocation54_spill] sm:$0xff] }
 0x26f   :  { %1593 = vmatpush.bf16.msra.mxu0 %v5567_v47  ;;  %1606 = vmatpush.bf16.msrb.mxu1 %v5568_v56  ;;  %v5578_v47 = vld [vmem:[#allocation55_spill] sm:$0xff]  ;;  %v5579_v56 = vld [vmem:[#allocation56_spill] sm:$0xff] }
 0x272   :  { %1619 = vmatpush.bf16.msrb.mxu2 %v5569_v54  ;;  %1632 = vmatpush.bf16.msra.mxu3 %v5570_v63  ;;  %v5580_v54 = vld [vmem:[#allocation57_spill] sm:$0xff]  ;;  %v5581_v63 = vld [vmem:[#allocation58_spill] sm:$0xff] }
 0x273   :  { %1594 = vmatpush.bf16.msra.mxu0 %v5571_v53  ;;  %1607 = vmatpush.bf16.msrb.mxu1 %v5572_v49  ;;  %v5582_v53 = vld [vmem:[#allocation59_spill] sm:$0xff]  ;;  %v5583_v49 = vld [vmem:[#allocation60_spill] sm:$0xff] }
 0x276   :  { %1620 = vmatpush.bf16.msrb.mxu2 %v5573_v42  ;;  %1633 = vmatpush.bf16.msra.mxu3 %v5574_v41  ;;  %v5584_v42 = vld [vmem:[#allocation61_spill] sm:$0xff]  ;;  %v5585_v41 = vld [vmem:[#allocation62_spill] sm:$0xff] }
 0x277   :  { %1595 = vmatpush.bf16.msra.mxu0 %v5575_v32  ;;  %1608 = vmatpush.bf16.msrb.mxu1 %v5576_v2  ;;  %v5586_v32 = vld [vmem:[#allocation63_spill] sm:$0xff]  ;;  %v5587_v2 = vld [vmem:[#allocation64_spill] sm:$0xff] }
 0x27a   :  { %1621 = vmatpush.bf16.msrb.mxu2 %v5577_v1  ;;  %1634 = vmatpush.bf16.msra.mxu3 %v5578_v47  ;;  %v5588_v1 = vld [vmem:[#allocation65_spill] sm:$0xff]  ;;  %v5589_v47 = vld [vmem:[#allocation66_spill] sm:$0xff] }
 0x27b   :  { %1643 = vmatpush.bf16.msrb.mxu0 %v5579_v56  ;;  %1656 = vmatpush.bf16.msra.mxu1 %v5580_v54  ;;  %v5590_v56 = vld [vmem:[#allocation67_spill] sm:$0xff]  ;;  %v5591_v54 = vld [vmem:[#allocation68_spill] sm:$0xff] }
 0x27e   :  { %1669 = vmatpush.bf16.msra.mxu2 %v5581_v63  ;;  %1682 = vmatpush.bf16.msrb.mxu3 %v5582_v53  ;;  %v5592_v63 = vld [vmem:[#allocation69_spill] sm:$0xff]  ;;  %v5593_v53 = vld [vmem:[#allocation70_spill] sm:$0xff] }
 0x27f   :  { %1644 = vmatpush.bf16.msrb.mxu0 %v5583_v49  ;;  %1657 = vmatpush.bf16.msra.mxu1 %v5584_v42  ;;  %v5594_v49 = vld [vmem:[#allocation71_spill] sm:$0xff]  ;;  %v5595_v42 = vld [vmem:[#allocation72_spill] sm:$0xff] }
 0x282   :  { %1670 = vmatpush.bf16.msra.mxu2 %v5585_v41  ;;  %1683 = vmatpush.bf16.msrb.mxu3 %v5586_v32  ;;  %v5596_v41 = vld [vmem:[#allocation73_spill] sm:$0xff]  ;;  %v5597_v32 = vld [vmem:[#allocation74_spill] sm:$0xff] }
 0x283   :  { %1645 = vmatpush.bf16.msrb.mxu0 %v5587_v2  ;;  %1658 = vmatpush.bf16.msra.mxu1 %v5588_v1  ;;  %v5598_v2 = vld [vmem:[#allocation75_spill] sm:$0xff]  ;;  %v5599_v1 = vld [vmem:[#allocation76_spill] sm:$0xff] }
 0x286   :  { %1671 = vmatpush.bf16.msra.mxu2 %v5589_v47  ;;  %1684 = vmatpush.bf16.msrb.mxu3 %v5590_v56  ;;  %v5600_v47 = vld [vmem:[#allocation77_spill] sm:$0xff]  ;;  %v5601_v56 = vld [vmem:[#allocation78_spill] sm:$0xff] }
 0x287   :  { %1646 = vmatpush.bf16.msrb.mxu0 %v5591_v54  ;;  %1659 = vmatpush.bf16.msra.mxu1 %v5592_v63  ;;  %v5602_v54 = vld [vmem:[#allocation79_spill] sm:$0xff]  ;;  %v5603_v63 = vld [vmem:[#allocation80_spill] sm:$0xff] }
 0x28a   :  { %1672 = vmatpush.bf16.msra.mxu2 %v5593_v53  ;;  %1685 = vmatpush.bf16.msrb.mxu3 %v5594_v49  ;;  %v5604_v53 = vld [vmem:[#allocation81_spill] sm:$0xff]  ;;  %v5605_v49 = vld [vmem:[#allocation82_spill] sm:$0xff] }
 0x28b   :  { %1647 = vmatpush.bf16.msrb.mxu0 %v5595_v42  ;;  %1660 = vmatpush.bf16.msra.mxu1 %v5596_v41  ;;  %v5606_v42 = vld [vmem:[#allocation83_spill] sm:$0xff]  ;;  %v5607_v41 = vld [vmem:[#allocation84_spill] sm:$0xff] }
 0x28e   :  { %1673 = vmatpush.bf16.msra.mxu2 %v5597_v32  ;;  %1686 = vmatpush.bf16.msrb.mxu3 %v5598_v2  ;;  %v5608_v32 = vld [vmem:[#allocation85_spill] sm:$0xff]  ;;  %v5609_v2 = vld [vmem:[#allocation86_spill] sm:$0xff] }
 0x28f   :  { %1648 = vmatpush.bf16.msrb.mxu0 %v5599_v1  ;;  %1661 = vmatpush.bf16.msra.mxu1 %v5600_v47  ;;  %v5610_v1 = vld [vmem:[#allocation87_spill] sm:$0xff] }
 0x292   :  { %1674 = vmatpush.bf16.msra.mxu2 %v5601_v56  ;;  %1687 = vmatpush.bf16.msrb.mxu3 %v5602_v54 }
 0x293   :  { %1649 = vmatpush.bf16.msrb.mxu0 %v5603_v63  ;;  %1662 = vmatpush.bf16.msra.mxu1 %v5604_v53 }
 0x296   :  { %1675 = vmatpush.bf16.msra.mxu2 %v5605_v49  ;;  %1688 = vmatpush.bf16.msrb.mxu3 %v5606_v42 }
 0x297   :  { %1650 = vmatpush.bf16.msrb.mxu0 %v5607_v41  ;;  %1663 = vmatpush.bf16.msra.mxu1 %v5608_v32 }
 0x29a   :  { %1676 = vmatpush.bf16.msra.mxu2 %v5609_v2  ;;  %1689 = vmatpush.bf16.msrb.mxu3 %v5610_v1 }
 0x2b6   :  { %v1377_v47 = vpop.f32.mrf.mxu0  ;;  %v1390_v56 = vpop.f32.mrf.mxu1 }
 0x2bd   :  { %v1403_v4 = vpop.f32.mrf.mxu2  ;;  %v1416_v54 = vpop.f32.mrf.mxu3 }
 0x2be   :  { %v1379_v50 = vpop.f32.mrf.mxu0  ;;  %v1392_v63 = vpop.f32.mrf.mxu1 }
 0x2c5   :  { %v1405_v28 = vpop.f32.mrf.mxu2  ;;  %v1418_v53 = vpop.f32.mrf.mxu3 }
 0x2c9   :  { %v1432_v5 = vpop.f32.mrf.mxu0  ;;  %v1445_v49 = vpop.f32.mrf.mxu1 }
 0x2ca   :  { %v1433_v59 = vadd.f32 %v1432_v5, %v1377_v47  ;;  %v1446_v42 = vadd.f32 %v1445_v49, %v1390_v56 }
 0x2cc   :  { %v1475_v41 = vadd.f32 %v1433_v59, %v4438_v0  ;;  %v1476_v32 = vadd.f32 %v1446_v42, %v5548_v6 }
 0x2ce   :  { %v1479_v10 = vmul.f32 0.5, %v1475_v41  ;;  %v1483_v2 = vmul.f32 0.5, %v1476_v32 }
 0x2d0   :  { %3514 = vtanh.f32 %v1479_v10  ;;  %v1458_v1 = vpop.f32.mrf.mxu2  ;;  %v1471_v51 = vpop.f32.mrf.mxu3 }
 0x2d1   :  { %3516 = vtanh.f32 %v1483_v2  ;;  %v1459_v18 = vadd.f32 %v1458_v1, %v1403_v4  ;;  %v1472_v29 = vadd.f32 %v1471_v51, %v1416_v54  ;;  %v1434_v50 = vpop.f32.mrf.mxu0  ;;  %v1447_v63 = vpop.f32.mrf.mxu1 }
 0x2d2   :  { %v5611_v63 = vld [vmem:[#allocation92_spill] sm:$0xff] }
 0x2d3   :  { %v1477_v28 = vadd.f32 %v1459_v18, %v4444_v38  ;;  %v1478_v53 = vadd.f32 %v1472_v29, %v4446_v43 }
 0x2d5   :  { %3518 = vtanh.f32 %v1477_v28  ;;  %v1488_v5 = vmul.f32 0.5, %v1478_v53 }
 0x2d6   :  { %v3515_v49 = vpop.eup %3514 }
 0x2d7   :  { %v3517_v59 = vpop.eup %3516  ;;  %v1481_v47 = vmul.f32 0.5, %v3515_v49  ;;  %3520 = vtanh.f32 %v1488_v5 }
 0x2d8   :  { %v1485_v42 = vmul.f32 0.5, %v3517_v59  ;;  %v1460_v41 = vpop.f32.mrf.mxu2  ;;  %v1473_v10 = vpop.f32.mrf.mxu3 }
 0x2d9   :  { %v1482_v32 = vadd.f32 0.5, %v1481_v47  ;;  %v1506_v56 = vpop.f32.mrf.mxu0  ;;  %v1519_v2 = vpop.f32.mrf.mxu1 }
 0x2da   :  { %v1486_v4 = vadd.f32 0.5, %v1485_v42  ;;  %v1553_v51 = vrot.slane %v1506_v56, 2  ;;  %v1554_v1 = vrot.slane %v1519_v2, 2 }
 0x2db   :  { %v3519_v54 = vpop.eup %3518 }
 0x2dc   :  { %v1492_v18 = vmul.f32 %v1486_v4, %v4564_v11  ;;  %v1493_v50 = vmul.f32 %v3519_v54, %v1482_v32  ;;  %v1561_v29 = vadd.f32 %v1553_v51, %v4319_v58  ;;  %v1562_v28 = vadd.f32 %v1554_v1, %v5611_v63 }
 0x2dd   :  { %v3521_v53 = vpop.eup %3520 }
 0x2de   :  { %v4676_v49 = vadd.f32 %v1493_v50, %v1492_v18  ;;  %v1565_v5 = vmul.f32 0.5, %v1561_v29  ;;  %v1569_v59 = vmul.f32 0.5, %v1562_v28  ;;  %v1490_v42 = vmul.f32 0.5, %v3521_v53 }
 0x2e0   :  { %3522 = vtanh.f32 %v4676_v49  ;;  %v1532_v47 = vpop.f32.mrf.mxu2  ;;  %v1545_v41 = vpop.f32.mrf.mxu3  ;;  %v1491_v4 = vadd.f32 0.5, %v1490_v42 }
 0x2e1   :  { %3524 = vtanh.f32 %v1565_v5  ;;  %v1555_v10 = vrot.slane %v1532_v47, 2  ;;  %v1556_v56 = vrot.slane %v1545_v41, 2  ;;  %v1508_v2 = vpop.f32.mrf.mxu0  ;;  %v1521_v11 = vpop.f32.mrf.mxu1 }
 0x2e2   :  { %3526 = vtanh.f32 %v1569_v59 }
 0x2e3   :  { %v1563_v58 = vadd.f32 %v1555_v10, %v4347_v62  ;;  %v1564_v32 = vadd.f32 %v1556_v56, %v4357_v31  ;;  %v1579_v62 = vrot.slane %v4574_v35, 6 }
 0x2e5   :  { %3528 = vtanh.f32 %v1563_v58  ;;  %v1574_v51 = vmul.f32 0.5, %v1564_v32 }
 0x2e6   :  { %v3523_v1 = vpop.eup %3522 }
 0x2e7   :  { %v3525_v54 = vpop.eup %3524  ;;  %v1496_v18 = vmul.f32 %v3523_v1, %v1491_v4  ;;  %3530 = vtanh.f32 %v1574_v51  ;;  %v5612_v51 = vld [vmem:[#allocation29_spill] sm:$0xff]  ;;  %v5613_v1 = vld [vmem:[#allocation27_spill] sm:$0xff] }
 0x2e8   :  { %v3527_v50 = vpop.eup %3526  ;;  %v1567_v29 = vmul.f32 0.5, %v3525_v54  ;;  %v1534_v63 = vpop.f32.mrf.mxu2  ;;  %v5614_v54 = vld [vmem:[#allocation28_spill] sm:$0xff] }
 0x2e9   :  { %v1547_v28 = vpop.f32.mrf.mxu3  ;;  %v1571_v53 = vmul.f32 0.5, %v3527_v50  ;;  %v1587_v5 = vpack.c.bf16 %v1496_v18, %v1496_v18  ;;  %v5615_v18 = vld [vmem:[#allocation30_spill] sm:$0xff]  ;;  %v5616_v50 = vld [vmem:[#allocation33_spill] sm:$0xff]  ;;  %v5618_v63 = vld [vmem:[#allocation32_spill] sm:$0xff] }
 0x2ea   :  { %v1568_v47 = vadd.f32 0.5, %v1567_v29  ;;  %v5617_v29 = vld [vmem:[#allocation31_spill] sm:$0xff]  ;;  %v5619_v28 = vld [vmem:[#allocation34_spill] sm:$0xff] }
 0x2eb   :  { %v3529_v41 = vpop.eup %3528  ;;  %v1572_v59 = vadd.f32 0.5, %v1571_v53  ;;  %1596 = vmatmul.bf16.vlgmr.msra.gmra.mxu0 %v1587_v5  ;;  %1609 = vmatmul.bf16.vlgmr.msrb.gmra.mxu1 %v1587_v5  ;;  %v5620_v53 = vld [vmem:[#allocation37_spill] sm:$0xff] }
 0x2ec   :  { %v1582_v31 = vmul.f32 %v3529_v41, %v1568_v47  ;;  %1622 = vmatmul.bf16.vlgmr.msrb.gmra.mxu2 %v1587_v5  ;;  %1635 = vmatmul.bf16.vlgmr.msra.gmra.mxu3 %v1587_v5  ;;  %v5621_v5 = vld [vmem:[#allocation35_spill] sm:$0xff]  ;;  %v5622_v47 = vld [vmem:[#allocation36_spill] sm:$0xff]  ;;  %v5623_v41 = vld [vmem:[#allocation38_spill] sm:$0xff] }
 0x2ed   :  { %v1581_v42 = vmul.f32 %v1579_v62, %v1572_v59  ;;  %1717 = vmatpush.bf16.msra.mxu0 %v3960_v12  ;;  %1730 = vmatpush.bf16.msrb.mxu1 %v3986_v30  ;;  %v3531_v10 = vpop.eup %3530  ;;  %v5624_v59 = vld [vmem:[#allocation41_spill] sm:$0xff]  ;;  %v5625_v62 = vld [vmem:[#allocation39_spill] sm:$0xff] }
 0x2ee   :  { %1743 = vmatpush.bf16.msrb.mxu2 %v3994_v34  ;;  %1756 = vmatpush.bf16.msra.mxu3 %v4017_v52  ;;  %v1576_v35 = vmul.f32 0.5, %v3531_v10  ;;  %v5628_v10 = vld [vmem:[#allocation43_spill] sm:$0xff] }
 0x2ef   :  { %v4686_v56 = vadd.f32 %v1582_v31, %v1581_v42  ;;  %v5626_v31 = vld [vmem:[#allocation40_spill] sm:$0xff]  ;;  %v5627_v42 = vld [vmem:[#allocation42_spill] sm:$0xff] }
 0x2f0   :  { %v1577_v2 = vadd.f32 0.5, %v1576_v35  ;;  %v5629_v35 = vld [vmem:[#allocation44_spill] sm:$0xff] }
 0x2f1   :  { %3532 = vtanh.f32 %v4686_v56  ;;  %1718 = vmatpush.bf16.msra.mxu0 %v3984_v25  ;;  %1731 = vmatpush.bf16.msrb.mxu1 %v4009_v44 }
 0x2f2   :  { %1744 = vmatpush.bf16.msrb.mxu2 %v4013_v48  ;;  %1757 = vmatpush.bf16.msra.mxu3 %v5488_v37 }
 0x2f5   :  { %1719 = vmatpush.bf16.msra.mxu0 %v4002_v39  ;;  %1732 = vmatpush.bf16.msrb.mxu1 %v4026_v60 }
 0x2f6   :  { %1745 = vmatpush.bf16.msrb.mxu2 %v4028_v61  ;;  %1758 = vmatpush.bf16.msra.mxu3 %v5489_v14 }
 0x2f7   :  { %v3533_v11 = vpop.eup %3532 }
 0x2f8   :  { %v1585_v58 = vmul.f32 %v3533_v11, %v1577_v2  ;;  %v5630_v2 = vld [vmem:[#allocation45_spill] sm:$0xff]  ;;  %v5631_v11 = vld [vmem:[#allocation46_spill] sm:$0xff] }
 0x2f9   :  { %1720 = vmatpush.bf16.msra.mxu0 %v5490_v24  ;;  %1733 = vmatpush.bf16.msrb.mxu1 %v4038_v8 }
 0x2fa   :  { %v1586_v32 = vpack.c.bf16 %v1585_v58, %v1585_v58  ;;  %1746 = vmatpush.bf16.msrb.mxu2 %v4040_v9  ;;  %1759 = vmatpush.bf16.msra.mxu3 %v4055_v27  ;;  %v5632_v58 = vld [vmem:[#allocation47_spill] sm:$0xff] }
 0x2fc   :  { %v1641_v4 = vrot.slane %v1586_v32, 3  ;;  %v5633_v32 = vld [vmem:[#allocation48_spill] sm:$0xff] }
 0x2fd   :  { %1721 = vmatpush.bf16.msra.mxu0 %v4034_v7  ;;  %1734 = vmatpush.bf16.msrb.mxu1 %v4050_v21 }
 0x2fe   :  { %1651 = vmatmul.bf16.vlgmr.msrb.gmra.mxu0 %v1641_v4  ;;  %1664 = vmatmul.bf16.vlgmr.msra.gmra.mxu1 %v1641_v4 }
 0x2ff   :  { %1677 = vmatmul.bf16.vlgmr.msra.gmra.mxu2 %v1641_v4  ;;  %1690 = vmatmul.bf16.vlgmr.msrb.gmra.mxu3 %v1641_v4 }
 0x300   :  { %1747 = vmatpush.bf16.msrb.mxu2 %v4052_v22  ;;  %1760 = vmatpush.bf16.msra.mxu3 %v4067_v45 }
 0x301   :  { %1722 = vmatpush.bf16.msra.mxu0 %v4046_v20  ;;  %1735 = vmatpush.bf16.msrb.mxu1 %v5491_v17 }
 0x304   :  { %1748 = vmatpush.bf16.msrb.mxu2 %v4064_v40  ;;  %1761 = vmatpush.bf16.msra.mxu3 %v5492_v19 }
 0x305   :  { %1723 = vmatpush.bf16.msra.mxu0 %v4058_v36  ;;  %1736 = vmatpush.bf16.msrb.mxu1 %v4076_v55 }
 0x308   :  { %1749 = vmatpush.bf16.msrb.mxu2 %v4078_v57  ;;  %1762 = vmatpush.bf16.msra.mxu3 %v5493_v13 }
 0x309   :  { %1724 = vmatpush.bf16.msra.mxu0 %v5494_v33  ;;  %1737 = vmatpush.bf16.msrb.mxu1 %v4088_v15 }
 0x30c   :  { %1750 = vmatpush.bf16.msrb.mxu2 %v4090_v16  ;;  %1763 = vmatpush.bf16.msra.mxu3 %v4106_v46 }
 0x30d   :  { %1796 = vmatpush.bf16.msrb.mxu0 %v4083_v3  ;;  %1809 = vmatpush.bf16.msra.mxu1 %v4096_v23 }
 0x30e   :  { %1725 = vmatmul.bf16.vlgmr.msra.gmra.mxu0 %v1641_v4  ;;  %1738 = vmatmul.bf16.vlgmr.msrb.gmra.mxu1 %v1641_v4 }
 0x30f   :  { %1751 = vmatmul.bf16.vlgmr.msrb.gmra.mxu2 %v1641_v4  ;;  %1764 = vmatmul.bf16.vlgmr.msra.gmra.mxu3 %v1641_v4  ;;  %v5634_v4 = vld [vmem:[#allocation49_spill] sm:$0xff] }
 0x310   :  { %1822 = vmatpush.bf16.msra.mxu2 %v4099_v26  ;;  %1835 = vmatpush.bf16.msrb.mxu3 %v5612_v51 }
 0x311   :  { %1797 = vmatpush.bf16.msrb.mxu0 %v5613_v1  ;;  %1810 = vmatpush.bf16.msra.mxu1 %v5614_v54 }
 0x314   :  { %1823 = vmatpush.bf16.msra.mxu2 %v5615_v18  ;;  %1836 = vmatpush.bf16.msrb.mxu3 %v5616_v50 }
 0x315   :  { %1798 = vmatpush.bf16.msrb.mxu0 %v5617_v29  ;;  %1811 = vmatpush.bf16.msra.mxu1 %v5618_v63 }
 0x318   :  { %1824 = vmatpush.bf16.msra.mxu2 %v5619_v28  ;;  %1837 = vmatpush.bf16.msrb.mxu3 %v5620_v53 }
 0x319   :  { %1799 = vmatpush.bf16.msrb.mxu0 %v5621_v5  ;;  %1812 = vmatpush.bf16.msra.mxu1 %v5622_v47 }
 0x31c   :  { %1825 = vmatpush.bf16.msra.mxu2 %v5623_v41  ;;  %1838 = vmatpush.bf16.msrb.mxu3 %v5624_v59  ;;  %v5635_v59 = vld [vmem:[#allocation50_spill] sm:$0xff] }
 0x31d   :  { %1800 = vmatpush.bf16.msrb.mxu0 %v5625_v62  ;;  %1813 = vmatpush.bf16.msra.mxu1 %v5626_v31  ;;  %v5636_v62 = vld [vmem:[#allocation51_spill] sm:$0xff]  ;;  %v5637_v31 = vld [vmem:[#allocation52_spill] sm:$0xff] }
 0x320   :  { %1826 = vmatpush.bf16.msra.mxu2 %v5627_v42  ;;  %1839 = vmatpush.bf16.msrb.mxu3 %v5628_v10  ;;  %v5638_v42 = vld [vmem:[#allocation53_spill] sm:$0xff]  ;;  %v5639_v10 = vld [vmem:[#allocation54_spill] sm:$0xff] }
 0x321   :  { %1801 = vmatpush.bf16.msrb.mxu0 %v5629_v35  ;;  %1814 = vmatpush.bf16.msra.mxu1 %v5630_v2  ;;  %v5640_v35 = vld [vmem:[#allocation55_spill] sm:$0xff]  ;;  %v5641_v2 = vld [vmem:[#allocation56_spill] sm:$0xff] }
 0x324   :  { %1827 = vmatpush.bf16.msra.mxu2 %v5631_v11  ;;  %1840 = vmatpush.bf16.msrb.mxu3 %v5632_v58  ;;  %v5642_v11 = vld [vmem:[#allocation57_spill] sm:$0xff]  ;;  %v5643_v58 = vld [vmem:[#allocation58_spill] sm:$0xff] }
 0x325   :  { %1802 = vmatpush.bf16.msrb.mxu0 %v5633_v32  ;;  %1815 = vmatpush.bf16.msra.mxu1 %v5634_v4  ;;  %v5644_v32 = vld [vmem:[#allocation59_spill] sm:$0xff]  ;;  %v5645_v4 = vld [vmem:[#allocation60_spill] sm:$0xff] }
 0x328   :  { %1828 = vmatpush.bf16.msra.mxu2 %v5635_v59  ;;  %1841 = vmatpush.bf16.msrb.mxu3 %v5636_v62  ;;  %v5646_v59 = vld [vmem:[#allocation61_spill] sm:$0xff]  ;;  %v5647_v62 = vld [vmem:[#allocation62_spill] sm:$0xff] }
 0x329   :  { %1803 = vmatpush.bf16.msrb.mxu0 %v5637_v31  ;;  %1816 = vmatpush.bf16.msra.mxu1 %v5638_v42  ;;  %v5648_v31 = vld [vmem:[#allocation63_spill] sm:$0xff]  ;;  %v5649_v42 = vld [vmem:[#allocation64_spill] sm:$0xff] }
 0x32c   :  { %1829 = vmatpush.bf16.msra.mxu2 %v5639_v10  ;;  %1842 = vmatpush.bf16.msrb.mxu3 %v5640_v35  ;;  %v5650_v10 = vld [vmem:[#allocation65_spill] sm:$0xff]  ;;  %v5651_v35 = vld [vmem:[#allocation66_spill] sm:$0xff] }
 0x32d   :  { %1848 = vmatpush.bf16.msra.mxu0 %v5641_v2  ;;  %1861 = vmatpush.bf16.msrb.mxu1 %v5642_v11  ;;  %v5652_v2 = vld [vmem:[#allocation67_spill] sm:$0xff]  ;;  %v5653_v11 = vld [vmem:[#allocation68_spill] sm:$0xff] }
 0x330   :  { %1874 = vmatpush.bf16.msrb.mxu2 %v5643_v58  ;;  %1887 = vmatpush.bf16.msra.mxu3 %v5644_v32  ;;  %v5654_v58 = vld [vmem:[#allocation69_spill] sm:$0xff]  ;;  %v5655_v32 = vld [vmem:[#allocation70_spill] sm:$0xff] }
 0x331   :  { %1849 = vmatpush.bf16.msra.mxu0 %v5645_v4  ;;  %1862 = vmatpush.bf16.msrb.mxu1 %v5646_v59  ;;  %v5656_v4 = vld [vmem:[#allocation71_spill] sm:$0xff]  ;;  %v5657_v59 = vld [vmem:[#allocation72_spill] sm:$0xff] }
 0x334   :  { %1875 = vmatpush.bf16.msrb.mxu2 %v5647_v62  ;;  %1888 = vmatpush.bf16.msra.mxu3 %v5648_v31  ;;  %v5658_v62 = vld [vmem:[#allocation73_spill] sm:$0xff]  ;;  %v5659_v31 = vld [vmem:[#allocation74_spill] sm:$0xff] }
 0x335   :  { %1850 = vmatpush.bf16.msra.mxu0 %v5649_v42  ;;  %1863 = vmatpush.bf16.msrb.mxu1 %v5650_v10  ;;  %v5660_v42 = vld [vmem:[#allocation75_spill] sm:$0xff]  ;;  %v5661_v10 = vld [vmem:[#allocation76_spill] sm:$0xff] }
 0x338   :  { %1876 = vmatpush.bf16.msrb.mxu2 %v5651_v35  ;;  %1889 = vmatpush.bf16.msra.mxu3 %v5652_v2  ;;  %v5662_v35 = vld [vmem:[#allocation77_spill] sm:$0xff]  ;;  %v5663_v2 = vld [vmem:[#allocation78_spill] sm:$0xff] }
 0x339   :  { %1851 = vmatpush.bf16.msra.mxu0 %v5653_v11  ;;  %1864 = vmatpush.bf16.msrb.mxu1 %v5654_v58  ;;  %v5664_v11 = vld [vmem:[#allocation79_spill] sm:$0xff]  ;;  %v5665_v58 = vld [vmem:[#allocation80_spill] sm:$0xff] }
 0x33c   :  { %1877 = vmatpush.bf16.msrb.mxu2 %v5655_v32  ;;  %1890 = vmatpush.bf16.msra.mxu3 %v5656_v4  ;;  %v5666_v32 = vld [vmem:[#allocation81_spill] sm:$0xff]  ;;  %v5667_v4 = vld [vmem:[#allocation82_spill] sm:$0xff] }
 0x33d   :  { %1852 = vmatpush.bf16.msra.mxu0 %v5657_v59  ;;  %1865 = vmatpush.bf16.msrb.mxu1 %v5658_v62  ;;  %v5668_v59 = vld [vmem:[#allocation83_spill] sm:$0xff]  ;;  %v5669_v62 = vld [vmem:[#allocation84_spill] sm:$0xff] }
 0x340   :  { %1878 = vmatpush.bf16.msrb.mxu2 %v5659_v31  ;;  %1891 = vmatpush.bf16.msra.mxu3 %v5660_v42  ;;  %v5670_v31 = vld [vmem:[#allocation85_spill] sm:$0xff]  ;;  %v5671_v42 = vld [vmem:[#allocation86_spill] sm:$0xff] }
 0x341   :  { %1853 = vmatpush.bf16.msra.mxu0 %v5661_v10  ;;  %1866 = vmatpush.bf16.msrb.mxu1 %v5662_v35  ;;  %v5672_v10 = vld [vmem:[#allocation87_spill] sm:$0xff] }
 0x344   :  { %1879 = vmatpush.bf16.msrb.mxu2 %v5663_v2  ;;  %1892 = vmatpush.bf16.msra.mxu3 %v5664_v11 }
 0x345   :  { %1854 = vmatpush.bf16.msra.mxu0 %v5665_v58  ;;  %1867 = vmatpush.bf16.msrb.mxu1 %v5666_v32 }
 0x348   :  { %1880 = vmatpush.bf16.msrb.mxu2 %v5667_v4  ;;  %1893 = vmatpush.bf16.msra.mxu3 %v5668_v59 }
 0x349   :  { %1855 = vmatpush.bf16.msra.mxu0 %v5669_v62  ;;  %1868 = vmatpush.bf16.msrb.mxu1 %v5670_v31 }
 0x34c   :  { %1881 = vmatpush.bf16.msrb.mxu2 %v5671_v42  ;;  %1894 = vmatpush.bf16.msra.mxu3 %v5672_v10 }
 0x368   :  { %v1597_v35 = vpop.f32.mrf.mxu0  ;;  %v1610_v2 = vpop.f32.mrf.mxu1 }
 0x36f   :  { %v1623_v41 = vpop.f32.mrf.mxu2  ;;  %v1636_v11 = vpop.f32.mrf.mxu3 }
 0x370   :  { %v1599_v47 = vpop.f32.mrf.mxu0  ;;  %v1612_v58 = vpop.f32.mrf.mxu1 }
 0x377   :  { %v1625_v5 = vpop.f32.mrf.mxu2  ;;  %v1638_v32 = vpop.f32.mrf.mxu3 }
 0x37b   :  { %v1652_v53 = vpop.f32.mrf.mxu0  ;;  %v1665_v4 = vpop.f32.mrf.mxu1 }
 0x37c   :  { %v1653_v28 = vadd.f32 %v1652_v53, %v1597_v35  ;;  %v1666_v59 = vadd.f32 %v1665_v4, %v1610_v2 }
 0x37e   :  { %v1695_v62 = vadd.f32 %v1653_v28, %v4438_v0  ;;  %v1696_v31 = vadd.f32 %v1666_v59, %v5548_v6  ;;  %v5673_v59 = vld [vmem:[#allocation89_spill] sm:$0xff] }
 0x380   :  { %v1699_v63 = vmul.f32 0.5, %v1695_v62  ;;  %v1703_v42 = vmul.f32 0.5, %v1696_v31  ;;  %v5674_v62 = vperm.slane %v5673_v59, 1  ;;  %v5675_v31 = vld [vmem:[#allocation90_spill] sm:$0xff] }
 0x382   :  { %3534 = vtanh.f32 %v1699_v63  ;;  %v1678_v10 = vpop.f32.mrf.mxu2  ;;  %v1691_v29 = vpop.f32.mrf.mxu3  ;;  %v4788_v63 = vadd.f32 %v5675_v31, %v5674_v62 }
 0x383   :  { %3536 = vtanh.f32 %v1703_v42  ;;  %v1679_v50 = vadd.f32 %v1678_v10, %v1623_v41  ;;  %v1692_v18 = vadd.f32 %v1691_v29, %v1636_v11  ;;  %v1654_v47 = vpop.f32.mrf.mxu0  ;;  %v1667_v58 = vpop.f32.mrf.mxu1  ;;  %v5677_v42 = vperm.slane %v5673_v59, 0  ;;  %v5678_v41 = vld [vmem:[#allocation88_spill] sm:$0xff] }
 0x384   :  { %5676 = vst [vmem:[#allocation21_spill] sm:$0xff] %v4788_v63 }
 0x385   :  { %v1697_v5 = vadd.f32 %v1679_v50, %v4444_v38  ;;  %v1698_v32 = vadd.f32 %v1692_v18, %v4446_v43  ;;  %v4793_v29 = vadd.f32 %v5678_v41, %v5677_v42 }
 0x387   :  { %3538 = vtanh.f32 %v1697_v5  ;;  %v1708_v53 = vmul.f32 0.5, %v1698_v32 }
 0x388   :  { %v3535_v35 = vpop.eup %3534 }
 0x389   :  { %v3537_v28 = vpop.eup %3536  ;;  %v1701_v2 = vmul.f32 0.5, %v3535_v35  ;;  %3540 = vtanh.f32 %v1708_v53  ;;  %v5679_v53 = vperm.slane %v5673_v59, 2 }
 0x38a   :  { %v1705_v10 = vmul.f32 0.5, %v3537_v28  ;;  %v1680_v50 = vpop.f32.mrf.mxu2  ;;  %v1693_v11 = vpop.f32.mrf.mxu3  ;;  %v5680_v28 = vld [vmem:[#allocation91_spill] sm:$0xff] }
 0x38b   :  { %v1702_v18 = vadd.f32 0.5, %v1701_v2  ;;  %v1726_v4 = vpop.f32.mrf.mxu0  ;;  %v1739_v47 = vpop.f32.mrf.mxu1  ;;  %v4803_v2 = vadd.f32 %v5680_v28, %v5679_v53  ;;  %v5683_v50 = vld [vmem:[#allocation93_spill] sm:$0xff] }
 0x38c   :  { %v1706_v58 = vadd.f32 0.5, %v1705_v10  ;;  %v1769_v5 = vadd.f32 %v1726_v4, %v4793_v29  ;;  %v1770_v32 = vadd.f32 %v1739_v47, %v4788_v63  ;;  %v5682_v10 = vperm.slane %v5673_v59, 3 }
 0x38d   :  { %v3539_v35 = vpop.eup %3538  ;;  %5681 = vst [vmem:[#allocation22_spill] sm:$0xff] %v4803_v2 }
 0x38e   :  { %v1712_v62 = vmul.f32 %v1706_v58, %v4676_v49  ;;  %v1713_v31 = vmul.f32 %v3539_v35, %v1702_v18  ;;  %v1773_v43 = vmul.f32 0.5, %v1769_v5  ;;  %v1777_v38 = vmul.f32 0.5, %v1770_v32 }
 0x38f   :  { %v3541_v42 = vpop.eup %3540  ;;  %v4808_v11 = vadd.f32 %v5683_v50, %v5682_v10 }
 0x390   :  { %v4798_v41 = vadd.f32 %v1713_v31, %v1712_v62  ;;  %3542 = vtanh.f32 %v1773_v43  ;;  %v1710_v4 = vmul.f32 0.5, %v3541_v42  ;;  %v1787_v42 = vrot.slane %v4686_v56, 6 }
 0x391   :  { %3544 = vtanh.f32 %v1777_v38 }
 0x392   :  { %3546 = vtanh.f32 %v4798_v41  ;;  %v1752_v49 = vpop.f32.mrf.mxu2  ;;  %v1765_v18 = vpop.f32.mrf.mxu3  ;;  %v1711_v59 = vadd.f32 0.5, %v1710_v4 }
 0x393   :  { %v1771_v47 = vadd.f32 %v1752_v49, %v4803_v2  ;;  %v1772_v43 = vadd.f32 %v1765_v18, %v4808_v11  ;;  %v1728_v58 = vpop.f32.mrf.mxu0  ;;  %v1741_v5 = vpop.f32.mrf.mxu1 }
 0x395   :  { %3548 = vtanh.f32 %v1771_v47  ;;  %v1782_v32 = vmul.f32 0.5, %v1772_v43 }
 0x396   :  { %v3543_v35 = vpop.eup %3542 }
 0x397   :  { %v3545_v62 = vpop.eup %3544  ;;  %v1775_v31 = vmul.f32 0.5, %v3543_v35  ;;  %3550 = vtanh.f32 %v1782_v32  ;;  %v5684_v35 = vld [vmem:[#allocation30_spill] sm:$0xff] }
 0x398   :  { %v3547_v53 = vpop.eup %3546  ;;  %v1779_v28 = vmul.f32 0.5, %v3545_v62  ;;  %v5685_v62 = vld [vmem:[#allocation33_spill] sm:$0xff] }
 0x399   :  { %v1716_v38 = vmul.f32 %v3547_v53, %v1711_v59  ;;  %v1776_v10 = vadd.f32 0.5, %v1775_v31  ;;  %v5686_v59 = vld [vmem:[#allocation31_spill] sm:$0xff]  ;;  %v5687_v31 = vld [vmem:[#allocation32_spill] sm:$0xff]  ;;  %v5688_v53 = vld [vmem:[#allocation34_spill] sm:$0xff] }
 0x39a   :  { %v1780_v50 = vadd.f32 0.5, %v1779_v28  ;;  %v1754_v63 = vpop.f32.mrf.mxu2  ;;  %v1767_v49 = vpop.f32.mrf.mxu3  ;;  %v5689_v28 = vld [vmem:[#allocation37_spill] sm:$0xff] }
 0x39b   :  { %v3549_v2 = vpop.eup %3548  ;;  %v1795_v18 = vpack.c.bf16 %v1716_v38, %v1716_v38  ;;  %v5690_v38 = vld [vmem:[#allocation35_spill] sm:$0xff] }
 0x39c   :  { %v1789_v58 = vmul.f32 %v1787_v42, %v1780_v50  ;;  %v1790_v5 = vmul.f32 %v3549_v2, %v1776_v10  ;;  %v5691_v10 = vld [vmem:[#allocation36_spill] sm:$0xff]  ;;  %v5692_v50 = vld [vmem:[#allocation38_spill] sm:$0xff]  ;;  %v5693_v42 = vld [vmem:[#allocation41_spill] sm:$0xff] }
 0x39d   :  { %1804 = vmatmul.bf16.vlgmr.msrb.gmra.mxu0 %v1795_v18  ;;  %1817 = vmatmul.bf16.vlgmr.msra.gmra.mxu1 %v1795_v18  ;;  %v3551_v47 = vpop.eup %3550  ;;  %v5694_v49 = vld [vmem:[#allocation39_spill] sm:$0xff] }
 0x39e   :  { %v4814_v43 = vadd.f32 %v1790_v5, %v1789_v58  ;;  %1830 = vmatmul.bf16.vlgmr.msra.gmra.mxu2 %v1795_v18  ;;  %1843 = vmatmul.bf16.vlgmr.msrb.gmra.mxu3 %v1795_v18  ;;  %v1784_v56 = vmul.f32 0.5, %v3551_v47  ;;  %v5695_v18 = vld [vmem:[#allocation40_spill] sm:$0xff]  ;;  %v5696_v58 = vld [vmem:[#allocation42_spill] sm:$0xff]  ;;  %v5697_v5 = vld [vmem:[#allocation43_spill] sm:$0xff] }
 0x39f   :  { %1922 = vmatpush.bf16.msrb.mxu0 %v3960_v12  ;;  %1935 = vmatpush.bf16.msra.mxu1 %v3986_v30  ;;  %v5698_v47 = vld [vmem:[#allocation44_spill] sm:$0xff] }
 0x3a0   :  { %3552 = vtanh.f32 %v4814_v43  ;;  %1948 = vmatpush.bf16.msra.mxu2 %v3994_v34  ;;  %1961 = vmatpush.bf16.msrb.mxu3 %v4017_v52  ;;  %v1785_v63 = vadd.f32 0.5, %v1784_v56  ;;  %v5699_v56 = vld [vmem:[#allocation45_spill] sm:$0xff] }
 0x3a3   :  { %1923 = vmatpush.bf16.msrb.mxu0 %v3984_v25  ;;  %1936 = vmatpush.bf16.msra.mxu1 %v4009_v44 }
 0x3a4   :  { %1949 = vmatpush.bf16.msra.mxu2 %v4013_v48  ;;  %1962 = vmatpush.bf16.msrb.mxu3 %v5488_v37 }
 0x3a6   :  { %v3553_v2 = vpop.eup %3552 }
 0x3a7   :  { %v1793_v4 = vmul.f32 %v3553_v2, %v1785_v63  ;;  %1924 = vmatpush.bf16.msrb.mxu0 %v4002_v39  ;;  %1937 = vmatpush.bf16.msra.mxu1 %v4026_v60  ;;  %v5700_v63 = vld [vmem:[#allocation46_spill] sm:$0xff]  ;;  %v5701_v2 = vld [vmem:[#allocation47_spill] sm:$0xff] }
 0x3a8   :  { %1950 = vmatpush.bf16.msra.mxu2 %v4028_v61  ;;  %1963 = vmatpush.bf16.msrb.mxu3 %v5489_v14 }
 0x3a9   :  { %v1794_v32 = vpack.c.bf16 %v1793_v4, %v1793_v4  ;;  %v5702_v4 = vld [vmem:[#allocation48_spill] sm:$0xff] }
 0x3ab   :  { %1925 = vmatpush.bf16.msrb.mxu0 %v5490_v24  ;;  %1938 = vmatpush.bf16.msra.mxu1 %v4038_v8 }
 0x3ac   :  { %1951 = vmatpush.bf16.msra.mxu2 %v4040_v9  ;;  %1964 = vmatpush.bf16.msrb.mxu3 %v4055_v27 }
 0x3ad   :  { %1856 = vmatmul.bf16.vlgmr.msra.gmra.mxu0 %v1794_v32  ;;  %1869 = vmatmul.bf16.vlgmr.msrb.gmra.mxu1 %v1794_v32 }
 0x3ae   :  { %1882 = vmatmul.bf16.vlgmr.msrb.gmra.mxu2 %v1794_v32  ;;  %1895 = vmatmul.bf16.vlgmr.msra.gmra.mxu3 %v1794_v32 }
 0x3af   :  { %1926 = vmatpush.bf16.msrb.mxu0 %v4034_v7  ;;  %1939 = vmatpush.bf16.msra.mxu1 %v4050_v21 }
 0x3b0   :  { %1952 = vmatpush.bf16.msra.mxu2 %v4052_v22  ;;  %1965 = vmatpush.bf16.msrb.mxu3 %v4067_v45 }
 0x3b3   :  { %1927 = vmatpush.bf16.msrb.mxu0 %v4046_v20  ;;  %1940 = vmatpush.bf16.msra.mxu1 %v5491_v17 }
 0x3b4   :  { %1953 = vmatpush.bf16.msra.mxu2 %v4064_v40  ;;  %1966 = vmatpush.bf16.msrb.mxu3 %v5492_v19 }
 0x3b7   :  { %1928 = vmatpush.bf16.msrb.mxu0 %v4058_v36  ;;  %1941 = vmatpush.bf16.msra.mxu1 %v4076_v55 }
 0x3b8   :  { %1954 = vmatpush.bf16.msra.mxu2 %v4078_v57  ;;  %1967 = vmatpush.bf16.msrb.mxu3 %v5493_v13 }
 0x3bb   :  { %1929 = vmatpush.bf16.msrb.mxu0 %v5494_v33  ;;  %1942 = vmatpush.bf16.msra.mxu1 %v4088_v15 }
 0x3bc   :  { %1955 = vmatpush.bf16.msra.mxu2 %v4090_v16  ;;  %1968 = vmatpush.bf16.msrb.mxu3 %v4106_v46 }
 0x3be   :  { %1930 = vmatmul.bf16.vlgmr.msrb.gmra.mxu0 %v1794_v32  ;;  %1943 = vmatmul.bf16.vlgmr.msra.gmra.mxu1 %v1794_v32 }
 0x3bf   :  { %2013 = vmatpush.bf16.msra.mxu0 %v4083_v3  ;;  %2026 = vmatpush.bf16.msrb.mxu1 %v4096_v23 }
 0x3c0   :  { %1956 = vmatmul.bf16.vlgmr.msra.gmra.mxu2 %v1794_v32  ;;  %1969 = vmatmul.bf16.vlgmr.msrb.gmra.mxu3 %v1794_v32  ;;  %v5703_v32 = vld [vmem:[#allocation49_spill] sm:$0xff] }
 0x3c1   :  { %2039 = vmatpush.bf16.msrb.mxu2 %v4099_v26  ;;  %2052 = vmatpush.bf16.msra.mxu3 %v5612_v51 }
 0x3c3   :  { %2014 = vmatpush.bf16.msra.mxu0 %v5613_v1  ;;  %2027 = vmatpush.bf16.msrb.mxu1 %v5614_v54  ;;  %v5743_v54 = vld [vmem:[#allocation96_spill] sm:$0xff] }
 0x3c5   :  { %2040 = vmatpush.bf16.msrb.mxu2 %v5684_v35  ;;  %2053 = vmatpush.bf16.msra.mxu3 %v5685_v62 }
 0x3c7   :  { %2015 = vmatpush.bf16.msra.mxu0 %v5686_v59  ;;  %2028 = vmatpush.bf16.msrb.mxu1 %v5687_v31 }
 0x3c9   :  { %2041 = vmatpush.bf16.msrb.mxu2 %v5688_v53  ;;  %2054 = vmatpush.bf16.msra.mxu3 %v5689_v28 }
 0x3cb   :  { %2016 = vmatpush.bf16.msra.mxu0 %v5690_v38  ;;  %2029 = vmatpush.bf16.msrb.mxu1 %v5691_v10 }
 0x3cd   :  { %2042 = vmatpush.bf16.msrb.mxu2 %v5692_v50  ;;  %2055 = vmatpush.bf16.msra.mxu3 %v5693_v42  ;;  %v5704_v42 = vld [vmem:[#allocation50_spill] sm:$0xff] }
 0x3cf   :  { %2017 = vmatpush.bf16.msra.mxu0 %v5694_v49  ;;  %2030 = vmatpush.bf16.msrb.mxu1 %v5695_v18  ;;  %v5705_v49 = vld [vmem:[#allocation51_spill] sm:$0xff]  ;;  %v5706_v18 = vld [vmem:[#allocation52_spill] sm:$0xff] }
 0x3d1   :  { %2043 = vmatpush.bf16.msrb.mxu2 %v5696_v58  ;;  %2056 = vmatpush.bf16.msra.mxu3 %v5697_v5  ;;  %v5707_v58 = vld [vmem:[#allocation53_spill] sm:$0xff]  ;;  %v5708_v5 = vld [vmem:[#allocation56_spill] sm:$0xff] }
 0x3d3   :  { %2018 = vmatpush.bf16.msra.mxu0 %v5698_v47  ;;  %2031 = vmatpush.bf16.msrb.mxu1 %v5699_v56  ;;  %v5709_v47 = vld [vmem:[#allocation57_spill] sm:$0xff]  ;;  %v5710_v56 = vld [vmem:[#allocation54_spill] sm:$0xff] }
 0x3d5   :  { %2044 = vmatpush.bf16.msrb.mxu2 %v5700_v63  ;;  %2057 = vmatpush.bf16.msra.mxu3 %v5701_v2  ;;  %v5711_v63 = vld [vmem:[#allocation55_spill] sm:$0xff]  ;;  %v5712_v2 = vld [vmem:[#allocation58_spill] sm:$0xff] }
 0x3d7   :  { %2019 = vmatpush.bf16.msra.mxu0 %v5702_v4  ;;  %2032 = vmatpush.bf16.msrb.mxu1 %v5703_v32  ;;  %v5713_v4 = vld [vmem:[#allocation59_spill] sm:$0xff]  ;;  %v5714_v32 = vld [vmem:[#allocation60_spill] sm:$0xff] }
 0x3d9   :  { %2045 = vmatpush.bf16.msrb.mxu2 %v5704_v42  ;;  %2058 = vmatpush.bf16.msra.mxu3 %v5705_v49  ;;  %v5715_v42 = vld [vmem:[#allocation61_spill] sm:$0xff]  ;;  %v5716_v49 = vld [vmem:[#allocation62_spill] sm:$0xff] }
 0x3db   :  { %2020 = vmatpush.bf16.msra.mxu0 %v5706_v18  ;;  %2033 = vmatpush.bf16.msrb.mxu1 %v5707_v58  ;;  %v5717_v18 = vld [vmem:[#allocation63_spill] sm:$0xff]  ;;  %v5718_v58 = vld [vmem:[#allocation64_spill] sm:$0xff] }
 0x3dd   :  { %2046 = vmatpush.bf16.msrb.mxu2 %v5710_v56  ;;  %2059 = vmatpush.bf16.msra.mxu3 %v5711_v63  ;;  %v5721_v56 = vld [vmem:[#allocation67_spill] sm:$0xff]  ;;  %v5722_v63 = vld [vmem:[#allocation68_spill] sm:$0xff] }
 0x3df   :  { %2068 = vmatpush.bf16.msrb.mxu0 %v5708_v5  ;;  %2081 = vmatpush.bf16.msra.mxu1 %v5709_v47  ;;  %v5719_v5 = vld [vmem:[#allocation65_spill] sm:$0xff]  ;;  %v5720_v47 = vld [vmem:[#allocation66_spill] sm:$0xff] }
 0x3e1   :  { %2094 = vmatpush.bf16.msra.mxu2 %v5712_v2  ;;  %2107 = vmatpush.bf16.msrb.mxu3 %v5713_v4  ;;  %v5723_v2 = vld [vmem:[#allocation69_spill] sm:$0xff]  ;;  %v5724_v4 = vld [vmem:[#allocation70_spill] sm:$0xff] }
 0x3e3   :  { %2069 = vmatpush.bf16.msrb.mxu0 %v5714_v32  ;;  %2082 = vmatpush.bf16.msra.mxu1 %v5715_v42  ;;  %v5725_v32 = vld [vmem:[#allocation71_spill] sm:$0xff]  ;;  %v5726_v42 = vld [vmem:[#allocation72_spill] sm:$0xff] }
 0x3e5   :  { %2095 = vmatpush.bf16.msra.mxu2 %v5716_v49  ;;  %2108 = vmatpush.bf16.msrb.mxu3 %v5717_v18  ;;  %v5727_v49 = vld [vmem:[#allocation73_spill] sm:$0xff]  ;;  %v5728_v18 = vld [vmem:[#allocation74_spill] sm:$0xff] }
 0x3e7   :  { %2070 = vmatpush.bf16.msrb.mxu0 %v5718_v58  ;;  %2083 = vmatpush.bf16.msra.mxu1 %v5719_v5  ;;  %v5729_v58 = vld [vmem:[#allocation75_spill] sm:$0xff]  ;;  %v5730_v5 = vld [vmem:[#allocation76_spill] sm:$0xff] }
 0x3e9   :  { %2096 = vmatpush.bf16.msra.mxu2 %v5720_v47  ;;  %2109 = vmatpush.bf16.msrb.mxu3 %v5721_v56  ;;  %v5731_v47 = vld [vmem:[#allocation77_spill] sm:$0xff]  ;;  %v5732_v56 = vld [vmem:[#allocation78_spill] sm:$0xff] }
 0x3eb   :  { %2071 = vmatpush.bf16.msrb.mxu0 %v5722_v63  ;;  %2084 = vmatpush.bf16.msra.mxu1 %v5723_v2  ;;  %v5733_v63 = vld [vmem:[#allocation79_spill] sm:$0xff]  ;;  %v5734_v2 = vld [vmem:[#allocation80_spill] sm:$0xff] }
 0x3ed   :  { %2097 = vmatpush.bf16.msra.mxu2 %v5724_v4  ;;  %2110 = vmatpush.bf16.msrb.mxu3 %v5725_v32  ;;  %v5735_v4 = vld [vmem:[#allocation81_spill] sm:$0xff]  ;;  %v5736_v32 = vld [vmem:[#allocation82_spill] sm:$0xff] }
 0x3ef   :  { %2072 = vmatpush.bf16.msrb.mxu0 %v5726_v42  ;;  %2085 = vmatpush.bf16.msra.mxu1 %v5727_v49  ;;  %v5737_v42 = vld [vmem:[#allocation83_spill] sm:$0xff]  ;;  %v5738_v49 = vld [vmem:[#allocation84_spill] sm:$0xff] }
 0x3f1   :  { %2098 = vmatpush.bf16.msra.mxu2 %v5728_v18  ;;  %2111 = vmatpush.bf16.msrb.mxu3 %v5729_v58  ;;  %v5739_v18 = vld [vmem:[#allocation85_spill] sm:$0xff]  ;;  %v5740_v58 = vld [vmem:[#allocation86_spill] sm:$0xff] }
 0x3f3   :  { %2073 = vmatpush.bf16.msrb.mxu0 %v5730_v5  ;;  %2086 = vmatpush.bf16.msra.mxu1 %v5731_v47  ;;  %v5741_v5 = vld [vmem:[#allocation87_spill] sm:$0xff] }
 0x3f5   :  { %2099 = vmatpush.bf16.msra.mxu2 %v5732_v56  ;;  %2112 = vmatpush.bf16.msrb.mxu3 %v5733_v63 }
 0x3f7   :  { %2074 = vmatpush.bf16.msrb.mxu0 %v5734_v2  ;;  %2087 = vmatpush.bf16.msra.mxu1 %v5735_v4 }
 0x3f9   :  { %2100 = vmatpush.bf16.msra.mxu2 %v5736_v32  ;;  %2113 = vmatpush.bf16.msrb.mxu3 %v5737_v42 }
 0x3fb   :  { %2075 = vmatpush.bf16.msrb.mxu0 %v5738_v49  ;;  %2088 = vmatpush.bf16.msra.mxu1 %v5739_v18 }
 0x3fd   :  { %2101 = vmatpush.bf16.msra.mxu2 %v5740_v58  ;;  %2114 = vmatpush.bf16.msrb.mxu3 %v5741_v5 }
 0x41a   :  { %v1805_v47 = vpop.f32.mrf.mxu0  ;;  %v1818_v56 = vpop.f32.mrf.mxu1 }
 0x421   :  { %v1831_v50 = vpop.f32.mrf.mxu2  ;;  %v1844_v63 = vpop.f32.mrf.mxu3 }
 0x422   :  { %v1807_v10 = vpop.f32.mrf.mxu0  ;;  %v1820_v2 = vpop.f32.mrf.mxu1 }
 0x429   :  { %v1833_v38 = vpop.f32.mrf.mxu2  ;;  %v1846_v4 = vpop.f32.mrf.mxu3 }
 0x42a   :  { %v1857_v28 = vpop.f32.mrf.mxu0  ;;  %v1870_v32 = vpop.f32.mrf.mxu1  ;;  %v5742_v38 = vld [vmem:[#allocation95_spill] sm:$0xff] }
 0x42b   :  { %v1858_v53 = vadd.f32 %v1857_v28, %v1805_v47  ;;  %v1871_v42 = vadd.f32 %v1870_v32, %v1818_v56 }
 0x42d   :  { %v1900_v49 = vadd.f32 %v1858_v53, %v4438_v0  ;;  %v1901_v18 = vadd.f32 %v1871_v42, %v5548_v6 }
 0x42f   :  { %v1904_v31 = vmul.f32 0.5, %v1900_v49  ;;  %v1908_v58 = vmul.f32 0.5, %v1901_v18 }
 0x431   :  { %3554 = vtanh.f32 %v1904_v31  ;;  %v1883_v5 = vpop.f32.mrf.mxu2  ;;  %v1896_v59 = vpop.f32.mrf.mxu3 }
 0x432   :  { %3556 = vtanh.f32 %v1908_v58  ;;  %v1884_v62 = vadd.f32 %v1883_v5, %v1831_v50  ;;  %v1897_v35 = vadd.f32 %v1896_v59, %v1844_v63  ;;  %v1859_v10 = vpop.f32.mrf.mxu0  ;;  %v1872_v2 = vpop.f32.mrf.mxu1 }
 0x434   :  { %v1902_v4 = vadd.f32 %v1884_v62, %v5742_v38  ;;  %v1903_v1 = vadd.f32 %v1897_v35, %v5743_v54 }
 0x436   :  { %3558 = vtanh.f32 %v1902_v4  ;;  %v1913_v28 = vmul.f32 0.5, %v1903_v1  ;;  %v5744_v1 = vld [vmem:[#allocation21_spill] sm:$0xff] }
 0x437   :  { %v3555_v47 = vpop.eup %3554 }
 0x438   :  { %v3557_v53 = vpop.eup %3556  ;;  %v1906_v56 = vmul.f32 0.5, %v3555_v47  ;;  %3560 = vtanh.f32 %v1913_v28 }
 0x439   :  { %v1910_v42 = vmul.f32 0.5, %v3557_v53  ;;  %v1885_v49 = vpop.f32.mrf.mxu2  ;;  %v1898_v31 = vpop.f32.mrf.mxu3 }
 0x43a   :  { %v1907_v18 = vadd.f32 0.5, %v1906_v56 }
 0x43b   :  { %v1911_v32 = vadd.f32 0.5, %v1910_v42  ;;  %v1931_v58 = vpop.f32.mrf.mxu0  ;;  %v1944_v50 = vpop.f32.mrf.mxu1 }
 0x43c   :  { %v3559_v59 = vpop.eup %3558  ;;  %v1978_v5 = vrot.slane %v1931_v58, 6  ;;  %v1979_v63 = vrot.slane %v1944_v50, 6 }
 0x43d   :  { %v1917_v62 = vmul.f32 %v1911_v32, %v4798_v41  ;;  %v1918_v10 = vmul.f32 %v3559_v59, %v1907_v18  ;;  %v5745_v32 = vld [vmem:[#allocation22_spill] sm:$0xff] }
 0x43e   :  { %v1986_v35 = vadd.f32 %v1978_v5, %v4793_v29  ;;  %v1987_v2 = vadd.f32 %v1979_v63, %v5744_v1  ;;  %v3561_v4 = vpop.eup %3560 }
 0x43f   :  { %v4920_v47 = vadd.f32 %v1918_v10, %v1917_v62  ;;  %v1915_v56 = vmul.f32 0.5, %v3561_v4 }
 0x440   :  { %v1990_v28 = vmul.f32 0.5, %v1986_v35  ;;  %v1994_v53 = vmul.f32 0.5, %v1987_v2 }
 0x441   :  { %3562 = vtanh.f32 %v4920_v47  ;;  %v1916_v5 = vadd.f32 0.5, %v1915_v56 }
 0x442   :  { %3564 = vtanh.f32 %v1990_v28 }
 0x443   :  { %v1957_v42 = vpop.f32.mrf.mxu2  ;;  %v1970_v49 = vpop.f32.mrf.mxu3  ;;  %3566 = vtanh.f32 %v1994_v53 }
 0x444   :  { %v1980_v31 = vrot.slane %v1957_v42, 6  ;;  %v1981_v58 = vrot.slane %v1970_v49, 6  ;;  %v1933_v41 = vpop.f32.mrf.mxu0  ;;  %v1946_v18 = vpop.f32.mrf.mxu1 }
 0x445   :  { %v2004_v18 = vrot.slane %v4814_v43, 6 }
 0x446   :  { %v1988_v50 = vadd.f32 %v1980_v31, %v5745_v32  ;;  %v1989_v59 = vadd.f32 %v1981_v58, %v4808_v11 }
 0x447   :  { %v3563_v63 = vpop.eup %3562 }
 0x448   :  { %3568 = vtanh.f32 %v1988_v50  ;;  %v1999_v62 = vmul.f32 0.5, %v1989_v59  ;;  %v3565_v10 = vpop.eup %3564  ;;  %v1921_v35 = vmul.f32 %v3563_v63, %v1916_v5 }
 0x449   :  { %v3567_v2 = vpop.eup %3566  ;;  %v1992_v4 = vmul.f32 0.5, %v3565_v10 }
 0x44a   :  { %v2012_v28 = vpack.c.bf16 %v1921_v35, %v1921_v35  ;;  %v1996_v1 = vmul.f32 0.5, %v3567_v2  ;;  %3570 = vtanh.f32 %v1999_v62  ;;  %v5746_v35 = vld [vmem:[#allocation27_spill] sm:$0xff]  ;;  %v5747_v2 = vld [vmem:[#allocation28_spill] sm:$0xff] }
 0x44b   :  { %v1959_v53 = vpop.f32.mrf.mxu2  ;;  %v1972_v42 = vpop.f32.mrf.mxu3  ;;  %v1993_v49 = vadd.f32 0.5, %v1992_v4  ;;  %v5748_v4 = vld [vmem:[#allocation30_spill] sm:$0xff] }
 0x44c   :  { %v1997_v41 = vadd.f32 0.5, %v1996_v1  ;;  %2021 = vmatmul.bf16.vlgmr.msra.gmra.mxu0 %v2012_v28  ;;  %2034 = vmatmul.bf16.vlgmr.msrb.gmra.mxu1 %v2012_v28  ;;  %v5750_v53 = vld [vmem:[#allocation31_spill] sm:$0xff]  ;;  %v5751_v42 = vld [vmem:[#allocation32_spill] sm:$0xff] }
 0x44d   :  { %2047 = vmatmul.bf16.vlgmr.msrb.gmra.mxu2 %v2012_v28  ;;  %2060 = vmatmul.bf16.vlgmr.msra.gmra.mxu3 %v2012_v28  ;;  %v5749_v28 = vld [vmem:[#allocation33_spill] sm:$0xff] }
 0x44e   :  { %v3569_v31 = vpop.eup %3568  ;;  %v2006_v56 = vmul.f32 %v2004_v18, %v1997_v41  ;;  %2142 = vmatpush.bf16.msra.mxu0 %v3960_v12  ;;  %2155 = vmatpush.bf16.msrb.mxu1 %v3986_v30  ;;  %v5753_v41 = vld [vmem:[#allocation37_spill] sm:$0xff]  ;;  %v5754_v18 = vld [vmem:[#allocation35_spill] sm:$0xff] }
 0x44f   :  { %v2007_v58 = vmul.f32 %v3569_v31, %v1993_v49  ;;  %2168 = vmatpush.bf16.msrb.mxu2 %v3994_v34  ;;  %2181 = vmatpush.bf16.msra.mxu3 %v4017_v52  ;;  %v5752_v49 = vld [vmem:[#allocation34_spill] sm:$0xff]  ;;  %v5755_v31 = vld [vmem:[#allocation36_spill] sm:$0xff] }
 0x450   :  { %v3571_v50 = vpop.eup %3570 }
 0x451   :  { %v4930_v59 = vadd.f32 %v2007_v58, %v2006_v56  ;;  %v2001_v43 = vmul.f32 0.5, %v3571_v50  ;;  %v5756_v56 = vld [vmem:[#allocation38_spill] sm:$0xff]  ;;  %v5757_v58 = vld [vmem:[#allocation41_spill] sm:$0xff]  ;;  %v5758_v50 = vld [vmem:[#allocation39_spill] sm:$0xff] }
 0x452   :  { %2143 = vmatpush.bf16.msra.mxu0 %v3984_v25  ;;  %2156 = vmatpush.bf16.msrb.mxu1 %v4009_v44 }
 0x453   :  { %3572 = vtanh.f32 %v4930_v59  ;;  %2169 = vmatpush.bf16.msrb.mxu2 %v4013_v48  ;;  %2182 = vmatpush.bf16.msra.mxu3 %v5488_v37  ;;  %v2002_v1 = vadd.f32 0.5, %v2001_v43  ;;  %v5759_v43 = vld [vmem:[#allocation40_spill] sm:$0xff] }
 0x456   :  { %2144 = vmatpush.bf16.msra.mxu0 %v4002_v39  ;;  %2157 = vmatpush.bf16.msrb.mxu1 %v4026_v60 }
 0x457   :  { %2170 = vmatpush.bf16.msrb.mxu2 %v4028_v61  ;;  %2183 = vmatpush.bf16.msra.mxu3 %v5489_v14 }
 0x459   :  { %v3573_v5 = vpop.eup %3572 }
 0x45a   :  { %v2010_v63 = vmul.f32 %v3573_v5, %v2002_v1  ;;  %2145 = vmatpush.bf16.msra.mxu0 %v5490_v24  ;;  %2158 = vmatpush.bf16.msrb.mxu1 %v4038_v8  ;;  %v5760_v1 = vld [vmem:[#allocation42_spill] sm:$0xff]  ;;  %v5761_v5 = vld [vmem:[#allocation43_spill] sm:$0xff] }
 0x45b   :  { %2171 = vmatpush.bf16.msrb.mxu2 %v4040_v9  ;;  %2184 = vmatpush.bf16.msra.mxu3 %v4055_v27 }
 0x45c   :  { %v2011_v62 = vpack.c.bf16 %v2010_v63, %v2010_v63  ;;  %v5762_v63 = vld [vmem:[#allocation44_spill] sm:$0xff] }
 0x45e   :  { %v2066_v10 = vrot.slane %v2011_v62, 1  ;;  %2146 = vmatpush.bf16.msra.mxu0 %v4034_v7  ;;  %2159 = vmatpush.bf16.msrb.mxu1 %v4050_v21  ;;  %v5763_v62 = vld [vmem:[#allocation45_spill] sm:$0xff] }
 0x45f   :  { %2172 = vmatpush.bf16.msrb.mxu2 %v4052_v22  ;;  %2185 = vmatpush.bf16.msra.mxu3 %v4067_v45 }
 0x460   :  { %2076 = vmatmul.bf16.vlgmr.msrb.gmra.mxu0 %v2066_v10  ;;  %2089 = vmatmul.bf16.vlgmr.msra.gmra.mxu1 %v2066_v10 }
 0x461   :  { %2102 = vmatmul.bf16.vlgmr.msra.gmra.mxu2 %v2066_v10  ;;  %2115 = vmatmul.bf16.vlgmr.msrb.gmra.mxu3 %v2066_v10 }
 0x462   :  { %2147 = vmatpush.bf16.msra.mxu0 %v4046_v20  ;;  %2160 = vmatpush.bf16.msrb.mxu1 %v5491_v17 }
 0x463   :  { %2173 = vmatpush.bf16.msrb.mxu2 %v4064_v40  ;;  %2186 = vmatpush.bf16.msra.mxu3 %v5492_v19 }
 0x466   :  { %2148 = vmatpush.bf16.msra.mxu0 %v4058_v36  ;;  %2161 = vmatpush.bf16.msrb.mxu1 %v4076_v55 }
 0x467   :  { %2174 = vmatpush.bf16.msrb.mxu2 %v4078_v57  ;;  %2187 = vmatpush.bf16.msra.mxu3 %v5493_v13 }
 0x46a   :  { %2149 = vmatpush.bf16.msra.mxu0 %v5494_v33  ;;  %2162 = vmatpush.bf16.msrb.mxu1 %v4088_v15 }
 0x46b   :  { %2175 = vmatpush.bf16.msrb.mxu2 %v4090_v16  ;;  %2188 = vmatpush.bf16.msra.mxu3 %v4106_v46 }
 0x46e   :  { %2233 = vmatpush.bf16.msrb.mxu0 %v4083_v3  ;;  %2246 = vmatpush.bf16.msra.mxu1 %v4096_v23 }
 0x46f   :  { %2259 = vmatpush.bf16.msra.mxu2 %v4099_v26  ;;  %2272 = vmatpush.bf16.msrb.mxu3 %v5612_v51 }
 0x470   :  { %2150 = vmatmul.bf16.vlgmr.msra.gmra.mxu0 %v2066_v10  ;;  %2163 = vmatmul.bf16.vlgmr.msrb.gmra.mxu1 %v2066_v10 }
 0x471   :  { %2176 = vmatmul.bf16.vlgmr.msrb.gmra.mxu2 %v2066_v10  ;;  %2189 = vmatmul.bf16.vlgmr.msra.gmra.mxu3 %v2066_v10  ;;  %v5764_v10 = vld [vmem:[#allocation46_spill] sm:$0xff] }
 0x472   :  { %2234 = vmatpush.bf16.msrb.mxu0 %v5746_v35  ;;  %2247 = vmatpush.bf16.msra.mxu1 %v5747_v2 }
 0x473   :  { %2260 = vmatpush.bf16.msra.mxu2 %v5748_v4  ;;  %2273 = vmatpush.bf16.msrb.mxu3 %v5749_v28 }
 0x476   :  { %2235 = vmatpush.bf16.msrb.mxu0 %v5750_v53  ;;  %2248 = vmatpush.bf16.msra.mxu1 %v5751_v42 }
 0x477   :  { %2261 = vmatpush.bf16.msra.mxu2 %v5752_v49  ;;  %2274 = vmatpush.bf16.msrb.mxu3 %v5753_v41 }
 0x47a   :  { %2236 = vmatpush.bf16.msrb.mxu0 %v5754_v18  ;;  %2249 = vmatpush.bf16.msra.mxu1 %v5755_v31  ;;  %v5765_v18 = vld [vmem:[#allocation47_spill] sm:$0xff]  ;;  %v5766_v31 = vld [vmem:[#allocation48_spill] sm:$0xff] }
 0x47b   :  { %2262 = vmatpush.bf16.msra.mxu2 %v5756_v56  ;;  %2275 = vmatpush.bf16.msrb.mxu3 %v5757_v58  ;;  %v5767_v56 = vld [vmem:[#allocation49_spill] sm:$0xff]  ;;  %v5768_v58 = vld [vmem:[#allocation50_spill] sm:$0xff] }
 0x47e   :  { %2237 = vmatpush.bf16.msrb.mxu0 %v5758_v50  ;;  %2250 = vmatpush.bf16.msra.mxu1 %v5759_v43  ;;  %v5769_v50 = vld [vmem:[#allocation51_spill] sm:$0xff]  ;;  %v5770_v43 = vld [vmem:[#allocation52_spill] sm:$0xff] }
 0x47f   :  { %2263 = vmatpush.bf16.msra.mxu2 %v5760_v1  ;;  %2276 = vmatpush.bf16.msrb.mxu3 %v5761_v5  ;;  %v5771_v1 = vld [vmem:[#allocation53_spill] sm:$0xff]  ;;  %v5772_v5 = vld [vmem:[#allocation54_spill] sm:$0xff] }
 0x482   :  { %2238 = vmatpush.bf16.msrb.mxu0 %v5762_v63  ;;  %2251 = vmatpush.bf16.msra.mxu1 %v5763_v62  ;;  %v5773_v63 = vld [vmem:[#allocation55_spill] sm:$0xff]  ;;  %v5774_v62 = vld [vmem:[#allocation56_spill] sm:$0xff] }
 0x483   :  { %2264 = vmatpush.bf16.msra.mxu2 %v5764_v10  ;;  %2277 = vmatpush.bf16.msrb.mxu3 %v5765_v18  ;;  %v5775_v10 = vld [vmem:[#allocation57_spill] sm:$0xff]  ;;  %v5776_v18 = vld [vmem:[#allocation58_spill] sm:$0xff] }
 0x486   :  { %2239 = vmatpush.bf16.msrb.mxu0 %v5766_v31  ;;  %2252 = vmatpush.bf16.msra.mxu1 %v5767_v56  ;;  %v5777_v31 = vld [vmem:[#allocation59_spill] sm:$0xff]  ;;  %v5778_v56 = vld [vmem:[#allocation60_spill] sm:$0xff] }
 0x487   :  { %2265 = vmatpush.bf16.msra.mxu2 %v5768_v58  ;;  %2278 = vmatpush.bf16.msrb.mxu3 %v5769_v50  ;;  %v5779_v58 = vld [vmem:[#allocation61_spill] sm:$0xff]  ;;  %v5780_v50 = vld [vmem:[#allocation62_spill] sm:$0xff] }
 0x48a   :  { %2240 = vmatpush.bf16.msrb.mxu0 %v5770_v43  ;;  %2253 = vmatpush.bf16.msra.mxu1 %v5771_v1  ;;  %v5781_v43 = vld [vmem:[#allocation63_spill] sm:$0xff]  ;;  %v5782_v1 = vld [vmem:[#allocation64_spill] sm:$0xff] }
 0x48b   :  { %2266 = vmatpush.bf16.msra.mxu2 %v5772_v5  ;;  %2279 = vmatpush.bf16.msrb.mxu3 %v5773_v63  ;;  %v5783_v5 = vld [vmem:[#allocation65_spill] sm:$0xff]  ;;  %v5784_v63 = vld [vmem:[#allocation66_spill] sm:$0xff] }
 0x48e   :  { %2288 = vmatpush.bf16.msra.mxu0 %v5774_v62  ;;  %2301 = vmatpush.bf16.msrb.mxu1 %v5775_v10  ;;  %v5785_v62 = vld [vmem:[#allocation67_spill] sm:$0xff]  ;;  %v5786_v10 = vld [vmem:[#allocation68_spill] sm:$0xff] }
 0x48f   :  { %2314 = vmatpush.bf16.msrb.mxu2 %v5776_v18  ;;  %2327 = vmatpush.bf16.msra.mxu3 %v5777_v31  ;;  %v5787_v18 = vld [vmem:[#allocation69_spill] sm:$0xff]  ;;  %v5788_v31 = vld [vmem:[#allocation70_spill] sm:$0xff] }
 0x492   :  { %2289 = vmatpush.bf16.msra.mxu0 %v5778_v56  ;;  %2302 = vmatpush.bf16.msrb.mxu1 %v5779_v58  ;;  %v5789_v56 = vld [vmem:[#allocation71_spill] sm:$0xff]  ;;  %v5790_v58 = vld [vmem:[#allocation72_spill] sm:$0xff] }
 0x493   :  { %2315 = vmatpush.bf16.msrb.mxu2 %v5780_v50  ;;  %2328 = vmatpush.bf16.msra.mxu3 %v5781_v43  ;;  %v5791_v50 = vld [vmem:[#allocation73_spill] sm:$0xff]  ;;  %v5792_v43 = vld [vmem:[#allocation74_spill] sm:$0xff] }
 0x496   :  { %2290 = vmatpush.bf16.msra.mxu0 %v5782_v1  ;;  %2303 = vmatpush.bf16.msrb.mxu1 %v5783_v5  ;;  %v5793_v1 = vld [vmem:[#allocation75_spill] sm:$0xff]  ;;  %v5794_v5 = vld [vmem:[#allocation76_spill] sm:$0xff] }
 0x497   :  { %2316 = vmatpush.bf16.msrb.mxu2 %v5784_v63  ;;  %2329 = vmatpush.bf16.msra.mxu3 %v5785_v62  ;;  %v5795_v63 = vld [vmem:[#allocation77_spill] sm:$0xff]  ;;  %v5796_v62 = vld [vmem:[#allocation78_spill] sm:$0xff] }
 0x49a   :  { %2291 = vmatpush.bf16.msra.mxu0 %v5786_v10  ;;  %2304 = vmatpush.bf16.msrb.mxu1 %v5787_v18  ;;  %v5797_v10 = vld [vmem:[#allocation79_spill] sm:$0xff]  ;;  %v5798_v18 = vld [vmem:[#allocation80_spill] sm:$0xff] }
 0x49b   :  { %2317 = vmatpush.bf16.msrb.mxu2 %v5788_v31  ;;  %2330 = vmatpush.bf16.msra.mxu3 %v5789_v56  ;;  %v5799_v31 = vld [vmem:[#allocation81_spill] sm:$0xff]  ;;  %v5800_v56 = vld [vmem:[#allocation82_spill] sm:$0xff] }
 0x49e   :  { %2292 = vmatpush.bf16.msra.mxu0 %v5790_v58  ;;  %2305 = vmatpush.bf16.msrb.mxu1 %v5791_v50  ;;  %v5801_v58 = vld [vmem:[#allocation83_spill] sm:$0xff]  ;;  %v5802_v50 = vld [vmem:[#allocation84_spill] sm:$0xff] }
 0x49f   :  { %2318 = vmatpush.bf16.msrb.mxu2 %v5792_v43  ;;  %2331 = vmatpush.bf16.msra.mxu3 %v5793_v1  ;;  %v5803_v43 = vld [vmem:[#allocation85_spill] sm:$0xff]  ;;  %v5804_v1 = vld [vmem:[#allocation86_spill] sm:$0xff] }
 0x4a2   :  { %2293 = vmatpush.bf16.msra.mxu0 %v5794_v5  ;;  %2306 = vmatpush.bf16.msrb.mxu1 %v5795_v63  ;;  %v5805_v5 = vld [vmem:[#allocation87_spill] sm:$0xff] }
 0x4a3   :  { %2319 = vmatpush.bf16.msrb.mxu2 %v5796_v62  ;;  %2332 = vmatpush.bf16.msra.mxu3 %v5797_v10 }
 0x4a6   :  { %2294 = vmatpush.bf16.msra.mxu0 %v5798_v18  ;;  %2307 = vmatpush.bf16.msrb.mxu1 %v5799_v31 }
 0x4a7   :  { %2320 = vmatpush.bf16.msrb.mxu2 %v5800_v56  ;;  %2333 = vmatpush.bf16.msra.mxu3 %v5801_v58 }
 0x4aa   :  { %2295 = vmatpush.bf16.msra.mxu0 %v5802_v50  ;;  %2308 = vmatpush.bf16.msrb.mxu1 %v5803_v43 }
 0x4ab   :  { %2321 = vmatpush.bf16.msrb.mxu2 %v5804_v1  ;;  %2334 = vmatpush.bf16.msra.mxu3 %v5805_v5 }
 0x4c9   :  { %v2022_v63 = vpop.f32.mrf.mxu0  ;;  %v2035_v62 = vpop.f32.mrf.mxu1 }
 0x4d0   :  { %v2048_v41 = vpop.f32.mrf.mxu2  ;;  %v2061_v10 = vpop.f32.mrf.mxu3 }
 0x4d1   :  { %v2024_v49 = vpop.f32.mrf.mxu0  ;;  %v2037_v18 = vpop.f32.mrf.mxu1 }
 0x4d8   :  { %v2050_v42 = vpop.f32.mrf.mxu2  ;;  %v2063_v31 = vpop.f32.mrf.mxu3 }
 0x4dd   :  { %v2077_v53 = vpop.f32.mrf.mxu0  ;;  %v2090_v56 = vpop.f32.mrf.mxu1 }
 0x4de   :  { %v2078_v28 = vadd.f32 %v2077_v53, %v2022_v63  ;;  %v2091_v58 = vadd.f32 %v2090_v56, %v2035_v62 }
 0x4e0   :  { %v2120_v50 = vadd.f32 %v2078_v28, %v4438_v0  ;;  %v2121_v43 = vadd.f32 %v2091_v58, %v5548_v6 }
 0x4e2   :  { %v2124_v4 = vmul.f32 0.5, %v2120_v50  ;;  %v2128_v1 = vmul.f32 0.5, %v2121_v43 }
 0x4e4   :  { %3574 = vtanh.f32 %v2124_v4  ;;  %v2103_v5 = vpop.f32.mrf.mxu2  ;;  %v2116_v2 = vpop.f32.mrf.mxu3 }
 0x4e5   :  { %3576 = vtanh.f32 %v2128_v1  ;;  %v2104_v35 = vadd.f32 %v2103_v5, %v2048_v41  ;;  %v2117_v51 = vadd.f32 %v2116_v2, %v2061_v10  ;;  %v2079_v49 = vpop.f32.mrf.mxu0  ;;  %v2092_v18 = vpop.f32.mrf.mxu1 }
 0x4e6   :  { %v5806_v18 = vld [vmem:[#allocation21_spill] sm:$0xff] }
 0x4e7   :  { %v2122_v42 = vadd.f32 %v2104_v35, %v5742_v38  ;;  %v2123_v31 = vadd.f32 %v2117_v51, %v5743_v54 }
 0x4e9   :  { %3578 = vtanh.f32 %v2122_v42  ;;  %v2133_v53 = vmul.f32 0.5, %v2123_v31 }
 0x4ea   :  { %v3575_v56 = vpop.eup %3574 }
 0x4eb   :  { %v3577_v28 = vpop.eup %3576  ;;  %v2126_v63 = vmul.f32 0.5, %v3575_v56  ;;  %3580 = vtanh.f32 %v2133_v53 }
 0x4ec   :  { %v2130_v58 = vmul.f32 0.5, %v3577_v28  ;;  %v2105_v50 = vpop.f32.mrf.mxu2  ;;  %v2118_v4 = vpop.f32.mrf.mxu3 }
 0x4ed   :  { %v2127_v43 = vadd.f32 0.5, %v2126_v63  ;;  %v2151_v62 = vpop.f32.mrf.mxu0  ;;  %v2164_v1 = vpop.f32.mrf.mxu1 }
 0x4ee   :  { %v2131_v41 = vadd.f32 0.5, %v2130_v58  ;;  %v2198_v2 = vrot.slane %v2151_v62, 4  ;;  %v2199_v5 = vrot.slane %v2164_v1, 4 }
 0x4ef   :  { %v3579_v10 = vpop.eup %3578 }
 0x4f0   :  { %v2137_v35 = vmul.f32 %v2131_v41, %v4920_v47  ;;  %v2138_v49 = vmul.f32 %v3579_v10, %v2127_v43  ;;  %v2206_v51 = vadd.f32 %v2198_v2, %v4793_v29  ;;  %v2207_v42 = vadd.f32 %v2199_v5, %v5806_v18 }
 0x4f1   :  { %v3581_v31 = vpop.eup %3580 }
 0x4f2   :  { %v5032_v56 = vadd.f32 %v2138_v49, %v2137_v35  ;;  %v2210_v53 = vmul.f32 0.5, %v2206_v51  ;;  %v2214_v28 = vmul.f32 0.5, %v2207_v42  ;;  %v2135_v58 = vmul.f32 0.5, %v3581_v31 }
 0x4f4   :  { %3582 = vtanh.f32 %v5032_v56  ;;  %v2177_v63 = vpop.f32.mrf.mxu2  ;;  %v2190_v50 = vpop.f32.mrf.mxu3  ;;  %v2136_v2 = vadd.f32 0.5, %v2135_v58 }
 0x4f5   :  { %3584 = vtanh.f32 %v2210_v53  ;;  %v2200_v4 = vrot.slane %v2177_v63, 4  ;;  %v2201_v62 = vrot.slane %v2190_v50, 4  ;;  %v2153_v1 = vpop.f32.mrf.mxu0  ;;  %v2166_v47 = vpop.f32.mrf.mxu1 }
 0x4f6   :  { %3586 = vtanh.f32 %v2214_v28 }
 0x4f7   :  { %v2208_v43 = vadd.f32 %v2200_v4, %v5745_v32  ;;  %v2209_v41 = vadd.f32 %v2201_v62, %v4808_v11  ;;  %v2224_v4 = vrot.slane %v4930_v59, 6 }
 0x4f9   :  { %3588 = vtanh.f32 %v2208_v43  ;;  %v2219_v5 = vmul.f32 0.5, %v2209_v41  ;;  %v5837_v43 = vld [vmem:[#allocation57_spill] sm:$0xff]  ;;  %v5838_v41 = vld [vmem:[#allocation58_spill] sm:$0xff] }
 0x4fa   :  { %v3583_v10 = vpop.eup %3582 }
 0x4fb   :  { %v3585_v35 = vpop.eup %3584  ;;  %v2141_v49 = vmul.f32 %v3583_v10, %v2136_v2  ;;  %3590 = vtanh.f32 %v2219_v5  ;;  %v5839_v2 = vld [vmem:[#allocation59_spill] sm:$0xff]  ;;  %v5840_v5 = vld [vmem:[#allocation60_spill] sm:$0xff]  ;;  %v5841_v10 = vld [vmem:[#allocation61_spill] sm:$0xff] }
 0x4fc   :  { %v3587_v51 = vpop.eup %3586  ;;  %v2212_v42 = vmul.f32 0.5, %v3585_v35  ;;  %v2179_v18 = vpop.f32.mrf.mxu2  ;;  %v5842_v35 = vld [vmem:[#allocation62_spill] sm:$0xff] }
 0x4fd   :  { %v2192_v31 = vpop.f32.mrf.mxu3  ;;  %v2232_v53 = vpack.c.bf16 %v2141_v49, %v2141_v49  ;;  %v2216_v63 = vmul.f32 0.5, %v3587_v51  ;;  %v5843_v49 = vld [vmem:[#allocation63_spill] sm:$0xff]  ;;  %v5844_v51 = vld [vmem:[#allocation64_spill] sm:$0xff] }
 0x4fe   :  { %v2213_v50 = vadd.f32 0.5, %v2212_v42  ;;  %v5845_v42 = vld [vmem:[#allocation65_spill] sm:$0xff]  ;;  %v5846_v31 = vld [vmem:[#allocation66_spill] sm:$0xff] }
 0x4ff   :  { %v3589_v1 = vpop.eup %3588  ;;  %v2217_v28 = vadd.f32 0.5, %v2216_v63  ;;  %2241 = vmatmul.bf16.vlgmr.msrb.gmra.mxu0 %v2232_v53  ;;  %2254 = vmatmul.bf16.vlgmr.msra.gmra.mxu1 %v2232_v53  ;;  %v5848_v63 = vld [vmem:[#allocation68_spill] sm:$0xff] }
 0x500   :  { %v2227_v58 = vmul.f32 %v3589_v1, %v2213_v50  ;;  %2267 = vmatmul.bf16.vlgmr.msra.gmra.mxu2 %v2232_v53  ;;  %2280 = vmatmul.bf16.vlgmr.msrb.gmra.mxu3 %v2232_v53  ;;  %v5847_v53 = vld [vmem:[#allocation67_spill] sm:$0xff]  ;;  %v5849_v50 = vld [vmem:[#allocation69_spill] sm:$0xff]  ;;  %v5850_v1 = vld [vmem:[#allocation70_spill] sm:$0xff] }
 0x501   :  { %v2226_v62 = vmul.f32 %v2224_v4, %v2217_v28  ;;  %2362 = vmatpush.bf16.msrb.mxu0 %v3960_v12  ;;  %2375 = vmatpush.bf16.msra.mxu1 %v3986_v30  ;;  %v3591_v18 = vpop.eup %3590  ;;  %v5851_v28 = vld [vmem:[#allocation71_spill] sm:$0xff]  ;;  %v5852_v4 = vld [vmem:[#allocation72_spill] sm:$0xff] }
 0x502   :  { %2388 = vmatpush.bf16.msra.mxu2 %v3994_v34  ;;  %2401 = vmatpush.bf16.msrb.mxu3 %v4017_v52  ;;  %v2221_v59 = vmul.f32 0.5, %v3591_v18  ;;  %v5809_v52 = vld [vmem:[#allocation28_spill] sm:$0xff]  ;;  %v5855_v18 = vld [vmem:[#allocation75_spill] sm:$0xff] }
 0x503   :  { %v5042_v47 = vadd.f32 %v2227_v58, %v2226_v62  ;;  %v5853_v58 = vld [vmem:[#allocation73_spill] sm:$0xff]  ;;  %v5854_v62 = vld [vmem:[#allocation74_spill] sm:$0xff] }
 0x504   :  { %v2222_v12 = vadd.f32 0.5, %v2221_v59  ;;  %v5856_v59 = vld [vmem:[#allocation76_spill] sm:$0xff] }
 0x505   :  { %3592 = vtanh.f32 %v5042_v47  ;;  %2363 = vmatpush.bf16.msrb.mxu0 %v3984_v25  ;;  %2376 = vmatpush.bf16.msra.mxu1 %v4009_v44 }
 0x506   :  { %2389 = vmatpush.bf16.msra.mxu2 %v4013_v48  ;;  %2402 = vmatpush.bf16.msrb.mxu3 %v5488_v37  ;;  %v5808_v48 = vld [vmem:[#allocation27_spill] sm:$0xff]  ;;  %v5830_v37 = vld [vmem:[#allocation50_spill] sm:$0xff] }
 0x509   :  { %2364 = vmatpush.bf16.msrb.mxu0 %v4002_v39  ;;  %2377 = vmatpush.bf16.msra.mxu1 %v4026_v60  ;;  %v5807_v39 = vld [vmem:[#allocation29_spill] sm:$0xff]  ;;  %v5810_v60 = vld [vmem:[#allocation30_spill] sm:$0xff] }
 0x50a   :  { %2390 = vmatpush.bf16.msra.mxu2 %v4028_v61  ;;  %2403 = vmatpush.bf16.msrb.mxu3 %v5489_v14  ;;  %v5811_v61 = vld [vmem:[#allocation33_spill] sm:$0xff]  ;;  %v5831_v14 = vld [vmem:[#allocation51_spill] sm:$0xff] }
 0x50b   :  { %v3593_v30 = vpop.eup %3592 }
 0x50c   :  { %v2230_v34 = vmul.f32 %v3593_v30, %v2222_v12  ;;  %v5857_v12 = vld [vmem:[#allocation77_spill] sm:$0xff]  ;;  %v5858_v30 = vld [vmem:[#allocation78_spill] sm:$0xff] }
 0x50d   :  { %2365 = vmatpush.bf16.msrb.mxu0 %v5490_v24  ;;  %2378 = vmatpush.bf16.msra.mxu1 %v4038_v8  ;;  %v5813_v8 = vld [vmem:[#allocation32_spill] sm:$0xff] }
 0x50e   :  { %v2231_v25 = vpack.c.bf16 %v2230_v34, %v2230_v34  ;;  %2391 = vmatpush.bf16.msra.mxu2 %v4040_v9  ;;  %2404 = vmatpush.bf16.msrb.mxu3 %v4055_v27  ;;  %v5814_v9 = vld [vmem:[#allocation34_spill] sm:$0xff]  ;;  %v5832_v24 = vld [vmem:[#allocation52_spill] sm:$0xff]  ;;  %v5859_v34 = vld [vmem:[#allocation79_spill] sm:$0xff] }
 0x50f   :  { %v5818_v27 = vld [vmem:[#allocation38_spill] sm:$0xff] }
 0x510   :  { %v2286_v44 = vrot.slane %v2231_v25, 2  ;;  %v5860_v25 = vld [vmem:[#allocation80_spill] sm:$0xff] }
 0x511   :  { %2366 = vmatpush.bf16.msrb.mxu0 %v4034_v7  ;;  %2379 = vmatpush.bf16.msra.mxu1 %v4050_v21  ;;  %v5812_v7 = vld [vmem:[#allocation31_spill] sm:$0xff] }
 0x512   :  { %2296 = vmatmul.bf16.vlgmr.msra.gmra.mxu0 %v2286_v44  ;;  %2309 = vmatmul.bf16.vlgmr.msrb.gmra.mxu1 %v2286_v44  ;;  %v5816_v21 = vld [vmem:[#allocation35_spill] sm:$0xff] }
 0x513   :  { %2322 = vmatmul.bf16.vlgmr.msrb.gmra.mxu2 %v2286_v44  ;;  %2335 = vmatmul.bf16.vlgmr.msra.gmra.mxu3 %v2286_v44 }
 0x514   :  { %2392 = vmatpush.bf16.msra.mxu2 %v4052_v22  ;;  %2405 = vmatpush.bf16.msrb.mxu3 %v4067_v45  ;;  %v5817_v22 = vld [vmem:[#allocation36_spill] sm:$0xff] }
 0x515   :  { %2367 = vmatpush.bf16.msrb.mxu0 %v4046_v20  ;;  %2380 = vmatpush.bf16.msra.mxu1 %v5491_v17  ;;  %v5815_v20 = vld [vmem:[#allocation37_spill] sm:$0xff]  ;;  %v5821_v45 = vld [vmem:[#allocation40_spill] sm:$0xff] }
 0x516   :  { %v5833_v17 = vld [vmem:[#allocation53_spill] sm:$0xff] }
 0x518   :  { %2393 = vmatpush.bf16.msra.mxu2 %v4064_v40  ;;  %2406 = vmatpush.bf16.msrb.mxu3 %v5492_v19  ;;  %v5820_v40 = vld [vmem:[#allocation39_spill] sm:$0xff]  ;;  %v5834_v19 = vld [vmem:[#allocation54_spill] sm:$0xff] }
 0x519   :  { %2368 = vmatpush.bf16.msrb.mxu0 %v4058_v36  ;;  %2381 = vmatpush.bf16.msra.mxu1 %v4076_v55  ;;  %v5819_v36 = vld [vmem:[#allocation41_spill] sm:$0xff]  ;;  %v5822_v55 = vld [vmem:[#allocation42_spill] sm:$0xff] }
 0x51c   :  { %2394 = vmatpush.bf16.msra.mxu2 %v4078_v57  ;;  %2407 = vmatpush.bf16.msrb.mxu3 %v5493_v13  ;;  %v5823_v57 = vld [vmem:[#allocation43_spill] sm:$0xff] }
 0x51d   :  { %2369 = vmatpush.bf16.msrb.mxu0 %v5494_v33  ;;  %2382 = vmatpush.bf16.msra.mxu1 %v4088_v15  ;;  %v5825_v15 = vld [vmem:[#allocation45_spill] sm:$0xff]  ;;  %v5835_v13 = vld [vmem:[#allocation55_spill] sm:$0xff]  ;;  %v5836_v33 = vld [vmem:[#allocation56_spill] sm:$0xff] }
 0x520   :  { %2395 = vmatpush.bf16.msra.mxu2 %v4090_v16  ;;  %2408 = vmatpush.bf16.msrb.mxu3 %v4106_v46  ;;  %v5826_v16 = vld [vmem:[#allocation46_spill] sm:$0xff]  ;;  %v5829_v46 = vld [vmem:[#allocation49_spill] sm:$0xff] }
 0x521   :  { %2453 = vmatpush.bf16.msra.mxu0 %v4083_v3  ;;  %2466 = vmatpush.bf16.msrb.mxu1 %v4096_v23  ;;  %v5824_v3 = vld [vmem:[#allocation44_spill] sm:$0xff]  ;;  %v5827_v23 = vld [vmem:[#allocation47_spill] sm:$0xff] }
 0x522   :  { %2370 = vmatmul.bf16.vlgmr.msrb.gmra.mxu0 %v2286_v44  ;;  %2383 = vmatmul.bf16.vlgmr.msra.gmra.mxu1 %v2286_v44 }
 0x523   :  { %2396 = vmatmul.bf16.vlgmr.msra.gmra.mxu2 %v2286_v44  ;;  %2409 = vmatmul.bf16.vlgmr.msrb.gmra.mxu3 %v2286_v44  ;;  %v5861_v44 = vld [vmem:[#allocation81_spill] sm:$0xff] }
 0x524   :  { %2479 = vmatpush.bf16.msrb.mxu2 %v4099_v26  ;;  %2492 = vmatpush.bf16.msra.mxu3 %v5807_v39  ;;  %v5828_v26 = vld [vmem:[#allocation48_spill] sm:$0xff]  ;;  %v5862_v39 = vld [vmem:[#allocation82_spill] sm:$0xff] }
 0x525   :  { %2454 = vmatpush.bf16.msra.mxu0 %v5808_v48  ;;  %2467 = vmatpush.bf16.msrb.mxu1 %v5809_v52  ;;  %v5863_v48 = vld [vmem:[#allocation83_spill] sm:$0xff]  ;;  %v5864_v52 = vld [vmem:[#allocation84_spill] sm:$0xff] }
 0x528   :  { %2480 = vmatpush.bf16.msrb.mxu2 %v5810_v60  ;;  %2493 = vmatpush.bf16.msra.mxu3 %v5811_v61  ;;  %v5865_v60 = vld [vmem:[#allocation85_spill] sm:$0xff]  ;;  %v5866_v61 = vld [vmem:[#allocation86_spill] sm:$0xff] }
 0x529   :  { %2455 = vmatpush.bf16.msra.mxu0 %v5812_v7  ;;  %2468 = vmatpush.bf16.msrb.mxu1 %v5813_v8  ;;  %v5867_v7 = vld [vmem:[#allocation87_spill] sm:$0xff] }
 0x52c   :  { %2481 = vmatpush.bf16.msrb.mxu2 %v5814_v9  ;;  %2494 = vmatpush.bf16.msra.mxu3 %v5815_v20 }
 0x52d   :  { %2456 = vmatpush.bf16.msra.mxu0 %v5816_v21  ;;  %2469 = vmatpush.bf16.msrb.mxu1 %v5817_v22 }
 0x530   :  { %2482 = vmatpush.bf16.msrb.mxu2 %v5818_v27  ;;  %2495 = vmatpush.bf16.msra.mxu3 %v5819_v36 }
 0x531   :  { %2457 = vmatpush.bf16.msra.mxu0 %v5820_v40  ;;  %2470 = vmatpush.bf16.msrb.mxu1 %v5821_v45 }
 0x534   :  { %2483 = vmatpush.bf16.msrb.mxu2 %v5822_v55  ;;  %2496 = vmatpush.bf16.msra.mxu3 %v5823_v57 }
 0x535   :  { %2458 = vmatpush.bf16.msra.mxu0 %v5824_v3  ;;  %2471 = vmatpush.bf16.msrb.mxu1 %v5825_v15 }
 0x538   :  { %2484 = vmatpush.bf16.msrb.mxu2 %v5826_v16  ;;  %2497 = vmatpush.bf16.msra.mxu3 %v5827_v23 }
 0x539   :  { %2459 = vmatpush.bf16.msra.mxu0 %v5828_v26  ;;  %2472 = vmatpush.bf16.msrb.mxu1 %v5829_v46 }
 0x53c   :  { %2485 = vmatpush.bf16.msrb.mxu2 %v5830_v37  ;;  %2498 = vmatpush.bf16.msra.mxu3 %v5831_v14 }
 0x53d   :  { %2460 = vmatpush.bf16.msra.mxu0 %v5832_v24  ;;  %2473 = vmatpush.bf16.msrb.mxu1 %v5833_v17 }
 0x540   :  { %2486 = vmatpush.bf16.msrb.mxu2 %v5834_v19  ;;  %2499 = vmatpush.bf16.msra.mxu3 %v5835_v13 }
 0x541   :  { %2508 = vmatpush.bf16.msrb.mxu0 %v5836_v33  ;;  %2521 = vmatpush.bf16.msra.mxu1 %v5837_v43 }
 0x544   :  { %2534 = vmatpush.bf16.msra.mxu2 %v5838_v41  ;;  %2547 = vmatpush.bf16.msrb.mxu3 %v5839_v2 }
 0x545   :  { %2509 = vmatpush.bf16.msrb.mxu0 %v5840_v5  ;;  %2522 = vmatpush.bf16.msra.mxu1 %v5841_v10 }
 0x548   :  { %2535 = vmatpush.bf16.msra.mxu2 %v5842_v35  ;;  %2548 = vmatpush.bf16.msrb.mxu3 %v5843_v49 }
 0x549   :  { %2510 = vmatpush.bf16.msrb.mxu0 %v5844_v51  ;;  %2523 = vmatpush.bf16.msra.mxu1 %v5845_v42 }
 0x54c   :  { %2536 = vmatpush.bf16.msra.mxu2 %v5846_v31  ;;  %2549 = vmatpush.bf16.msrb.mxu3 %v5847_v53 }
 0x54d   :  { %2511 = vmatpush.bf16.msrb.mxu0 %v5848_v63  ;;  %2524 = vmatpush.bf16.msra.mxu1 %v5849_v50 }
 0x550   :  { %2537 = vmatpush.bf16.msra.mxu2 %v5850_v1  ;;  %2550 = vmatpush.bf16.msrb.mxu3 %v5851_v28 }
 0x551   :  { %2512 = vmatpush.bf16.msrb.mxu0 %v5852_v4  ;;  %2525 = vmatpush.bf16.msra.mxu1 %v5853_v58 }
 0x554   :  { %2538 = vmatpush.bf16.msra.mxu2 %v5854_v62  ;;  %2551 = vmatpush.bf16.msrb.mxu3 %v5855_v18  ;;  %v5868_v62 = vld [vmem:[#allocation21_spill] sm:$0xff] }
 0x555   :  { %2513 = vmatpush.bf16.msrb.mxu0 %v5856_v59  ;;  %2526 = vmatpush.bf16.msra.mxu1 %v5857_v12 }
 0x558   :  { %2539 = vmatpush.bf16.msra.mxu2 %v5858_v30  ;;  %2552 = vmatpush.bf16.msrb.mxu3 %v5859_v34 }
 0x559   :  { %2514 = vmatpush.bf16.msrb.mxu0 %v5860_v25  ;;  %2527 = vmatpush.bf16.msra.mxu1 %v5861_v44 }
 0x55c   :  { %2540 = vmatpush.bf16.msra.mxu2 %v5862_v39  ;;  %2553 = vmatpush.bf16.msrb.mxu3 %v5863_v48 }
 0x55d   :  { %2515 = vmatpush.bf16.msrb.mxu0 %v5864_v52  ;;  %2528 = vmatpush.bf16.msra.mxu1 %v5865_v60 }
 0x560   :  { %2541 = vmatpush.bf16.msra.mxu2 %v5866_v61  ;;  %2554 = vmatpush.bf16.msrb.mxu3 %v5867_v7 }
 0x57c   :  { %v2242_v8 = vpop.f32.mrf.mxu0  ;;  %v2255_v9 = vpop.f32.mrf.mxu1 }
 0x583   :  { %v2268_v20 = vpop.f32.mrf.mxu2  ;;  %v2281_v21 = vpop.f32.mrf.mxu3 }
 0x584   :  { %v2244_v22 = vpop.f32.mrf.mxu0  ;;  %v2257_v27 = vpop.f32.mrf.mxu1 }
 0x58b   :  { %v2270_v36 = vpop.f32.mrf.mxu2  ;;  %v2283_v40 = vpop.f32.mrf.mxu3 }
 0x58f   :  { %v2297_v45 = vpop.f32.mrf.mxu0  ;;  %v2310_v55 = vpop.f32.mrf.mxu1 }
 0x590   :  { %v2298_v57 = vadd.f32 %v2297_v45, %v2242_v8  ;;  %v2311_v3 = vadd.f32 %v2310_v55, %v2255_v9 }
 0x592   :  { %v2340_v15 = vadd.f32 %v2298_v57, %v4438_v0  ;;  %v2341_v16 = vadd.f32 %v2311_v3, %v5548_v6 }
 0x594   :  { %v2344_v23 = vmul.f32 0.5, %v2340_v15  ;;  %v2348_v26 = vmul.f32 0.5, %v2341_v16 }
 0x596   :  { %3594 = vtanh.f32 %v2344_v23  ;;  %v2323_v46 = vpop.f32.mrf.mxu2  ;;  %v2336_v37 = vpop.f32.mrf.mxu3 }
 0x597   :  { %3596 = vtanh.f32 %v2348_v26  ;;  %v2324_v14 = vadd.f32 %v2323_v46, %v2268_v20  ;;  %v2337_v24 = vadd.f32 %v2336_v37, %v2281_v21  ;;  %v2299_v17 = vpop.f32.mrf.mxu0  ;;  %v2312_v19 = vpop.f32.mrf.mxu1 }
 0x599   :  { %v2342_v13 = vadd.f32 %v2324_v14, %v5742_v38  ;;  %v2343_v33 = vadd.f32 %v2337_v24, %v5743_v54 }
 0x59b   :  { %3598 = vtanh.f32 %v2342_v13  ;;  %v2353_v43 = vmul.f32 0.5, %v2343_v33  ;;  %v3434_v13 = vld [vmem:[#allocation8 + $0x30] sm:$0xff]  ;;  %v3433_v33 = vld [vmem:[#allocation8 + $0x28] sm:$0xff] }
 0x59c   :  { %v3595_v41 = vpop.eup %3594 }
 0x59d   :  { %v3597_v2 = vpop.eup %3596  ;;  %v2346_v5 = vmul.f32 0.5, %v3595_v41  ;;  %3600 = vtanh.f32 %v2353_v43 }
 0x59e   :  { %v2350_v10 = vmul.f32 0.5, %v3597_v2  ;;  %v2325_v35 = vpop.f32.mrf.mxu2  ;;  %v2338_v49 = vpop.f32.mrf.mxu3  ;;  %v3432_v2 = vld [vmem:[#allocation8 + $0x20] sm:$0xff] }
 0x59f   :  { %v2347_v51 = vadd.f32 0.5, %v2346_v5  ;;  %v2371_v42 = vpop.f32.mrf.mxu0  ;;  %v2384_v31 = vpop.f32.mrf.mxu1  ;;  %v3431_v5 = vld [vmem:[#allocation8 + $0x18] sm:$0xff] }
 0x5a0   :  { %v2351_v53 = vadd.f32 0.5, %v2350_v10  ;;  %v2418_v63 = vrot.slane %v2371_v42, 2  ;;  %v2419_v50 = vrot.slane %v2384_v31, 2  ;;  %v3430_v42 = vld [vmem:[#allocation8 + $0x10] sm:$0xff]  ;;  %v3429_v31 = vld [vmem:[#allocation8 + $0x8] sm:$0xff] }
 0x5a1   :  { %v3599_v1 = vpop.eup %3598 }
 0x5a2   :  { %v2357_v28 = vmul.f32 %v2351_v53, %v5032_v56  ;;  %v2358_v4 = vmul.f32 %v3599_v1, %v2347_v51  ;;  %v2426_v58 = vadd.f32 %v2418_v63, %v4793_v29  ;;  %v2427_v18 = vadd.f32 %v2419_v50, %v5868_v62  ;;  %v3428_v50 = vld [vmem:[#allocation8] sm:$0xff]  ;;  %v3443_v62 = vld [vmem:[%s5203_s9 + $0x38] sm:$0xff] }
 0x5a3   :  { %v3601_v59 = vpop.eup %3600 }
 0x5a4   :  { %v5144_v12 = vadd.f32 %v2358_v4, %v2357_v28  ;;  %v2430_v30 = vmul.f32 0.5, %v2426_v58  ;;  %v2434_v34 = vmul.f32 0.5, %v2427_v18  ;;  %v2355_v39 = vmul.f32 0.5, %v3601_v59 }
 0x5a6   :  { %3602 = vtanh.f32 %v5144_v12  ;;  %v2397_v25 = vpop.f32.mrf.mxu2  ;;  %v2410_v44 = vpop.f32.mrf.mxu3  ;;  %v2356_v7 = vadd.f32 0.5, %v2355_v39 }
 0x5a7   :  { %3604 = vtanh.f32 %v2430_v30  ;;  %v2420_v48 = vrot.slane %v2397_v25, 2  ;;  %v2421_v52 = vrot.slane %v2410_v44, 2  ;;  %v2373_v60 = vpop.f32.mrf.mxu0  ;;  %v2386_v56 = vpop.f32.mrf.mxu1  ;;  %v3442_v30 = vld [vmem:[%s5203_s9 + $0x30] sm:$0xff] }
 0x5a8   :  { %3606 = vtanh.f32 %v2434_v34 }
 0x5a9   :  { %v2428_v29 = vadd.f32 %v2420_v48, %v5745_v32  ;;  %v2429_v61 = vadd.f32 %v2421_v52, %v4808_v11  ;;  %v2444_v32 = vrot.slane %v5042_v47, 6  ;;  %v3435_v47 = vld [vmem:[#allocation8 + $0x38] sm:$0xff] }
 0x5ab   :  { %3608 = vtanh.f32 %v2428_v29  ;;  %v2439_v8 = vmul.f32 0.5, %v2429_v61 }
 0x5ac   :  { %v3603_v9 = vpop.eup %3602 }
 0x5ad   :  { %v3605_v20 = vpop.eup %3604  ;;  %v2361_v21 = vmul.f32 %v3603_v9, %v2356_v7  ;;  %3610 = vtanh.f32 %v2439_v8  ;;  %v3440_v7 = vld [vmem:[%s5203_s9 + $0x20] sm:$0xff] }
 0x5ae   :  { %v3607_v22 = vpop.eup %3606  ;;  %v2432_v27 = vmul.f32 0.5, %v3605_v20  ;;  %v2399_v36 = vpop.f32.mrf.mxu2 }
 0x5af   :  { %v2412_v40 = vpop.f32.mrf.mxu3  ;;  %v2452_v45 = vpack.c.bf16 %v2361_v21, %v2361_v21  ;;  %v2436_v55 = vmul.f32 0.5, %v3607_v22 }
 0x5b0   :  { %v2433_v57 = vadd.f32 0.5, %v2432_v27 }
 0x5b1   :  { %v3609_v3 = vpop.eup %3608  ;;  %v2437_v15 = vadd.f32 0.5, %v2436_v55  ;;  %2461 = vmatmul.bf16.vlgmr.msra.gmra.mxu0 %v2452_v45  ;;  %2474 = vmatmul.bf16.vlgmr.msrb.gmra.mxu1 %v2452_v45 }
 0x5b2   :  { %v2447_v11 = vmul.f32 %v3609_v3, %v2433_v57  ;;  %2487 = vmatmul.bf16.vlgmr.msrb.gmra.mxu2 %v2452_v45  ;;  %2500 = vmatmul.bf16.vlgmr.msra.gmra.mxu3 %v2452_v45  ;;  %v3438_v57 = vld [vmem:[%s5203_s9 + $0x10] sm:$0xff] }
 0x5b3   :  { %v2446_v16 = vmul.f32 %v2444_v32, %v2437_v15  ;;  %v3611_v23 = vpop.eup %3610  ;;  %2651 = vmatpush.bf16.msra.mxu0 %v3435_v47  ;;  %2734 = vmatpush.bf16.msrb.mxu1 %v3443_v62 }
 0x5b4   :  { %v2441_v46 = vmul.f32 0.5, %v3611_v23 }
 0x5b5   :  { %v2448_v26 = vadd.f32 %v2447_v11, %v2446_v16 }
 0x5b6   :  { %v2442_v37 = vadd.f32 0.5, %v2441_v46  ;;  %v3436_v46 = vld [vmem:[%s5203_s9] sm:$0xff] }
 0x5b7   :  { %3612 = vtanh.f32 %v2448_v26  ;;  %2652 = vmatpush.bf16.msra.mxu0 %v3434_v13  ;;  %2735 = vmatpush.bf16.msrb.mxu1 %v3442_v30 }
 0x5bb   :  { %2653 = vmatpush.bf16.msra.mxu0 %v3433_v33 }
 0x5bd   :  { %v3613_v14 = vpop.eup %3612 }
 0x5be   :  { %v2450_v24 = vmul.f32 %v3613_v14, %v2442_v37  ;;  %v3447_v37 = vld [vmem:[%s5205_s11 + $0x18] sm:$0xff]  ;;  %v3446_v14 = vld [vmem:[%s5205_s11 + $0x10] sm:$0xff] }
 0x5bf   :  { %2654 = vmatpush.bf16.msra.mxu0 %v3432_v2  ;;  %2793 = vmatpush.bf16.msrb.mxu2 %v3447_v37  ;;  %v3462_v2 = vld [vmem:[#allocation11] ss:$0 sm:$0xff] }
 0x5c0   :  { %v2451_v17 = vpack.c.bf16 %v2450_v24, %v2450_v24  ;;  %v3445_v24 = vld [vmem:[%s5205_s11 + $0x8] sm:$0xff] }
 0x5c2   :  { %v2506_v19 = vrot.slane %v2451_v17, 3  ;;  %v3461_v17 = vld [vmem:[#allocation10] ss:$0 sm:$0xff] }
 0x5c3   :  { %2655 = vmatpush.bf16.msra.mxu0 %v3431_v5  ;;  %2794 = vmatpush.bf16.msrb.mxu2 %v3446_v14 }
 0x5c4   :  { %2516 = vmatmul.bf16.vlgmr.msrb.gmra.mxu0 %v2506_v19  ;;  %2529 = vmatmul.bf16.vlgmr.msra.gmra.mxu1 %v2506_v19 }
 0x5c5   :  { %2542 = vmatmul.bf16.vlgmr.msra.gmra.mxu2 %v2506_v19  ;;  %2555 = vmatmul.bf16.vlgmr.msrb.gmra.mxu3 %v2506_v19 }
 0x5c7   :  { %2656 = vmatpush.bf16.msra.mxu0 %v3430_v42  ;;  %2795 = vmatpush.bf16.msrb.mxu2 %v3445_v24  ;;  %v3463_v42 = vld [vmem:[#allocation13] ss:$0 sm:$0xff] }
 0x5cb   :  { %2657 = vmatpush.bf16.msra.mxu0 %v3429_v31 }
 0x5cf   :  { %2658 = vmatpush.bf16.msra.mxu0 %v3428_v50 }
 0x62e   :  { %v2462_v43 = vpop.f32.mrf.mxu0  ;;  %v2475_v41 = vpop.f32.mrf.mxu1 }
 0x635   :  { %v2488_v10 = vpop.f32.mrf.mxu2  ;;  %v2501_v35 = vpop.f32.mrf.mxu3 }
 0x636   :  { %v2464_v49 = vpop.f32.mrf.mxu0  ;;  %v2477_v51 = vpop.f32.mrf.mxu1 }
 0x63d   :  { %v2490_v53 = vpop.f32.mrf.mxu2  ;;  %v2503_v63 = vpop.f32.mrf.mxu3 }
 0x641   :  { %v2517_v1 = vpop.f32.mrf.mxu0  ;;  %v2530_v28 = vpop.f32.mrf.mxu1 }
 0x642   :  { %v2518_v4 = vadd.f32 %v2517_v1, %v2462_v43  ;;  %v2531_v58 = vadd.f32 %v2530_v28, %v2475_v41  ;;  %v3444_v41 = vld [vmem:[%s5205_s11] sm:$0xff] }
 0x643   :  { %2796 = vmatpush.bf16.msrb.mxu2 %v3444_v41 }
 0x644   :  { %v2560_v18 = vadd.f32 %v2518_v4, %v4438_v0  ;;  %v2561_v59 = vadd.f32 %v2531_v58, %v5548_v6  ;;  %v3441_v6 = vld [vmem:[%s5203_s9 + $0x28] sm:$0xff] }
 0x645   :  { %2736 = vmatpush.bf16.msrb.mxu1 %v3441_v6 }
 0x646   :  { %v2564_v34 = vmul.f32 0.5, %v2560_v18  ;;  %v2568_v25 = vmul.f32 0.5, %v2561_v59 }
 0x648   :  { %3614 = vtanh.f32 %v2564_v34  ;;  %v2543_v44 = vpop.f32.mrf.mxu2  ;;  %v2556_v39 = vpop.f32.mrf.mxu3 }
 0x649   :  { %3616 = vtanh.f32 %v2568_v25  ;;  %v2544_v48 = vadd.f32 %v2543_v44, %v2488_v10  ;;  %v2557_v52 = vadd.f32 %v2556_v39, %v2501_v35  ;;  %v2519_v60 = vpop.f32.mrf.mxu0  ;;  %v2532_v56 = vpop.f32.mrf.mxu1  ;;  %2737 = vmatpush.bf16.msrb.mxu1 %v3440_v7 }
 0x64b   :  { %v2562_v0 = vadd.f32 %v2544_v48, %v5742_v38  ;;  %v2563_v29 = vadd.f32 %v2557_v52, %v5743_v54  ;;  %v3439_v54 = vld [vmem:[%s5203_s9 + $0x18] sm:$0xff] }
 0x64d   :  { %3618 = vtanh.f32 %v2562_v0  ;;  %v2573_v61 = vmul.f32 0.5, %v2563_v29  ;;  %2738 = vmatpush.bf16.msrb.mxu1 %v3439_v54 }
 0x64e   :  { %v3615_v8 = vpop.eup %3614 }
 0x64f   :  { %v3617_v9 = vpop.eup %3616  ;;  %v2566_v20 = vmul.f32 0.5, %v3615_v8  ;;  %3620 = vtanh.f32 %v2573_v61 }
 0x650   :  { %v2570_v21 = vmul.f32 0.5, %v3617_v9  ;;  %v2545_v22 = vpop.f32.mrf.mxu2  ;;  %v2558_v27 = vpop.f32.mrf.mxu3 }
 0x651   :  { %v2567_v36 = vadd.f32 0.5, %v2566_v20  ;;  %2739 = vmatpush.bf16.msrb.mxu1 %v3438_v57 }
 0x652   :  { %v2571_v38 = vadd.f32 0.5, %v2570_v21 }
 0x653   :  { %v3619_v40 = vpop.eup %3618 }
 0x654   :  { %v2577_v45 = vmul.f32 %v2571_v38, %v5144_v12  ;;  %v2578_v55 = vmul.f32 %v3619_v40, %v2567_v36  ;;  %v3437_v12 = vld [vmem:[%s5203_s9 + $0x8] sm:$0xff] }
 0x655   :  { %v3621_v3 = vpop.eup %3620  ;;  %2740 = vmatpush.bf16.msrb.mxu1 %v3437_v12 }
 0x656   :  { %v2579_v15 = vadd.f32 %v2578_v55, %v2577_v45  ;;  %v2575_v32 = vmul.f32 0.5, %v3621_v3 }
 0x658   :  { %3622 = vtanh.f32 %v2579_v15  ;;  %v2576_v11 = vadd.f32 0.5, %v2575_v32 }
 0x659   :  { %2741 = vmatpush.bf16.msrb.mxu1 %v3436_v46 }
 0x65e   :  { %v3623_v16 = vpop.eup %3622 }
 0x65f   :  { %v2581_v23 = vmul.f32 %v3623_v16, %v2576_v11 }
 0x661   :  { %v2582_v26 = vpack.c.bf16 %v2581_v23, %v2581_v23 }
 0x663   :  { %2659 = vmatmul.bf16.vlgmr.msra.gmra.mxu0 %v2582_v26 }
 0x6e0   :  { %v2660_v19 = vpop.f32.mrf.mxu0 }
 0x6e1   :  { %v2661_v47 = vadd.f32 %v3461_v17, %v2660_v19 }
 0x6e3   :  { %v2664_v13 = vmax.f32 %v2661_v47, 0.0 }
 0x6e5   :  { %v2665_v33 = vpack.c.bf16 %v2664_v13, %v2664_v13 }
 0x6e7   :  { %2742 = vmatmul.bf16.vlgmr.msrb.gmra.mxu1 %v2665_v33 }
 0x6e8   :  { %v2662_v43 = vpop.f32.mrf.mxu0 }
 0x764   :  { %v2743_v5 = vpop.f32.mrf.mxu1 }
 0x765   :  { %v2744_v10 = vadd.f32 %v3462_v2, %v2743_v5 }
 0x767   :  { %v2747_v35 = vmax.f32 %v2744_v10, 0.0 }
 0x769   :  { %v2748_v49 = vpack.c.bf16 %v2747_v35, %v2747_v35 }
 0x76b   :  { %3323 = vmatmul.msk.bf16.vlgmr.msrb.gmra.mxu2 %vm2785_vm1, %v2748_v49 }
 0x76c   :  { %v2745_v51 = vpop.f32.mrf.mxu1 }
 0x7ee   :  { %v2798_v31 = vpop.f32.mrf.mxu2 }
 0x7ef   :  { %v2799_v53 = vadd.f32 %v3463_v42, %v2798_v31 }
 0x7f1   :  { %2802 = vst [vmem:[#allocation14] sm:$0x3] %v2799_v53 }
 0x7f2   :  { %2813 = dma.vmem_to_hbm [thread:$0]  %s2809_s1, 32, %s2811_s10, [#allocation4]  }
 0x7f6   :  { %v2800_v63 = vpop.f32.mrf.mxu2 }
 0x7f7   :  { %3824 = dma.done.wait [#allocation4], 32  }
 0x7f8   :  { %3825 = vsyncadd [#allocation4], 4294967264 }
 0x7f9   :  { %2818 = vsyncpa [#allocation3], 1 }
 0x7fa   :  { %2819 = vsyncpa [#allocation6], 1 }
 0x7fb   :  { %2820 = vsyncpa [#allocation9], 1 }
 0x7fc   :  { %2821 = vsyncpa [#allocation12], 1 }
 0x7fd   :  { %2822 = vsyncpa [#allocation4], 1 }

</bundles_post_ra>
